<compile_context>
chip_gen: v6e
topology: v6e:2x2x1
jax: 0.10.0
libtpu: 0.0.40
codegen_flags: <defaults>
</compile_context>

<pallas_src>
import functools

import numpy as np
import jax
import jax.numpy as jnp
from jax import lax
from jax.experimental import pallas as pl
from jax.experimental.pallas import tpu as pltpu

BN_EPS = 1e-5
LN_EPS = 1e-5


# ----------------------------------------------------------------------------
# Fused decoder kernel (single grid step processes the whole batch)
# ----------------------------------------------------------------------------
def _decoder_kernel(taps_ref, xin_ref, mmean_ref, w_ref, b_ref, o_ref, *,
                    B, n_tok, nr, heads, dim_head, woff, boff):
    f32, bf16 = jnp.float32, jnp.bfloat16
    BN = B * n_tok
    c_dw = nr * 32            # depthwise output width (all rates side by side)
    c_cat = (nr + 1) * 32     # ASPP concat width
    D = 64
    inner = heads * dim_head

    # ---- ASPP depthwise dilated 3x3 (+BN fold + ReLU): lane-dense VPU MAs ----
    acc = None
    for d in range(9):
        term = taps_ref[d] * b_ref[boff['dw_w'] + d:boff['dw_w'] + d + 1, :c_dw]
        acc = term if acc is None else acc + term
    dw = jnp.maximum(acc + b_ref[boff['dw_b']:boff['dw_b'] + 1, :c_dw], 0.0)

    xin = xin_ref[...]                                       # (R, 128) bf16

    # ---- branch pointwise 1x1 + ASPP conv1 1x1 (+BN+ReLU); channel concat is
    #      realized via disjoint weight column blocks accumulated on the MXU --
    cat = jnp.dot(dw.astype(bf16),
                  w_ref[woff['w_br']:woff['w_br'] + c_dw, :c_cat],
                  preferred_element_type=f32)
    cat = cat + jnp.dot(xin, w_ref[woff['w_c1']:woff['w_c1'] + 128, :c_cat],
                        preferred_element_type=f32)
    cat = jnp.maximum(cat + b_ref[boff['b_cat']:boff['b_cat'] + 1, :c_cat], 0.0)

    # ---- conv_last (feat cols 32:64) + proj (feat cols 0:32), same trick ----
    feat = jnp.dot(cat.astype(bf16),
                   w_ref[woff['w_last']:woff['w_last'] + c_cat, :D],
                   preferred_element_type=f32)
    feat = feat + jnp.dot(xin, w_ref[woff['w_proj']:woff['w_proj'] + 128, :D],
                          preferred_element_type=f32)
    feat = jnp.maximum(feat + b_ref[boff['b_feat']:boff['b_feat'] + 1, :D], 0.0)

    # ---- x.mean(dim=2): constant block-diagonal averaging matmul ----
    tokens = jnp.dot(mmean_ref[...], feat.astype(bf16),
                     preferred_element_type=f32)             # (BN, 64)

    # ---- Transformer_vit block (all B*n_tok tokens at once; cross-batch
    #      attention removed by an additive block-diagonal mask) ----
    def layer_norm(z, g_off, b_off):
        g = b_ref[g_off:g_off + 1, :D]
        b = b_ref[b_off:b_off + 1, :D]
        mu = jnp.mean(z, axis=-1, keepdims=True)
        var = jnp.mean(jnp.square(z - mu), axis=-1, keepdims=True)
        return (z - mu) * lax.rsqrt(var + LN_EPS) * g + b

    x = tokens + b_ref[boff['pos']:boff['pos'] + BN, :D]
    xn = layer_norm(x, boff['ln1_g'], boff['ln1_b']).astype(bf16)
    q_all = jnp.dot(xn, w_ref[woff['wq']:woff['wq'] + D, :inner],
                    preferred_element_type=f32)
    k_all = jnp.dot(xn, w_ref[woff['wk']:woff['wk'] + D, :inner],
                    preferred_element_type=f32)
    v_all = jnp.dot(xn, w_ref[woff['wv']:woff['wv'] + D, :inner],
                    preferred_element_type=f32)

    mask_bias = b_ref[boff['attn_mask']:boff['attn_mask'] + BN, :BN]
    scale = dim_head ** -0.5
    attn_out = None
    for h in range(heads):
        lo = h * dim_head
        q = q_all[:, lo:lo + dim_head].astype(bf16)
        k = k_all[:, lo:lo + dim_head].astype(bf16)
        v = v_all[:, lo:lo + dim_head].astype(bf16)
        dots = lax.dot_general(q, k, (((1,), (1,)), ((), ())),
                               preferred_element_type=f32) * scale + mask_bias
        dots = dots - jnp.max(dots, axis=-1, keepdims=True)
        e = jnp.exp(dots)
        attn = (e * pl.reciprocal(jnp.sum(e, axis=-1, keepdims=True),
                                  approx=True)).astype(bf16)
        o_h = jnp.dot(attn, v, preferred_element_type=f32).astype(bf16)
        term = jnp.dot(o_h,
                       w_ref[woff['wo'] + lo:woff['wo'] + lo + dim_head, :D],
                       preferred_element_type=f32)
        attn_out = term if attn_out is None else attn_out + term
    x = attn_out + b_ref[boff['bo']:boff['bo'] + 1, :D] + x

    xn2 = layer_norm(x, boff['ln2_g'], boff['ln2_b']).astype(bf16)
    h1 = jnp.dot(xn2, w_ref[woff['wf1']:woff['wf1'] + D, :inner],
                 preferred_element_type=f32) + b_ref[boff['bf1']:boff['bf1'] + 1, :inner]
    # TODO(synk): PyTorch nn.GELU default is erf-exact; tanh approximation is
    #             used here (|diff| ~ 1e-3).
    h1 = 0.5 * h1 * (1.0 + jnp.tanh(0.7978845608028654 *
                                    (h1 + 0.044715 * h1 * h1 * h1)))
    x = jnp.dot(h1.astype(bf16), w_ref[woff['wf2']:woff['wf2'] + inner, :D],
                preferred_element_type=f32) + b_ref[boff['bf2']:boff['bf2'] + 1, :D] + x

    # ---- pre_cls (Conv3x3+BN, Conv3x3+BN, no ReLU) with cls folded in ----
    pstack = w_ref[woff['pshift']:woff['pshift'] + 9 * BN, :BN]   # (9*BN, BN)

    def conv3x3(y, w_off, out_w, b_off):
        shifted = jnp.dot(pstack, y.astype(bf16),
                          preferred_element_type=f32).astype(bf16)  # (9*BN, D)
        a = None
        for d in range(9):
            t = jnp.dot(shifted[d * BN:(d + 1) * BN, :],
                        w_ref[w_off + d * D:w_off + (d + 1) * D, :out_w],
                        preferred_element_type=f32)
            a = t if a is None else a + t
        return a + b_ref[b_off:b_off + 1, :out_w]

    y = conv3x3(x, woff['w_pc1'], D, boff['b_pc1'])            # (BN, 64)
    o_ref[...] = conv3x3(y, woff['w_pc2'], 128, boff['b_pc2'])  # (BN, 128)


# ----------------------------------------------------------------------------
# Slab packing helper (static row offsets, lane width 128)
# ----------------------------------------------------------------------------
def _pack_slab(blocks, width, dtype, row_align):
    parts, offsets, cur = [], {}, 0
    for name, mat in blocks:
        mat = jnp.asarray(mat, dtype)
        r, c = mat.shape
        assert c <= width, (name, c, width)
        pad_r = (-r) % row_align
        parts.append(jnp.pad(mat, ((0, pad_r), (0, width - c))))
        offsets[name] = cur
        cur += r + pad_r
    return jnp.concatenate(parts, axis=0), offsets


# ----------------------------------------------------------------------------
# pallas_call wrapper
# ----------------------------------------------------------------------------
def decoder_forward(x0_nchw, x1_nchw, params, *, rates, ncls,
                    heads=4, dim_head=32):
    rates = tuple(int(r) for r in rates)
    nr = len(rates)
    x0 = jnp.transpose(x0_nchw, (0, 2, 3, 1)).astype(jnp.float32)  # (B,H,W,48)
    x1 = jnp.transpose(x1_nchw, (0, 2, 3, 1)).astype(jnp.float32)  # (B,H,W,32)
    B, H, W, C1 = x1.shape
    C0 = x0.shape[-1]
    cs = int(round(W ** 0.5))
    assert cs * cs == W, "token count must equal Crop_size**2"
    n_tok, BN, R = W, B * W, B * H * W
    Rm = max(rates)
    assert (nr + 1) * 32 <= 128 and BN <= 128 and heads * dim_head <= 128

    # --- im2col taps for the dilated depthwise convs: (9, B*H*W, nr*32) f32 --
    x1p = jnp.pad(x1, ((0, 0), (Rm, Rm), (Rm, Rm), (0, 0)))
    taps = []
    for dy in (-1, 0, 1):
        for dx in (-1, 0, 1):
            per_rate = [x1p[:, Rm + dy * r:Rm + dy * r + H,
                            Rm + dx * r:Rm + dx * r + W, :] for r in rates]
            taps.append(jnp.concatenate(per_rate, -1).reshape(R, nr * C1))
    taps = jnp.stack(taps, axis=0)

    # --- x0|x1 concat, zero-padded to 128 lanes, bf16 (only feeds the MXU) ---
    xin = jnp.concatenate(
        [x0.reshape(R, C0), x1.reshape(R, C1),
         jnp.zeros((R, 128 - C0 - C1), jnp.float32)], -1).astype(jnp.bfloat16)

    # --- block-diag mean-over-H matrix (exact for power-of-two H in bf16) ---
    m = np.zeros((BN, R), np.float32)
    for b in range(B):
        for w in range(W):
            m[b * n_tok + w, b * H * W + np.arange(H) * W + w] = 1.0 / H
    mmean = jnp.asarray(m, jnp.bfloat16)

    # --- block-diag 3x3 shift matrices over the (cs, cs) token grid ---------
    t = np.arange(n_tok)
    ti, tj = t // cs, t % cs
    pstack = np.zeros((9, BN, BN), np.float32)
    d = 0
    for dy in (-1, 0, 1):
        for dx in (-1, 0, 1):
            valid = (ti + dy >= 0) & (ti + dy < cs) & (tj + dx >= 0) & (tj + dx < cs)
            src = (ti + dy) * cs + (tj + dx)
            blk = np.zeros((n_tok, n_tok), np.float32)
            blk[t[valid], src[valid]] = 1.0
            for b in range(B):
                pstack[d, b * n_tok:(b + 1) * n_tok,
                       b * n_tok:(b + 1) * n_tok] = blk
            d += 1
    pstack = jnp.asarray(pstack.reshape(9 * BN, BN), jnp.bfloat16)

    # --- additive attention mask (0 within batch, -1e30 across batches) -----
    amask = np.full((BN, BN), -1e30, np.float32)
    for b in range(B):
        amask[b * n_tok:(b + 1) * n_tok, b * n_tok:(b + 1) * n_tok] = 0.0

    # --- pack everything into two slabs: 2 weight/bias DMAs instead of ~27 --
    w_slab, woff = _pack_slab([
        ('w_br', params['w_br']), ('w_c1', params['w_c1']),
        ('w_last', params['w_last']), ('w_proj', params['w_proj']),
        ('wq', params['wq']), ('wk', params['wk']), ('wv', params['wv']),
        ('wo', params['wo']), ('wf1', params['wf1']), ('wf2', params['wf2']),
        ('w_pc1', params['w_pc1']), ('w_pc2', params['w_pc2_cls']),
        ('pshift', pstack),
    ], 128, jnp.bfloat16, 16)

    b_slab, boff = _pack_slab([
        ('dw_w', params['dw_w']), ('dw_b', params['dw_b']),
        ('b_cat', params['b_cat']), ('b_feat', params['b_feat']),
        ('ln1_g', params['ln1_g']), ('ln1_b', params['ln1_b']),
        ('ln2_g', params['ln2_g']), ('ln2_b', params['ln2_b']),
        ('bo', params['bo']), ('bf1', params['bf1']), ('bf2', params['bf2']),
        ('b_pc1', params['b_pc1']), ('b_pc2', params['b_pc2_cls']),
        ('attn_mask', jnp.asarray(amask)),
        ('pos', jnp.tile(params['pos'], (B, 1))),
    ], 128, jnp.float32, 8)

    kernel = functools.partial(
        _decoder_kernel, B=B, n_tok=n_tok, nr=nr,
        heads=heads, dim_head=dim_head, woff=woff, boff=boff)

    # Single grid step: whole batch per invocation (best on single-TC v5e/v6e;
    # working set ~1.4 MB << any VMEM limit).  On v7x a 2-way row split could
    # feed both TensorCores, but the kernel is latency-bound at this size.
    out = pl.pallas_call(
        kernel,
        out_shape=jax.ShapeDtypeStruct((BN, 128), jnp.float32),
        grid=(1,),
        in_specs=[
            pl.BlockSpec(taps.shape, lambda i: (0, 0, 0)),
            pl.BlockSpec(xin.shape, lambda i: (0, 0)),
            pl.BlockSpec(mmean.shape, lambda i: (0, 0)),
            pl.BlockSpec(w_slab.shape, lambda i: (0, 0)),
            pl.BlockSpec(b_slab.shape, lambda i: (0, 0)),
        ],
        out_specs=pl.BlockSpec((BN, 128), lambda i: (0, 0)),
        compiler_params=pltpu.CompilerParams(
            dimension_semantics=("arbitrary",)),
    )(taps, xin, mmean, w_slab, b_slab)

    pred = out[:, :ncls].reshape(B, cs, cs, ncls)
    return jnp.transpose(pred, (0, 3, 1, 2))          # back to PyTorch NCHW


# ----------------------------------------------------------------------------
# Parameter construction (deterministic synthetic weights, BN folded)
# ----------------------------------------------------------------------------
def init_params(rates, crop_size, ncls, seed=42):
    rates = tuple(int(r) for r in rates)
    nr = len(rates)
    keys = iter(jax.random.split(jax.random.PRNGKey(seed), 128))
    f32 = jnp.float32

    def nrm(shape, s=0.1):
        return jax.random.normal(next(keys), shape, f32) * s

    def uni(shape, lo, hi):
        return jax.random.uniform(next(keys), shape, f32, lo, hi)

    def bn_fold(c):
        gamma = uni((c,), 0.8, 1.2)
        beta = nrm((c,), 0.05)
        mean = nrm((c,), 0.05)
        var = uni((c,), 0.5, 1.5)
        scale = gamma / jnp.sqrt(var + BN_EPS)
        return scale, beta - mean * scale

    C1, C0, D = 32, 48, 64
    c_dw, c_cat = nr * C1, (nr + 1) * C1
    p = {}

    # ASPP depthwise dilated 3x3 per rate (BN folded), rates stacked lane-wise
    dw_w = jnp.zeros((9, c_dw), f32)
    dw_b = jnp.zeros((1, c_dw), f32)
    for r in range(nr):
        w = nrm((9, C1))
        s, sh = bn_fold(C1)
        dw_w = dw_w.at[:, r * C1:(r + 1) * C1].set(w * s[None, :])
        dw_b = dw_b.at[:, r * C1:(r + 1) * C1].set(sh[None, :])
    p['dw_w'], p['dw_b'] = dw_w, dw_b

    # per-branch pointwise 1x1 (block diag) + ASPP conv1 1x1 -> "concat" cols
    w_br = jnp.zeros((c_dw, c_cat), f32)
    b_cat = jnp.zeros((1, c_cat), f32)
    for r in range(nr):
        w = nrm((C1, C1))
        s, sh = bn_fold(C1)
        w_br = w_br.at[r * C1:(r + 1) * C1, r * C1:(r + 1) * C1].set(w * s[None, :])
        b_cat = b_cat.at[:, r * C1:(r + 1) * C1].set(sh[None, :])
    w = nrm((C1, C1)); s, sh = bn_fold(C1)               # ASPP conv1 branch
    w_c1 = jnp.zeros((128, c_cat), f32).at[C0:C0 + C1,
                                           nr * C1:nr * C1 + C1].set(w * s[None, :])
    b_cat = b_cat.at[:, nr * C1:nr * C1 + C1].set(sh[None, :])
    p['w_br'], p['w_c1'], p['b_cat'] = w_br, w_c1, b_cat

    # conv_last -> feat cols 32:64, proj -> feat cols 0:32
    w = nrm((c_cat, C1)); s, sh = bn_fold(C1)
    w_last = jnp.zeros((c_cat, D), f32).at[:, C1:2 * C1].set(w * s[None, :])
    b_feat = jnp.zeros((1, D), f32).at[:, C1:2 * C1].set(sh[None, :])
    w = nrm((C0, C1)); s, sh = bn_fold(C1)
    w_proj = jnp.zeros((128, D), f32).at[:C0, :C1].set(w * s[None, :])
    b_feat = b_feat.at[:, :C1].set(sh[None, :])
    p['w_last'], p['w_proj'], p['b_feat'] = w_last, w_proj, b_feat

    # Transformer_vit
    n = crop_size * crop_size
    heads, dh = 4, 32
    inner = heads * dh
    p['pos'] = nrm((n, D), 0.2)
    p['ln1_g'] = uni((1, D), 0.8, 1.2); p['ln1_b'] = nrm((1, D), 0.05)
    p['ln2_g'] = uni((1, D), 0.8, 1.2); p['ln2_b'] = nrm((1, D), 0.05)
    p['wq'] = nrm((D, inner)); p['wk'] = nrm((D, inner)); p['wv'] = nrm((D, inner))
    p['wo'] = nrm((inner, D)); p['bo'] = nrm((1, D), 0.05)
    p['wf1'] = nrm((D, inner)); p['bf1'] = nrm((1, inner), 0.05)
    p['wf2'] = nrm((inner, D)); p['bf2'] = nrm((1, D), 0.05)

    # pre_cls conv1 (3x3, BN folded), tap-major (9*64, 64)
    w = nrm((9, D, D), 0.05); s, sh = bn_fold(D)
    p['w_pc1'] = (w * s[None, None, :]).reshape(9 * D, D)
    p['b_pc1'] = sh.reshape(1, D)

    # pre_cls conv2 (3x3, BN folded) with the 1x1 cls conv (+bias) folded in,
    # zero-padded to a lane-dense 128-wide classifier output
    w2 = nrm((9, D, D), 0.05); s2, sh2 = bn_fold(D)
    w_cls = nrm((D, ncls)); b_cls = nrm((ncls,), 0.05)
    w2c = jnp.einsum('dio,oc->dic', w2 * s2[None, None, :], w_cls)
    p['w_pc2_cls'] = jnp.zeros((9 * D, 128), f32).at[:, :ncls].set(
        w2c.reshape(9 * D, ncls))
    p['b_pc2_cls'] = jnp.zeros((1, 128), f32).at[0, :ncls].set(sh2 @ w_cls + b_cls)
    return p


# ----------------------------------------------------------------------------
if __name__ == "__main__":
    B, H = 2, 8
    CS = 4                      # cfg.DATASET.CROP_SIZE
    WTOK = CS * CS              # input W carries Crop_size**2 tokens
    NCLS = 6                    # cfg.DATASET.CATEGORY_NUM
    RATES = (1, 2)              # cfg.MODEL.ASPP_RATES

    params = init_params(RATES, CS, NCLS, seed=42)

    k0, k1 = jax.random.split(jax.random.PRNGKey(0))
    x0 = jax.random.normal(k0, (B, 48, H, WTOK), jnp.float32)   # NCHW
    x1 = jax.random.normal(k1, (B, 32, H, WTOK), jnp.float32)   # NCHW

    fwd = jax.jit(functools.partial(decoder_forward, rates=RATES, ncls=NCLS))
    pred = jax.block_until_ready(fwd(x0, x1, params))

    assert pred.shape == (B, NCLS, CS, CS), pred.shape
    assert bool(jnp.all(jnp.isfinite(pred)))
    print("KERNEL_OK")
</pallas_src>

<mosaic_0001>
module attributes {stable_mosaic.version = 11 : i64} {
  func.func @_decoder_kernel(%arg0: i32, %arg1: memref<9x256x64xf32, #tpu.memory_space<vmem>>, %arg2: memref<256x128xbf16, #tpu.memory_space<vmem>>, %arg3: memref<32x256xbf16, #tpu.memory_space<vmem>>, %arg4: memref<2368x128xbf16, #tpu.memory_space<vmem>>, %arg5: memref<176x128xf32, #tpu.memory_space<vmem>>, %arg6: memref<32x128xf32, #tpu.memory_space<vmem>>) attributes {dimension_semantics = [#tpu.dimension_semantics<arbitrary>], iteration_bounds = array<i64: 1>, scalar_prefetch = 0 : i64, scratch_operands = 0 : i64, tpu.core_type = #tpu.core_type<tc>, window_params = [{pipeline_mode = #tpu.pipeline_mode<synchronous>, transform_indices = @transform_0, window_bounds = array<i64: 9, 256, 64>}, {pipeline_mode = #tpu.pipeline_mode<synchronous>, transform_indices = @transform_1, window_bounds = array<i64: 256, 128>}, {pipeline_mode = #tpu.pipeline_mode<synchronous>, transform_indices = @transform_2, window_bounds = array<i64: 32, 256>}, {pipeline_mode = #tpu.pipeline_mode<synchronous>, transform_indices = @transform_3, window_bounds = array<i64: 2368, 128>}, {pipeline_mode = #tpu.pipeline_mode<synchronous>, transform_indices = @transform_4, window_bounds = array<i64: 176, 128>}, {pipeline_mode = #tpu.pipeline_mode<synchronous>, transform_indices = @transform_5, window_bounds = array<i64: 32, 128>}]} {
    %c0 = arith.constant 0 : index
    %c0_0 = arith.constant 0 : index
    %c0_1 = arith.constant 0 : index
    %0 = vector.load %arg1[%c0, %c0_0, %c0_1] : memref<9x256x64xf32, #tpu.memory_space<vmem>>, vector<1x256x64xf32>
    %1 = vector.shape_cast %0 : vector<1x256x64xf32> to vector<256x64xf32>
    %c0_2 = arith.constant 0 : index
    %c0_3 = arith.constant 0 : index
    %2 = vector.load %arg5[%c0_2, %c0_3] : memref<176x128xf32, #tpu.memory_space<vmem>>, vector<1x64xf32>
    %3 = vector.broadcast %2 : vector<1x64xf32> to vector<256x64xf32>
    %4 = arith.mulf %1, %3 : vector<256x64xf32>
    %c1 = arith.constant 1 : index
    %c0_4 = arith.constant 0 : index
    %c0_5 = arith.constant 0 : index
    %5 = vector.load %arg1[%c1, %c0_4, %c0_5] : memref<9x256x64xf32, #tpu.memory_space<vmem>>, vector<1x256x64xf32>
    %6 = vector.shape_cast %5 : vector<1x256x64xf32> to vector<256x64xf32>
    %c1_6 = arith.constant 1 : index
    %c0_7 = arith.constant 0 : index
    %7 = vector.load %arg5[%c1_6, %c0_7] : memref<176x128xf32, #tpu.memory_space<vmem>>, vector<1x64xf32>
    %8 = vector.broadcast %7 : vector<1x64xf32> to vector<256x64xf32>
    %9 = arith.mulf %6, %8 : vector<256x64xf32>
    %10 = arith.addf %4, %9 : vector<256x64xf32>
    %c2 = arith.constant 2 : index
    %c0_8 = arith.constant 0 : index
    %c0_9 = arith.constant 0 : index
    %11 = vector.load %arg1[%c2, %c0_8, %c0_9] : memref<9x256x64xf32, #tpu.memory_space<vmem>>, vector<1x256x64xf32>
    %12 = vector.shape_cast %11 : vector<1x256x64xf32> to vector<256x64xf32>
    %c2_10 = arith.constant 2 : index
    %c0_11 = arith.constant 0 : index
    %13 = vector.load %arg5[%c2_10, %c0_11] : memref<176x128xf32, #tpu.memory_space<vmem>>, vector<1x64xf32>
    %14 = vector.broadcast %13 : vector<1x64xf32> to vector<256x64xf32>
    %15 = arith.mulf %12, %14 : vector<256x64xf32>
    %16 = arith.addf %10, %15 : vector<256x64xf32>
    %c3 = arith.constant 3 : index
    %c0_12 = arith.constant 0 : index
    %c0_13 = arith.constant 0 : index
    %17 = vector.load %arg1[%c3, %c0_12, %c0_13] : memref<9x256x64xf32, #tpu.memory_space<vmem>>, vector<1x256x64xf32>
    %18 = vector.shape_cast %17 : vector<1x256x64xf32> to vector<256x64xf32>
    %c3_14 = arith.constant 3 : index
    %c0_15 = arith.constant 0 : index
    %19 = vector.load %arg5[%c3_14, %c0_15] : memref<176x128xf32, #tpu.memory_space<vmem>>, vector<1x64xf32>
    %20 = vector.broadcast %19 : vector<1x64xf32> to vector<256x64xf32>
    %21 = arith.mulf %18, %20 : vector<256x64xf32>
    %22 = arith.addf %16, %21 : vector<256x64xf32>
    %c4 = arith.constant 4 : index
    %c0_16 = arith.constant 0 : index
    %c0_17 = arith.constant 0 : index
    %23 = vector.load %arg1[%c4, %c0_16, %c0_17] : memref<9x256x64xf32, #tpu.memory_space<vmem>>, vector<1x256x64xf32>
    %24 = vector.shape_cast %23 : vector<1x256x64xf32> to vector<256x64xf32>
    %c4_18 = arith.constant 4 : index
    %c0_19 = arith.constant 0 : index
    %25 = vector.load %arg5[%c4_18, %c0_19] : memref<176x128xf32, #tpu.memory_space<vmem>>, vector<1x64xf32>
    %26 = vector.broadcast %25 : vector<1x64xf32> to vector<256x64xf32>
    %27 = arith.mulf %24, %26 : vector<256x64xf32>
    %28 = arith.addf %22, %27 : vector<256x64xf32>
    %c5 = arith.constant 5 : index
    %c0_20 = arith.constant 0 : index
    %c0_21 = arith.constant 0 : index
    %29 = vector.load %arg1[%c5, %c0_20, %c0_21] : memref<9x256x64xf32, #tpu.memory_space<vmem>>, vector<1x256x64xf32>
    %30 = vector.shape_cast %29 : vector<1x256x64xf32> to vector<256x64xf32>
    %c5_22 = arith.constant 5 : index
    %c0_23 = arith.constant 0 : index
    %31 = vector.load %arg5[%c5_22, %c0_23] : memref<176x128xf32, #tpu.memory_space<vmem>>, vector<1x64xf32>
    %32 = vector.broadcast %31 : vector<1x64xf32> to vector<256x64xf32>
    %33 = arith.mulf %30, %32 : vector<256x64xf32>
    %34 = arith.addf %28, %33 : vector<256x64xf32>
    %c6 = arith.constant 6 : index
    %c0_24 = arith.constant 0 : index
    %c0_25 = arith.constant 0 : index
    %35 = vector.load %arg1[%c6, %c0_24, %c0_25] : memref<9x256x64xf32, #tpu.memory_space<vmem>>, vector<1x256x64xf32>
    %36 = vector.shape_cast %35 : vector<1x256x64xf32> to vector<256x64xf32>
    %c6_26 = arith.constant 6 : index
    %c0_27 = arith.constant 0 : index
    %37 = vector.load %arg5[%c6_26, %c0_27] : memref<176x128xf32, #tpu.memory_space<vmem>>, vector<1x64xf32>
    %38 = vector.broadcast %37 : vector<1x64xf32> to vector<256x64xf32>
    %39 = arith.mulf %36, %38 : vector<256x64xf32>
    %40 = arith.addf %34, %39 : vector<256x64xf32>
    %c7 = arith.constant 7 : index
    %c0_28 = arith.constant 0 : index
    %c0_29 = arith.constant 0 : index
    %41 = vector.load %arg1[%c7, %c0_28, %c0_29] : memref<9x256x64xf32, #tpu.memory_space<vmem>>, vector<1x256x64xf32>
    %42 = vector.shape_cast %41 : vector<1x256x64xf32> to vector<256x64xf32>
    %c7_30 = arith.constant 7 : index
    %c0_31 = arith.constant 0 : index
    %43 = vector.load %arg5[%c7_30, %c0_31] : memref<176x128xf32, #tpu.memory_space<vmem>>, vector<1x64xf32>
    %44 = vector.broadcast %43 : vector<1x64xf32> to vector<256x64xf32>
    %45 = arith.mulf %42, %44 : vector<256x64xf32>
    %46 = arith.addf %40, %45 : vector<256x64xf32>
    %c8 = arith.constant 8 : index
    %c0_32 = arith.constant 0 : index
    %c0_33 = arith.constant 0 : index
    %47 = vector.load %arg1[%c8, %c0_32, %c0_33] : memref<9x256x64xf32, #tpu.memory_space<vmem>>, vector<1x256x64xf32>
    %48 = vector.shape_cast %47 : vector<1x256x64xf32> to vector<256x64xf32>
    %c8_34 = arith.constant 8 : index
    %c0_35 = arith.constant 0 : index
    %49 = vector.load %arg5[%c8_34, %c0_35] : memref<176x128xf32, #tpu.memory_space<vmem>>, vector<1x64xf32>
    %50 = vector.broadcast %49 : vector<1x64xf32> to vector<256x64xf32>
    %51 = arith.mulf %48, %50 : vector<256x64xf32>
    %52 = arith.addf %46, %51 : vector<256x64xf32>
    %c16 = arith.constant 16 : index
    %c0_36 = arith.constant 0 : index
    %53 = vector.load %arg5[%c16, %c0_36] : memref<176x128xf32, #tpu.memory_space<vmem>>, vector<1x64xf32>
    %54 = vector.broadcast %53 : vector<1x64xf32> to vector<256x64xf32>
    %55 = arith.addf %52, %54 : vector<256x64xf32>
    %cst = arith.constant 0.000000e+00 : f32
    %56 = vector.broadcast %cst : f32 to vector<256x64xf32>
    %57 = arith.maximumf %55, %56 : vector<256x64xf32>
    %c0_37 = arith.constant 0 : index
    %c0_38 = arith.constant 0 : index
    %58 = vector.load %arg2[%c0_37, %c0_38] : memref<256x128xbf16, #tpu.memory_space<vmem>>, vector<256x128xbf16>
    %59 = arith.truncf %57 : vector<256x64xf32> to vector<256x64xbf16>
    %c0_39 = arith.constant 0 : index
    %c0_40 = arith.constant 0 : index
    %60 = vector.load %arg4[%c0_39, %c0_40] : memref<2368x128xbf16, #tpu.memory_space<vmem>>, vector<64x96xbf16>
    %cst_41 = arith.constant dense<0.000000e+00> : vector<256x96xf32>
    %61 = tpu.matmul %59, %60, %cst_41 {dimension_numbers = #tpu.dot_dimension_numbers<[1], [0], [0], [1], [0, 0, 1, 1], [], []>} : vector<256x64xbf16>, vector<64x96xbf16>, vector<256x96xf32> -> vector<256x96xf32>
    %c64 = arith.constant 64 : index
    %c0_42 = arith.constant 0 : index
    %62 = vector.load %arg4[%c64, %c0_42] : memref<2368x128xbf16, #tpu.memory_space<vmem>>, vector<128x96xbf16>
    %cst_43 = arith.constant dense<0.000000e+00> : vector<256x96xf32>
    %63 = tpu.matmul %58, %62, %cst_43 {dimension_numbers = #tpu.dot_dimension_numbers<[1], [0], [0], [1], [0, 0, 1, 1], [], []>} : vector<256x128xbf16>, vector<128x96xbf16>, vector<256x96xf32> -> vector<256x96xf32>
    %64 = arith.addf %61, %63 : vector<256x96xf32>
    %c24 = arith.constant 24 : index
    %c0_44 = arith.constant 0 : index
    %65 = vector.load %arg5[%c24, %c0_44] : memref<176x128xf32, #tpu.memory_space<vmem>>, vector<1x96xf32>
    %66 = vector.broadcast %65 : vector<1x96xf32> to vector<256x96xf32>
    %67 = arith.addf %64, %66 : vector<256x96xf32>
    %cst_45 = arith.constant 0.000000e+00 : f32
    %68 = vector.broadcast %cst_45 : f32 to vector<256x96xf32>
    %69 = arith.maximumf %67, %68 : vector<256x96xf32>
    %70 = arith.truncf %69 : vector<256x96xf32> to vector<256x96xbf16>
    %c192 = arith.constant 192 : index
    %c0_46 = arith.constant 0 : index
    %71 = vector.load %arg4[%c192, %c0_46] : memref<2368x128xbf16, #tpu.memory_space<vmem>>, vector<96x64xbf16>
    %cst_47 = arith.constant dense<0.000000e+00> : vector<256x64xf32>
    %72 = tpu.matmul %70, %71, %cst_47 {dimension_numbers = #tpu.dot_dimension_numbers<[1], [0], [0], [1], [0, 0, 1, 1], [], []>} : vector<256x96xbf16>, vector<96x64xbf16>, vector<256x64xf32> -> vector<256x64xf32>
    %c288 = arith.constant 288 : index
    %c0_48 = arith.constant 0 : index
    %73 = vector.load %arg4[%c288, %c0_48] : memref<2368x128xbf16, #tpu.memory_space<vmem>>, vector<128x64xbf16>
    %cst_49 = arith.constant dense<0.000000e+00> : vector<256x64xf32>
    %74 = tpu.matmul %58, %73, %cst_49 {dimension_numbers = #tpu.dot_dimension_numbers<[1], [0], [0], [1], [0, 0, 1, 1], [], []>} : vector<256x128xbf16>, vector<128x64xbf16>, vector<256x64xf32> -> vector<256x64xf32>
    %75 = arith.addf %72, %74 : vector<256x64xf32>
    %c32 = arith.constant 32 : index
    %c0_50 = arith.constant 0 : index
    %76 = vector.load %arg5[%c32, %c0_50] : memref<176x128xf32, #tpu.memory_space<vmem>>, vector<1x64xf32>
    %77 = vector.broadcast %76 : vector<1x64xf32> to vector<256x64xf32>
    %78 = arith.addf %75, %77 : vector<256x64xf32>
    %cst_51 = arith.constant 0.000000e+00 : f32
    %79 = vector.broadcast %cst_51 : f32 to vector<256x64xf32>
    %80 = arith.maximumf %78, %79 : vector<256x64xf32>
    %c0_52 = arith.constant 0 : index
    %c0_53 = arith.constant 0 : index
    %81 = vector.load %arg3[%c0_52, %c0_53] : memref<32x256xbf16, #tpu.memory_space<vmem>>, vector<32x256xbf16>
    %82 = arith.truncf %80 : vector<256x64xf32> to vector<256x64xbf16>
    %cst_54 = arith.constant dense<0.000000e+00> : vector<32x64xf32>
    %83 = tpu.matmul %81, %82, %cst_54 {dimension_numbers = #tpu.dot_dimension_numbers<[1], [0], [0], [1], [0, 0, 1, 1], [], []>} : vector<32x256xbf16>, vector<256x64xbf16>, vector<32x64xf32> -> vector<32x64xf32>
    %c144 = arith.constant 144 : index
    %c0_55 = arith.constant 0 : index
    %84 = vector.load %arg5[%c144, %c0_55] : memref<176x128xf32, #tpu.memory_space<vmem>>, vector<32x64xf32>
    %85 = arith.addf %83, %84 : vector<32x64xf32>
    %c40 = arith.constant 40 : index
    %c0_56 = arith.constant 0 : index
    %86 = vector.load %arg5[%c40, %c0_56] : memref<176x128xf32, #tpu.memory_space<vmem>>, vector<1x64xf32>
    %c48 = arith.constant 48 : index
    %c0_57 = arith.constant 0 : index
    %87 = vector.load %arg5[%c48, %c0_57] : memref<176x128xf32, #tpu.memory_space<vmem>>, vector<1x64xf32>
    %cst_58 = arith.constant dense<0.000000e+00> : vector<32xf32>
    %88 = vector.multi_reduction <add>, %85, %cst_58 [1] : vector<32x64xf32> to vector<32xf32>
    %89 = vector.shape_cast %88 : vector<32xf32> to vector<32x1xf32>
    %cst_59 = arith.constant 6.400000e+01 : f32
    %90 = vector.broadcast %cst_59 : f32 to vector<32x1xf32>
    %91 = arith.divf %89, %90 : vector<32x1xf32>
    %92 = vector.broadcast %91 : vector<32x1xf32> to vector<32x64xf32>
    %93 = arith.subf %85, %92 : vector<32x64xf32>
    %94 = arith.mulf %93, %93 : vector<32x64xf32>
    %cst_60 = arith.constant dense<0.000000e+00> : vector<32xf32>
    %95 = vector.multi_reduction <add>, %94, %cst_60 [1] : vector<32x64xf32> to vector<32xf32>
    %96 = vector.shape_cast %95 : vector<32xf32> to vector<32x1xf32>
    %cst_61 = arith.constant 6.400000e+01 : f32
    %97 = vector.broadcast %cst_61 : f32 to vector<32x1xf32>
    %98 = arith.divf %96, %97 : vector<32x1xf32>
    %99 = vector.broadcast %91 : vector<32x1xf32> to vector<32x64xf32>
    %100 = arith.subf %85, %99 : vector<32x64xf32>
    %cst_62 = arith.constant 9.99999974E-6 : f32
    %101 = vector.broadcast %cst_62 : f32 to vector<32x1xf32>
    %102 = arith.addf %98, %101 : vector<32x1xf32>
    %103 = math.rsqrt %102 : vector<32x1xf32>
    %104 = vector.broadcast %103 : vector<32x1xf32> to vector<32x64xf32>
    %105 = arith.mulf %100, %104 : vector<32x64xf32>
    %106 = vector.broadcast %86 : vector<1x64xf32> to vector<32x64xf32>
    %107 = arith.mulf %105, %106 : vector<32x64xf32>
    %108 = vector.broadcast %87 : vector<1x64xf32> to vector<32x64xf32>
    %109 = arith.addf %107, %108 : vector<32x64xf32>
    %110 = arith.truncf %109 : vector<32x64xf32> to vector<32x64xbf16>
    %c416 = arith.constant 416 : index
    %c0_63 = arith.constant 0 : index
    %111 = vector.load %arg4[%c416, %c0_63] : memref<2368x128xbf16, #tpu.memory_space<vmem>>, vector<64x128xbf16>
    %cst_64 = arith.constant dense<0.000000e+00> : vector<32x128xf32>
    %112 = tpu.matmul %110, %111, %cst_64 {dimension_numbers = #tpu.dot_dimension_numbers<[1], [0], [0], [1], [0, 0, 1, 1], [], []>} : vector<32x64xbf16>, vector<64x128xbf16>, vector<32x128xf32> -> vector<32x128xf32>
    %c480 = arith.constant 480 : index
    %c0_65 = arith.constant 0 : index
    %113 = vector.load %arg4[%c480, %c0_65] : memref<2368x128xbf16, #tpu.memory_space<vmem>>, vector<64x128xbf16>
    %cst_66 = arith.constant dense<0.000000e+00> : vector<32x128xf32>
    %114 = tpu.matmul %110, %113, %cst_66 {dimension_numbers = #tpu.dot_dimension_numbers<[1], [0], [0], [1], [0, 0, 1, 1], [], []>} : vector<32x64xbf16>, vector<64x128xbf16>, vector<32x128xf32> -> vector<32x128xf32>
    %c544 = arith.constant 544 : index
    %c0_67 = arith.constant 0 : index
    %115 = vector.load %arg4[%c544, %c0_67] : memref<2368x128xbf16, #tpu.memory_space<vmem>>, vector<64x128xbf16>
    %cst_68 = arith.constant dense<0.000000e+00> : vector<32x128xf32>
    %116 = tpu.matmul %110, %115, %cst_68 {dimension_numbers = #tpu.dot_dimension_numbers<[1], [0], [0], [1], [0, 0, 1, 1], [], []>} : vector<32x64xbf16>, vector<64x128xbf16>, vector<32x128xf32> -> vector<32x128xf32>
    %c112 = arith.constant 112 : index
    %c0_69 = arith.constant 0 : index
    %117 = vector.load %arg5[%c112, %c0_69] : memref<176x128xf32, #tpu.memory_space<vmem>>, vector<32x32xf32>
    %118 = vector.extract_strided_slice %112 {offsets = [0, 0], sizes = [32, 32], strides = [1, 1]} : vector<32x128xf32> to vector<32x32xf32>
    %119 = arith.truncf %118 : vector<32x32xf32> to vector<32x32xbf16>
    %120 = vector.extract_strided_slice %114 {offsets = [0, 0], sizes = [32, 32], strides = [1, 1]} : vector<32x128xf32> to vector<32x32xf32>
    %121 = arith.truncf %120 : vector<32x32xf32> to vector<32x32xbf16>
    %122 = vector.extract_strided_slice %116 {offsets = [0, 0], sizes = [32, 32], strides = [1, 1]} : vector<32x128xf32> to vector<32x32xf32>
    %123 = arith.truncf %122 : vector<32x32xf32> to vector<32x32xbf16>
    %cst_70 = arith.constant dense<0.000000e+00> : vector<32x32xf32>
    %124 = tpu.matmul %119, %121, %cst_70 {dimension_numbers = #tpu.dot_dimension_numbers<[1], [1], [0], [0], [0, 0, 1, 0], [], []>} : vector<32x32xbf16>, vector<32x32xbf16>, vector<32x32xf32> -> vector<32x32xf32>
    %cst_71 = arith.constant 0.176776692 : f32
    %125 = vector.broadcast %cst_71 : f32 to vector<32x32xf32>
    %126 = arith.mulf %124, %125 : vector<32x32xf32>
    %127 = arith.addf %126, %117 : vector<32x32xf32>
    %cst_72 = arith.constant dense<0xFF800000> : vector<32xf32>
    %128 = vector.multi_reduction <maximumf>, %127, %cst_72 [1] : vector<32x32xf32> to vector<32xf32>
    %129 = vector.shape_cast %128 : vector<32xf32> to vector<32x1xf32>
    %130 = vector.broadcast %129 : vector<32x1xf32> to vector<32x32xf32>
    %131 = arith.subf %127, %130 : vector<32x32xf32>
    %132 = math.exp %131 : vector<32x32xf32>
    %cst_73 = arith.constant dense<0.000000e+00> : vector<32xf32>
    %133 = vector.multi_reduction <add>, %132, %cst_73 [1] : vector<32x32xf32> to vector<32xf32>
    %134 = vector.shape_cast %133 : vector<32xf32> to vector<32x1xf32>
    %135 = tpu.reciprocal %134 {approx = true} : vector<32x1xf32> -> vector<32x1xf32>
    %136 = vector.broadcast %135 : vector<32x1xf32> to vector<32x32xf32>
    %137 = arith.mulf %132, %136 : vector<32x32xf32>
    %138 = arith.truncf %137 : vector<32x32xf32> to vector<32x32xbf16>
    %cst_74 = arith.constant dense<0.000000e+00> : vector<32x32xf32>
    %139 = tpu.matmul %138, %123, %cst_74 {dimension_numbers = #tpu.dot_dimension_numbers<[1], [0], [0], [1], [0, 0, 1, 1], [], []>} : vector<32x32xbf16>, vector<32x32xbf16>, vector<32x32xf32> -> vector<32x32xf32>
    %140 = arith.truncf %139 : vector<32x32xf32> to vector<32x32xbf16>
    %c608 = arith.constant 608 : index
    %c0_75 = arith.constant 0 : index
    %141 = vector.load %arg4[%c608, %c0_75] : memref<2368x128xbf16, #tpu.memory_space<vmem>>, vector<32x64xbf16>
    %cst_76 = arith.constant dense<0.000000e+00> : vector<32x64xf32>
    %142 = tpu.matmul %140, %141, %cst_76 {dimension_numbers = #tpu.dot_dimension_numbers<[1], [0], [0], [1], [0, 0, 1, 1], [], []>} : vector<32x32xbf16>, vector<32x64xbf16>, vector<32x64xf32> -> vector<32x64xf32>
    %143 = vector.extract_strided_slice %112 {offsets = [0, 32], sizes = [32, 32], strides = [1, 1]} : vector<32x128xf32> to vector<32x32xf32>
    %144 = arith.truncf %143 : vector<32x32xf32> to vector<32x32xbf16>
    %145 = vector.extract_strided_slice %114 {offsets = [0, 32], sizes = [32, 32], strides = [1, 1]} : vector<32x128xf32> to vector<32x32xf32>
    %146 = arith.truncf %145 : vector<32x32xf32> to vector<32x32xbf16>
    %147 = vector.extract_strided_slice %116 {offsets = [0, 32], sizes = [32, 32], strides = [1, 1]} : vector<32x128xf32> to vector<32x32xf32>
    %148 = arith.truncf %147 : vector<32x32xf32> to vector<32x32xbf16>
    %cst_77 = arith.constant dense<0.000000e+00> : vector<32x32xf32>
    %149 = tpu.matmul %144, %146, %cst_77 {dimension_numbers = #tpu.dot_dimension_numbers<[1], [1], [0], [0], [0, 0, 1, 0], [], []>} : vector<32x32xbf16>, vector<32x32xbf16>, vector<32x32xf32> -> vector<32x32xf32>
    %cst_78 = arith.constant 0.176776692 : f32
    %150 = vector.broadcast %cst_78 : f32 to vector<32x32xf32>
    %151 = arith.mulf %149, %150 : vector<32x32xf32>
    %152 = arith.addf %151, %117 : vector<32x32xf32>
    %cst_79 = arith.constant dense<0xFF800000> : vector<32xf32>
    %153 = vector.multi_reduction <maximumf>, %152, %cst_79 [1] : vector<32x32xf32> to vector<32xf32>
    %154 = vector.shape_cast %153 : vector<32xf32> to vector<32x1xf32>
    %155 = vector.broadcast %154 : vector<32x1xf32> to vector<32x32xf32>
    %156 = arith.subf %152, %155 : vector<32x32xf32>
    %157 = math.exp %156 : vector<32x32xf32>
    %cst_80 = arith.constant dense<0.000000e+00> : vector<32xf32>
    %158 = vector.multi_reduction <add>, %157, %cst_80 [1] : vector<32x32xf32> to vector<32xf32>
    %159 = vector.shape_cast %158 : vector<32xf32> to vector<32x1xf32>
    %160 = tpu.reciprocal %159 {approx = true} : vector<32x1xf32> -> vector<32x1xf32>
    %161 = vector.broadcast %160 : vector<32x1xf32> to vector<32x32xf32>
    %162 = arith.mulf %157, %161 : vector<32x32xf32>
    %163 = arith.truncf %162 : vector<32x32xf32> to vector<32x32xbf16>
    %cst_81 = arith.constant dense<0.000000e+00> : vector<32x32xf32>
    %164 = tpu.matmul %163, %148, %cst_81 {dimension_numbers = #tpu.dot_dimension_numbers<[1], [0], [0], [1], [0, 0, 1, 1], [], []>} : vector<32x32xbf16>, vector<32x32xbf16>, vector<32x32xf32> -> vector<32x32xf32>
    %165 = arith.truncf %164 : vector<32x32xf32> to vector<32x32xbf16>
    %c640 = arith.constant 640 : index
    %c0_82 = arith.constant 0 : index
    %166 = vector.load %arg4[%c640, %c0_82] : memref<2368x128xbf16, #tpu.memory_space<vmem>>, vector<32x64xbf16>
    %cst_83 = arith.constant dense<0.000000e+00> : vector<32x64xf32>
    %167 = tpu.matmul %165, %166, %cst_83 {dimension_numbers = #tpu.dot_dimension_numbers<[1], [0], [0], [1], [0, 0, 1, 1], [], []>} : vector<32x32xbf16>, vector<32x64xbf16>, vector<32x64xf32> -> vector<32x64xf32>
    %168 = arith.addf %142, %167 : vector<32x64xf32>
    %169 = vector.extract_strided_slice %112 {offsets = [0, 64], sizes = [32, 32], strides = [1, 1]} : vector<32x128xf32> to vector<32x32xf32>
    %170 = arith.truncf %169 : vector<32x32xf32> to vector<32x32xbf16>
    %171 = vector.extract_strided_slice %114 {offsets = [0, 64], sizes = [32, 32], strides = [1, 1]} : vector<32x128xf32> to vector<32x32xf32>
    %172 = arith.truncf %171 : vector<32x32xf32> to vector<32x32xbf16>
    %173 = vector.extract_strided_slice %116 {offsets = [0, 64], sizes = [32, 32], strides = [1, 1]} : vector<32x128xf32> to vector<32x32xf32>
    %174 = arith.truncf %173 : vector<32x32xf32> to vector<32x32xbf16>
    %cst_84 = arith.constant dense<0.000000e+00> : vector<32x32xf32>
    %175 = tpu.matmul %170, %172, %cst_84 {dimension_numbers = #tpu.dot_dimension_numbers<[1], [1], [0], [0], [0, 0, 1, 0], [], []>} : vector<32x32xbf16>, vector<32x32xbf16>, vector<32x32xf32> -> vector<32x32xf32>
    %cst_85 = arith.constant 0.176776692 : f32
    %176 = vector.broadcast %cst_85 : f32 to vector<32x32xf32>
    %177 = arith.mulf %175, %176 : vector<32x32xf32>
    %178 = arith.addf %177, %117 : vector<32x32xf32>
    %cst_86 = arith.constant dense<0xFF800000> : vector<32xf32>
    %179 = vector.multi_reduction <maximumf>, %178, %cst_86 [1] : vector<32x32xf32> to vector<32xf32>
    %180 = vector.shape_cast %179 : vector<32xf32> to vector<32x1xf32>
    %181 = vector.broadcast %180 : vector<32x1xf32> to vector<32x32xf32>
    %182 = arith.subf %178, %181 : vector<32x32xf32>
    %183 = math.exp %182 : vector<32x32xf32>
    %cst_87 = arith.constant dense<0.000000e+00> : vector<32xf32>
    %184 = vector.multi_reduction <add>, %183, %cst_87 [1] : vector<32x32xf32> to vector<32xf32>
    %185 = vector.shape_cast %184 : vector<32xf32> to vector<32x1xf32>
    %186 = tpu.reciprocal %185 {approx = true} : vector<32x1xf32> -> vector<32x1xf32>
    %187 = vector.broadcast %186 : vector<32x1xf32> to vector<32x32xf32>
    %188 = arith.mulf %183, %187 : vector<32x32xf32>
    %189 = arith.truncf %188 : vector<32x32xf32> to vector<32x32xbf16>
    %cst_88 = arith.constant dense<0.000000e+00> : vector<32x32xf32>
    %190 = tpu.matmul %189, %174, %cst_88 {dimension_numbers = #tpu.dot_dimension_numbers<[1], [0], [0], [1], [0, 0, 1, 1], [], []>} : vector<32x32xbf16>, vector<32x32xbf16>, vector<32x32xf32> -> vector<32x32xf32>
    %191 = arith.truncf %190 : vector<32x32xf32> to vector<32x32xbf16>
    %c672 = arith.constant 672 : index
    %c0_89 = arith.constant 0 : index
    %192 = vector.load %arg4[%c672, %c0_89] : memref<2368x128xbf16, #tpu.memory_space<vmem>>, vector<32x64xbf16>
    %cst_90 = arith.constant dense<0.000000e+00> : vector<32x64xf32>
    %193 = tpu.matmul %191, %192, %cst_90 {dimension_numbers = #tpu.dot_dimension_numbers<[1], [0], [0], [1], [0, 0, 1, 1], [], []>} : vector<32x32xbf16>, vector<32x64xbf16>, vector<32x64xf32> -> vector<32x64xf32>
    %194 = arith.addf %168, %193 : vector<32x64xf32>
    %195 = vector.extract_strided_slice %112 {offsets = [0, 96], sizes = [32, 32], strides = [1, 1]} : vector<32x128xf32> to vector<32x32xf32>
    %196 = arith.truncf %195 : vector<32x32xf32> to vector<32x32xbf16>
    %197 = vector.extract_strided_slice %114 {offsets = [0, 96], sizes = [32, 32], strides = [1, 1]} : vector<32x128xf32> to vector<32x32xf32>
    %198 = arith.truncf %197 : vector<32x32xf32> to vector<32x32xbf16>
    %199 = vector.extract_strided_slice %116 {offsets = [0, 96], sizes = [32, 32], strides = [1, 1]} : vector<32x128xf32> to vector<32x32xf32>
    %200 = arith.truncf %199 : vector<32x32xf32> to vector<32x32xbf16>
    %cst_91 = arith.constant dense<0.000000e+00> : vector<32x32xf32>
    %201 = tpu.matmul %196, %198, %cst_91 {dimension_numbers = #tpu.dot_dimension_numbers<[1], [1], [0], [0], [0, 0, 1, 0], [], []>} : vector<32x32xbf16>, vector<32x32xbf16>, vector<32x32xf32> -> vector<32x32xf32>
    %cst_92 = arith.constant 0.176776692 : f32
    %202 = vector.broadcast %cst_92 : f32 to vector<32x32xf32>
    %203 = arith.mulf %201, %202 : vector<32x32xf32>
    %204 = arith.addf %203, %117 : vector<32x32xf32>
    %cst_93 = arith.constant dense<0xFF800000> : vector<32xf32>
    %205 = vector.multi_reduction <maximumf>, %204, %cst_93 [1] : vector<32x32xf32> to vector<32xf32>
    %206 = vector.shape_cast %205 : vector<32xf32> to vector<32x1xf32>
    %207 = vector.broadcast %206 : vector<32x1xf32> to vector<32x32xf32>
    %208 = arith.subf %204, %207 : vector<32x32xf32>
    %209 = math.exp %208 : vector<32x32xf32>
    %cst_94 = arith.constant dense<0.000000e+00> : vector<32xf32>
    %210 = vector.multi_reduction <add>, %209, %cst_94 [1] : vector<32x32xf32> to vector<32xf32>
    %211 = vector.shape_cast %210 : vector<32xf32> to vector<32x1xf32>
    %212 = tpu.reciprocal %211 {approx = true} : vector<32x1xf32> -> vector<32x1xf32>
    %213 = vector.broadcast %212 : vector<32x1xf32> to vector<32x32xf32>
    %214 = arith.mulf %209, %213 : vector<32x32xf32>
    %215 = arith.truncf %214 : vector<32x32xf32> to vector<32x32xbf16>
    %cst_95 = arith.constant dense<0.000000e+00> : vector<32x32xf32>
    %216 = tpu.matmul %215, %200, %cst_95 {dimension_numbers = #tpu.dot_dimension_numbers<[1], [0], [0], [1], [0, 0, 1, 1], [], []>} : vector<32x32xbf16>, vector<32x32xbf16>, vector<32x32xf32> -> vector<32x32xf32>
    %217 = arith.truncf %216 : vector<32x32xf32> to vector<32x32xbf16>
    %c704 = arith.constant 704 : index
    %c0_96 = arith.constant 0 : index
    %218 = vector.load %arg4[%c704, %c0_96] : memref<2368x128xbf16, #tpu.memory_space<vmem>>, vector<32x64xbf16>
    %cst_97 = arith.constant dense<0.000000e+00> : vector<32x64xf32>
    %219 = tpu.matmul %217, %218, %cst_97 {dimension_numbers = #tpu.dot_dimension_numbers<[1], [0], [0], [1], [0, 0, 1, 1], [], []>} : vector<32x32xbf16>, vector<32x64xbf16>, vector<32x64xf32> -> vector<32x64xf32>
    %220 = arith.addf %194, %219 : vector<32x64xf32>
    %c72 = arith.constant 72 : index
    %c0_98 = arith.constant 0 : index
    %221 = vector.load %arg5[%c72, %c0_98] : memref<176x128xf32, #tpu.memory_space<vmem>>, vector<1x64xf32>
    %222 = vector.broadcast %221 : vector<1x64xf32> to vector<32x64xf32>
    %223 = arith.addf %220, %222 : vector<32x64xf32>
    %224 = arith.addf %223, %85 : vector<32x64xf32>
    %c56 = arith.constant 56 : index
    %c0_99 = arith.constant 0 : index
    %225 = vector.load %arg5[%c56, %c0_99] : memref<176x128xf32, #tpu.memory_space<vmem>>, vector<1x64xf32>
    %c64_100 = arith.constant 64 : index
    %c0_101 = arith.constant 0 : index
    %226 = vector.load %arg5[%c64_100, %c0_101] : memref<176x128xf32, #tpu.memory_space<vmem>>, vector<1x64xf32>
    %cst_102 = arith.constant dense<0.000000e+00> : vector<32xf32>
    %227 = vector.multi_reduction <add>, %224, %cst_102 [1] : vector<32x64xf32> to vector<32xf32>
    %228 = vector.shape_cast %227 : vector<32xf32> to vector<32x1xf32>
    %cst_103 = arith.constant 6.400000e+01 : f32
    %229 = vector.broadcast %cst_103 : f32 to vector<32x1xf32>
    %230 = arith.divf %228, %229 : vector<32x1xf32>
    %231 = vector.broadcast %230 : vector<32x1xf32> to vector<32x64xf32>
    %232 = arith.subf %224, %231 : vector<32x64xf32>
    %233 = arith.mulf %232, %232 : vector<32x64xf32>
    %cst_104 = arith.constant dense<0.000000e+00> : vector<32xf32>
    %234 = vector.multi_reduction <add>, %233, %cst_104 [1] : vector<32x64xf32> to vector<32xf32>
    %235 = vector.shape_cast %234 : vector<32xf32> to vector<32x1xf32>
    %cst_105 = arith.constant 6.400000e+01 : f32
    %236 = vector.broadcast %cst_105 : f32 to vector<32x1xf32>
    %237 = arith.divf %235, %236 : vector<32x1xf32>
    %238 = vector.broadcast %230 : vector<32x1xf32> to vector<32x64xf32>
    %239 = arith.subf %224, %238 : vector<32x64xf32>
    %cst_106 = arith.constant 9.99999974E-6 : f32
    %240 = vector.broadcast %cst_106 : f32 to vector<32x1xf32>
    %241 = arith.addf %237, %240 : vector<32x1xf32>
    %242 = math.rsqrt %241 : vector<32x1xf32>
    %243 = vector.broadcast %242 : vector<32x1xf32> to vector<32x64xf32>
    %244 = arith.mulf %239, %243 : vector<32x64xf32>
    %245 = vector.broadcast %225 : vector<1x64xf32> to vector<32x64xf32>
    %246 = arith.mulf %244, %245 : vector<32x64xf32>
    %247 = vector.broadcast %226 : vector<1x64xf32> to vector<32x64xf32>
    %248 = arith.addf %246, %247 : vector<32x64xf32>
    %249 = arith.truncf %248 : vector<32x64xf32> to vector<32x64xbf16>
    %c736 = arith.constant 736 : index
    %c0_107 = arith.constant 0 : index
    %250 = vector.load %arg4[%c736, %c0_107] : memref<2368x128xbf16, #tpu.memory_space<vmem>>, vector<64x128xbf16>
    %cst_108 = arith.constant dense<0.000000e+00> : vector<32x128xf32>
    %251 = tpu.matmul %249, %250, %cst_108 {dimension_numbers = #tpu.dot_dimension_numbers<[1], [0], [0], [1], [0, 0, 1, 1], [], []>} : vector<32x64xbf16>, vector<64x128xbf16>, vector<32x128xf32> -> vector<32x128xf32>
    %c80 = arith.constant 80 : index
    %c0_109 = arith.constant 0 : index
    %252 = vector.load %arg5[%c80, %c0_109] : memref<176x128xf32, #tpu.memory_space<vmem>>, vector<1x128xf32>
    %253 = vector.broadcast %252 : vector<1x128xf32> to vector<32x128xf32>
    %254 = arith.addf %251, %253 : vector<32x128xf32>
    %cst_110 = arith.constant 5.000000e-01 : f32
    %255 = vector.broadcast %cst_110 : f32 to vector<32x128xf32>
    %256 = arith.mulf %255, %254 : vector<32x128xf32>
    %cst_111 = arith.constant 4.471500e-02 : f32
    %257 = vector.broadcast %cst_111 : f32 to vector<32x128xf32>
    %258 = arith.mulf %257, %254 : vector<32x128xf32>
    %259 = arith.mulf %258, %254 : vector<32x128xf32>
    %260 = arith.mulf %259, %254 : vector<32x128xf32>
    %261 = arith.addf %254, %260 : vector<32x128xf32>
    %cst_112 = arith.constant 0.797884583 : f32
    %262 = vector.broadcast %cst_112 : f32 to vector<32x128xf32>
    %263 = arith.mulf %262, %261 : vector<32x128xf32>
    %264 = math.tanh %263 : vector<32x128xf32>
    %cst_113 = arith.constant 1.000000e+00 : f32
    %265 = vector.broadcast %cst_113 : f32 to vector<32x128xf32>
    %266 = arith.addf %265, %264 : vector<32x128xf32>
    %267 = arith.mulf %256, %266 : vector<32x128xf32>
    %268 = arith.truncf %267 : vector<32x128xf32> to vector<32x128xbf16>
    %c800 = arith.constant 800 : index
    %c0_114 = arith.constant 0 : index
    %269 = vector.load %arg4[%c800, %c0_114] : memref<2368x128xbf16, #tpu.memory_space<vmem>>, vector<128x64xbf16>
    %cst_115 = arith.constant dense<0.000000e+00> : vector<32x64xf32>
    %270 = tpu.matmul %268, %269, %cst_115 {dimension_numbers = #tpu.dot_dimension_numbers<[1], [0], [0], [1], [0, 0, 1, 1], [], []>} : vector<32x128xbf16>, vector<128x64xbf16>, vector<32x64xf32> -> vector<32x64xf32>
    %c88 = arith.constant 88 : index
    %c0_116 = arith.constant 0 : index
    %271 = vector.load %arg5[%c88, %c0_116] : memref<176x128xf32, #tpu.memory_space<vmem>>, vector<1x64xf32>
    %272 = vector.broadcast %271 : vector<1x64xf32> to vector<32x64xf32>
    %273 = arith.addf %270, %272 : vector<32x64xf32>
    %274 = arith.addf %273, %224 : vector<32x64xf32>
    %c2080 = arith.constant 2080 : index
    %c0_117 = arith.constant 0 : index
    %275 = vector.load %arg4[%c2080, %c0_117] : memref<2368x128xbf16, #tpu.memory_space<vmem>>, vector<288x32xbf16>
    %276 = arith.truncf %274 : vector<32x64xf32> to vector<32x64xbf16>
    %cst_118 = arith.constant dense<0.000000e+00> : vector<288x64xf32>
    %277 = tpu.matmul %275, %276, %cst_118 {dimension_numbers = #tpu.dot_dimension_numbers<[1], [0], [0], [1], [0, 0, 1, 1], [], []>} : vector<288x32xbf16>, vector<32x64xbf16>, vector<288x64xf32> -> vector<288x64xf32>
    %278 = arith.truncf %277 : vector<288x64xf32> to vector<288x64xbf16>
    %279 = vector.extract_strided_slice %278 {offsets = [0, 0], sizes = [32, 64], strides = [1, 1]} : vector<288x64xbf16> to vector<32x64xbf16>
    %c928 = arith.constant 928 : index
    %c0_119 = arith.constant 0 : index
    %280 = vector.load %arg4[%c928, %c0_119] : memref<2368x128xbf16, #tpu.memory_space<vmem>>, vector<64x64xbf16>
    %cst_120 = arith.constant dense<0.000000e+00> : vector<32x64xf32>
    %281 = tpu.matmul %279, %280, %cst_120 {dimension_numbers = #tpu.dot_dimension_numbers<[1], [0], [0], [1], [0, 0, 1, 1], [], []>} : vector<32x64xbf16>, vector<64x64xbf16>, vector<32x64xf32> -> vector<32x64xf32>
    %282 = vector.extract_strided_slice %278 {offsets = [32, 0], sizes = [32, 64], strides = [1, 1]} : vector<288x64xbf16> to vector<32x64xbf16>
    %c992 = arith.constant 992 : index
    %c0_121 = arith.constant 0 : index
    %283 = vector.load %arg4[%c992, %c0_121] : memref<2368x128xbf16, #tpu.memory_space<vmem>>, vector<64x64xbf16>
    %cst_122 = arith.constant dense<0.000000e+00> : vector<32x64xf32>
    %284 = tpu.matmul %282, %283, %cst_122 {dimension_numbers = #tpu.dot_dimension_numbers<[1], [0], [0], [1], [0, 0, 1, 1], [], []>} : vector<32x64xbf16>, vector<64x64xbf16>, vector<32x64xf32> -> vector<32x64xf32>
    %285 = arith.addf %281, %284 : vector<32x64xf32>
    %286 = vector.extract_strided_slice %278 {offsets = [64, 0], sizes = [32, 64], strides = [1, 1]} : vector<288x64xbf16> to vector<32x64xbf16>
    %c1056 = arith.constant 1056 : index
    %c0_123 = arith.constant 0 : index
    %287 = vector.load %arg4[%c1056, %c0_123] : memref<2368x128xbf16, #tpu.memory_space<vmem>>, vector<64x64xbf16>
    %cst_124 = arith.constant dense<0.000000e+00> : vector<32x64xf32>
    %288 = tpu.matmul %286, %287, %cst_124 {dimension_numbers = #tpu.dot_dimension_numbers<[1], [0], [0], [1], [0, 0, 1, 1], [], []>} : vector<32x64xbf16>, vector<64x64xbf16>, vector<32x64xf32> -> vector<32x64xf32>
    %289 = arith.addf %285, %288 : vector<32x64xf32>
    %290 = vector.extract_strided_slice %278 {offsets = [96, 0], sizes = [32, 64], strides = [1, 1]} : vector<288x64xbf16> to vector<32x64xbf16>
    %c1120 = arith.constant 1120 : index
    %c0_125 = arith.constant 0 : index
    %291 = vector.load %arg4[%c1120, %c0_125] : memref<2368x128xbf16, #tpu.memory_space<vmem>>, vector<64x64xbf16>
    %cst_126 = arith.constant dense<0.000000e+00> : vector<32x64xf32>
    %292 = tpu.matmul %290, %291, %cst_126 {dimension_numbers = #tpu.dot_dimension_numbers<[1], [0], [0], [1], [0, 0, 1, 1], [], []>} : vector<32x64xbf16>, vector<64x64xbf16>, vector<32x64xf32> -> vector<32x64xf32>
    %293 = arith.addf %289, %292 : vector<32x64xf32>
    %294 = vector.extract_strided_slice %278 {offsets = [128, 0], sizes = [32, 64], strides = [1, 1]} : vector<288x64xbf16> to vector<32x64xbf16>
    %c1184 = arith.constant 1184 : index
    %c0_127 = arith.constant 0 : index
    %295 = vector.load %arg4[%c1184, %c0_127] : memref<2368x128xbf16, #tpu.memory_space<vmem>>, vector<64x64xbf16>
    %cst_128 = arith.constant dense<0.000000e+00> : vector<32x64xf32>
    %296 = tpu.matmul %294, %295, %cst_128 {dimension_numbers = #tpu.dot_dimension_numbers<[1], [0], [0], [1], [0, 0, 1, 1], [], []>} : vector<32x64xbf16>, vector<64x64xbf16>, vector<32x64xf32> -> vector<32x64xf32>
    %297 = arith.addf %293, %296 : vector<32x64xf32>
    %298 = vector.extract_strided_slice %278 {offsets = [160, 0], sizes = [32, 64], strides = [1, 1]} : vector<288x64xbf16> to vector<32x64xbf16>
    %c1248 = arith.constant 1248 : index
    %c0_129 = arith.constant 0 : index
    %299 = vector.load %arg4[%c1248, %c0_129] : memref<2368x128xbf16, #tpu.memory_space<vmem>>, vector<64x64xbf16>
    %cst_130 = arith.constant dense<0.000000e+00> : vector<32x64xf32>
    %300 = tpu.matmul %298, %299, %cst_130 {dimension_numbers = #tpu.dot_dimension_numbers<[1], [0], [0], [1], [0, 0, 1, 1], [], []>} : vector<32x64xbf16>, vector<64x64xbf16>, vector<32x64xf32> -> vector<32x64xf32>
    %301 = arith.addf %297, %300 : vector<32x64xf32>
    %302 = vector.extract_strided_slice %278 {offsets = [192, 0], sizes = [32, 64], strides = [1, 1]} : vector<288x64xbf16> to vector<32x64xbf16>
    %c1312 = arith.constant 1312 : index
    %c0_131 = arith.constant 0 : index
    %303 = vector.load %arg4[%c1312, %c0_131] : memref<2368x128xbf16, #tpu.memory_space<vmem>>, vector<64x64xbf16>
    %cst_132 = arith.constant dense<0.000000e+00> : vector<32x64xf32>
    %304 = tpu.matmul %302, %303, %cst_132 {dimension_numbers = #tpu.dot_dimension_numbers<[1], [0], [0], [1], [0, 0, 1, 1], [], []>} : vector<32x64xbf16>, vector<64x64xbf16>, vector<32x64xf32> -> vector<32x64xf32>
    %305 = arith.addf %301, %304 : vector<32x64xf32>
    %306 = vector.extract_strided_slice %278 {offsets = [224, 0], sizes = [32, 64], strides = [1, 1]} : vector<288x64xbf16> to vector<32x64xbf16>
    %c1376 = arith.constant 1376 : index
    %c0_133 = arith.constant 0 : index
    %307 = vector.load %arg4[%c1376, %c0_133] : memref<2368x128xbf16, #tpu.memory_space<vmem>>, vector<64x64xbf16>
    %cst_134 = arith.constant dense<0.000000e+00> : vector<32x64xf32>
    %308 = tpu.matmul %306, %307, %cst_134 {dimension_numbers = #tpu.dot_dimension_numbers<[1], [0], [0], [1], [0, 0, 1, 1], [], []>} : vector<32x64xbf16>, vector<64x64xbf16>, vector<32x64xf32> -> vector<32x64xf32>
    %309 = arith.addf %305, %308 : vector<32x64xf32>
    %310 = vector.extract_strided_slice %278 {offsets = [256, 0], sizes = [32, 64], strides = [1, 1]} : vector<288x64xbf16> to vector<32x64xbf16>
    %c1440 = arith.constant 1440 : index
    %c0_135 = arith.constant 0 : index
    %311 = vector.load %arg4[%c1440, %c0_135] : memref<2368x128xbf16, #tpu.memory_space<vmem>>, vector<64x64xbf16>
    %cst_136 = arith.constant dense<0.000000e+00> : vector<32x64xf32>
    %312 = tpu.matmul %310, %311, %cst_136 {dimension_numbers = #tpu.dot_dimension_numbers<[1], [0], [0], [1], [0, 0, 1, 1], [], []>} : vector<32x64xbf16>, vector<64x64xbf16>, vector<32x64xf32> -> vector<32x64xf32>
    %313 = arith.addf %309, %312 : vector<32x64xf32>
    %c96 = arith.constant 96 : index
    %c0_137 = arith.constant 0 : index
    %314 = vector.load %arg5[%c96, %c0_137] : memref<176x128xf32, #tpu.memory_space<vmem>>, vector<1x64xf32>
    %315 = vector.broadcast %314 : vector<1x64xf32> to vector<32x64xf32>
    %316 = arith.addf %313, %315 : vector<32x64xf32>
    %317 = arith.truncf %316 : vector<32x64xf32> to vector<32x64xbf16>
    %cst_138 = arith.constant dense<0.000000e+00> : vector<288x64xf32>
    %318 = tpu.matmul %275, %317, %cst_138 {dimension_numbers = #tpu.dot_dimension_numbers<[1], [0], [0], [1], [0, 0, 1, 1], [], []>} : vector<288x32xbf16>, vector<32x64xbf16>, vector<288x64xf32> -> vector<288x64xf32>
    %319 = arith.truncf %318 : vector<288x64xf32> to vector<288x64xbf16>
    %320 = vector.extract_strided_slice %319 {offsets = [0, 0], sizes = [32, 64], strides = [1, 1]} : vector<288x64xbf16> to vector<32x64xbf16>
    %c1504 = arith.constant 1504 : index
    %c0_139 = arith.constant 0 : index
    %321 = vector.load %arg4[%c1504, %c0_139] : memref<2368x128xbf16, #tpu.memory_space<vmem>>, vector<64x128xbf16>
    %cst_140 = arith.constant dense<0.000000e+00> : vector<32x128xf32>
    %322 = tpu.matmul %320, %321, %cst_140 {dimension_numbers = #tpu.dot_dimension_numbers<[1], [0], [0], [1], [0, 0, 1, 1], [], []>} : vector<32x64xbf16>, vector<64x128xbf16>, vector<32x128xf32> -> vector<32x128xf32>
    %323 = vector.extract_strided_slice %319 {offsets = [32, 0], sizes = [32, 64], strides = [1, 1]} : vector<288x64xbf16> to vector<32x64xbf16>
    %c1568 = arith.constant 1568 : index
    %c0_141 = arith.constant 0 : index
    %324 = vector.load %arg4[%c1568, %c0_141] : memref<2368x128xbf16, #tpu.memory_space<vmem>>, vector<64x128xbf16>
    %cst_142 = arith.constant dense<0.000000e+00> : vector<32x128xf32>
    %325 = tpu.matmul %323, %324, %cst_142 {dimension_numbers = #tpu.dot_dimension_numbers<[1], [0], [0], [1], [0, 0, 1, 1], [], []>} : vector<32x64xbf16>, vector<64x128xbf16>, vector<32x128xf32> -> vector<32x128xf32>
    %326 = arith.addf %322, %325 : vector<32x128xf32>
    %327 = vector.extract_strided_slice %319 {offsets = [64, 0], sizes = [32, 64], strides = [1, 1]} : vector<288x64xbf16> to vector<32x64xbf16>
    %c1632 = arith.constant 1632 : index
    %c0_143 = arith.constant 0 : index
    %328 = vector.load %arg4[%c1632, %c0_143] : memref<2368x128xbf16, #tpu.memory_space<vmem>>, vector<64x128xbf16>
    %cst_144 = arith.constant dense<0.000000e+00> : vector<32x128xf32>
    %329 = tpu.matmul %327, %328, %cst_144 {dimension_numbers = #tpu.dot_dimension_numbers<[1], [0], [0], [1], [0, 0, 1, 1], [], []>} : vector<32x64xbf16>, vector<64x128xbf16>, vector<32x128xf32> -> vector<32x128xf32>
    %330 = arith.addf %326, %329 : vector<32x128xf32>
    %331 = vector.extract_strided_slice %319 {offsets = [96, 0], sizes = [32, 64], strides = [1, 1]} : vector<288x64xbf16> to vector<32x64xbf16>
    %c1696 = arith.constant 1696 : index
    %c0_145 = arith.constant 0 : index
    %332 = vector.load %arg4[%c1696, %c0_145] : memref<2368x128xbf16, #tpu.memory_space<vmem>>, vector<64x128xbf16>
    %cst_146 = arith.constant dense<0.000000e+00> : vector<32x128xf32>
    %333 = tpu.matmul %331, %332, %cst_146 {dimension_numbers = #tpu.dot_dimension_numbers<[1], [0], [0], [1], [0, 0, 1, 1], [], []>} : vector<32x64xbf16>, vector<64x128xbf16>, vector<32x128xf32> -> vector<32x128xf32>
    %334 = arith.addf %330, %333 : vector<32x128xf32>
    %335 = vector.extract_strided_slice %319 {offsets = [128, 0], sizes = [32, 64], strides = [1, 1]} : vector<288x64xbf16> to vector<32x64xbf16>
    %c1760 = arith.constant 1760 : index
    %c0_147 = arith.constant 0 : index
    %336 = vector.load %arg4[%c1760, %c0_147] : memref<2368x128xbf16, #tpu.memory_space<vmem>>, vector<64x128xbf16>
    %cst_148 = arith.constant dense<0.000000e+00> : vector<32x128xf32>
    %337 = tpu.matmul %335, %336, %cst_148 {dimension_numbers = #tpu.dot_dimension_numbers<[1], [0], [0], [1], [0, 0, 1, 1], [], []>} : vector<32x64xbf16>, vector<64x128xbf16>, vector<32x128xf32> -> vector<32x128xf32>
    %338 = arith.addf %334, %337 : vector<32x128xf32>
    %339 = vector.extract_strided_slice %319 {offsets = [160, 0], sizes = [32, 64], strides = [1, 1]} : vector<288x64xbf16> to vector<32x64xbf16>
    %c1824 = arith.constant 1824 : index
    %c0_149 = arith.constant 0 : index
    %340 = vector.load %arg4[%c1824, %c0_149] : memref<2368x128xbf16, #tpu.memory_space<vmem>>, vector<64x128xbf16>
    %cst_150 = arith.constant dense<0.000000e+00> : vector<32x128xf32>
    %341 = tpu.matmul %339, %340, %cst_150 {dimension_numbers = #tpu.dot_dimension_numbers<[1], [0], [0], [1], [0, 0, 1, 1], [], []>} : vector<32x64xbf16>, vector<64x128xbf16>, vector<32x128xf32> -> vector<32x128xf32>
    %342 = arith.addf %338, %341 : vector<32x128xf32>
    %343 = vector.extract_strided_slice %319 {offsets = [192, 0], sizes = [32, 64], strides = [1, 1]} : vector<288x64xbf16> to vector<32x64xbf16>
    %c1888 = arith.constant 1888 : index
    %c0_151 = arith.constant 0 : index
    %344 = vector.load %arg4[%c1888, %c0_151] : memref<2368x128xbf16, #tpu.memory_space<vmem>>, vector<64x128xbf16>
    %cst_152 = arith.constant dense<0.000000e+00> : vector<32x128xf32>
    %345 = tpu.matmul %343, %344, %cst_152 {dimension_numbers = #tpu.dot_dimension_numbers<[1], [0], [0], [1], [0, 0, 1, 1], [], []>} : vector<32x64xbf16>, vector<64x128xbf16>, vector<32x128xf32> -> vector<32x128xf32>
    %346 = arith.addf %342, %345 : vector<32x128xf32>
    %347 = vector.extract_strided_slice %319 {offsets = [224, 0], sizes = [32, 64], strides = [1, 1]} : vector<288x64xbf16> to vector<32x64xbf16>
    %c1952 = arith.constant 1952 : index
    %c0_153 = arith.constant 0 : index
    %348 = vector.load %arg4[%c1952, %c0_153] : memref<2368x128xbf16, #tpu.memory_space<vmem>>, vector<64x128xbf16>
    %cst_154 = arith.constant dense<0.000000e+00> : vector<32x128xf32>
    %349 = tpu.matmul %347, %348, %cst_154 {dimension_numbers = #tpu.dot_dimension_numbers<[1], [0], [0], [1], [0, 0, 1, 1], [], []>} : vector<32x64xbf16>, vector<64x128xbf16>, vector<32x128xf32> -> vector<32x128xf32>
    %350 = arith.addf %346, %349 : vector<32x128xf32>
    %351 = vector.extract_strided_slice %319 {offsets = [256, 0], sizes = [32, 64], strides = [1, 1]} : vector<288x64xbf16> to vector<32x64xbf16>
    %c2016 = arith.constant 2016 : index
    %c0_155 = arith.constant 0 : index
    %352 = vector.load %arg4[%c2016, %c0_155] : memref<2368x128xbf16, #tpu.memory_space<vmem>>, vector<64x128xbf16>
    %cst_156 = arith.constant dense<0.000000e+00> : vector<32x128xf32>
    %353 = tpu.matmul %351, %352, %cst_156 {dimension_numbers = #tpu.dot_dimension_numbers<[1], [0], [0], [1], [0, 0, 1, 1], [], []>} : vector<32x64xbf16>, vector<64x128xbf16>, vector<32x128xf32> -> vector<32x128xf32>
    %354 = arith.addf %350, %353 : vector<32x128xf32>
    %c104 = arith.constant 104 : index
    %c0_157 = arith.constant 0 : index
    %355 = vector.load %arg5[%c104, %c0_157] : memref<176x128xf32, #tpu.memory_space<vmem>>, vector<1x128xf32>
    %356 = vector.broadcast %355 : vector<1x128xf32> to vector<32x128xf32>
    %357 = arith.addf %354, %356 : vector<32x128xf32>
    %c0_158 = arith.constant 0 : index
    %c0_159 = arith.constant 0 : index
    %358 = vector.load %arg6[%c0_158, %c0_159] : memref<32x128xf32, #tpu.memory_space<vmem>>, vector<32x128xf32>
    tpu.vector_store %arg6[%c0_158, %c0_159], %357 {strides = array<i32>} : memref<32x128xf32, #tpu.memory_space<vmem>>, vector<32x128xf32>,
    return
  }
  func.func @transform_0(%arg0: i32) -> (i32, i32, i32) {
    %c0_i32 = arith.constant 0 : i32
    %c0_i32_0 = arith.constant 0 : i32
    %c0_i32_1 = arith.constant 0 : i32
    %c0_i32_2 = arith.constant 0 : i32
    return %c0_i32, %c0_i32_0, %c0_i32_1 : i32, i32, i32
  }
  func.func @transform_1(%arg0: i32) -> (i32, i32) {
    %c0_i32 = arith.constant 0 : i32
    %c0_i32_0 = arith.constant 0 : i32
    %c0_i32_1 = arith.constant 0 : i32
    return %c0_i32, %c0_i32_0 : i32, i32
  }
  func.func @transform_2(%arg0: i32) -> (i32, i32) {
    %c0_i32 = arith.constant 0 : i32
    %c0_i32_0 = arith.constant 0 : i32
    %c0_i32_1 = arith.constant 0 : i32
    return %c0_i32, %c0_i32_0 : i32, i32
  }
  func.func @transform_3(%arg0: i32) -> (i32, i32) {
    %c0_i32 = arith.constant 0 : i32
    %c0_i32_0 = arith.constant 0 : i32
    %c0_i32_1 = arith.constant 0 : i32
    return %c0_i32, %c0_i32_0 : i32, i32
  }
  func.func @transform_4(%arg0: i32) -> (i32, i32) {
    %c0_i32 = arith.constant 0 : i32
    %c0_i32_0 = arith.constant 0 : i32
    %c0_i32_1 = arith.constant 0 : i32
    return %c0_i32, %c0_i32_0 : i32, i32
  }
  func.func @transform_5(%arg0: i32) -> (i32, i32) {
    %c0_i32 = arith.constant 0 : i32
    %c0_i32_0 = arith.constant 0 : i32
    %c0_i32_1 = arith.constant 0 : i32
    return %c0_i32, %c0_i32_0 : i32, i32
  }
}

</mosaic_0001>

<bundles_post_ra>
// kernel: decoder_forward.1
= control target key start
LH: loop header
LB: loop body
LE: loop exit
PB: predicated region body
PF: predicated region fallthrough
CT: control target
= control target key end

     0   :  { %vm1377_vm0 = vcmask 523264   ;;  %s10718_s0 = inlined_call_operand.vmem [shape: f32[9,256,64], index: 0, kind: input, shape index: {}]   ;;  %s10719_s1 = inlined_call_operand.vmem [shape: bf16[256,128], index: 1, kind: input, shape index: {}]   ;;  %s10720_s2 = inlined_call_operand.vmem [shape: bf16[32,256], index: 2, kind: input, shape index: {}]   ;;  %s10721_s3 = inlined_call_operand.vmem [shape: bf16[2368,128], index: 3, kind: input, shape index: {}]   ;;  %s10722_s4 = inlined_call_operand.vmem [shape: f32[176,128], index: 4, kind: input, shape index: {}]   ;;  %s10723_s5 = inlined_call_operand.hbm [shape: f32[32,128], index: 5, kind: output, shape index: {}]  }
   0x1   :  { %v7832_v0 = vld [vmem:[%s10721_s3 + $0x58] sm:$0xff]   ;;  %v7833_v1 = vld [vmem:[%s10721_s3 + $0x50] sm:$0xff]   ;;  %v7834_v3 = vld [vmem:[%s10721_s3 + $0x48] sm:$0xff]  }
   0x2   :  { %7178 = vmatprep.subr.bf16.mxu0 %v7832_v0  ;;  %v7835_v2 = vld [vmem:[%s10721_s3 + $0x18] sm:$0xff]   ;;  %v7837_v4 = vld [vmem:[%s10721_s3 + $0x10] sm:$0xff]   ;;  %v7839_v5 = vld [vmem:[%s10721_s3 + $0x8] sm:$0xff]  }
   0x3   :  { %7179 = vmatpush3.bf16.msra.mxu0 %v7832_v0  ;;  %7226 = vmatprep.subr.bf16.mxu1 %v7835_v2  ;;  %v7836_v6 = vld [vmem:[%s10721_s3 + $0x40] sm:$0xff]   ;;  %v7838_v7 = vld [vmem:[%s10721_s3 + $0x38] sm:$0xff]   ;;  %v23_v10 = vld [vmem:[%s10718_s0 + $0x8] sm:$0xff] }
   0x4   :  { %7180 = vmatprep.subr.bf16.mxu0 %v7833_v1  ;;  %7227 = vmatpush3.bf16.msra.mxu1 %v7835_v2  ;;  %v7841_v8 = vld [vmem:[%s10721_s3] sm:$0xff]   ;;  %v6251_v15 = vld [vmem:[%s10718_s0 + $0x108] sm:$0xff]  ;;  %v7840_v22 = vld [vmem:[%s10721_s3 + $0x30] sm:$0xff]  }
   0x5   :  { %7228 = vmatprep.subr.bf16.mxu1 %v7837_v4  ;;  %v22_v9 = vld [vmem:[%s10718_s0] sm:$0xff]  ;;  %v6284_v20 = vld [vmem:[%s10718_s0 + $0x208] sm:$0xff]  ;;  %v24_v60 = vld [vmem:[%s10718_s0 + $0x10] sm:$0xff] }
   0x6   :  { %v8220_v11 = vld [vmem:[%s10722_s4] ss:$0 sm:$0xff]  ;;  %v8233_v16 = vld [vmem:[%s10722_s4 + $0x1] ss:$0 sm:$0xff]  ;;  %v8246_v21 = vld [vmem:[%s10722_s4 + $0x2] ss:$0 sm:$0xff] }
   0x7   :  { %7181 = vmatpush3.bf16.msra.mxu0 %v7833_v1  ;;  %v59_v12 = vmul.f32 %v8220_v11, %v22_v9  ;;  %v60_v13 = vmul.f32 %v8220_v11, %v23_v10  ;;  %v6250_v14 = vld [vmem:[%s10718_s0 + $0x100] sm:$0xff]  ;;  %v130_v18 = vmul.f32 %v8233_v16, %v6251_v15  ;;  %v232_v24 = vmul.f32 %v8246_v21, %v6284_v20  ;;  %v6317_v26 = vld [vmem:[%s10718_s0 + $0x308] sm:$0xff]  ;;  %v25_v61 = vld [vmem:[%s10718_s0 + $0x18] sm:$0xff] }
   0x8   :  { %7182 = vmatprep.subr.bf16.mxu0 %v7834_v3  ;;  %7229 = vmatpush3.bf16.msra.mxu1 %v7837_v4  ;;  %v129_v17 = vmul.f32 %v8233_v16, %v6250_v14  ;;  %v6283_v19 = vld [vmem:[%s10718_s0 + $0x200] sm:$0xff]  ;;  %v6350_v32 = vld [vmem:[%s10718_s0 + $0x408] sm:$0xff]  ;;  %v61_v0 = vmul.f32 %v8220_v11, %v24_v60  ;;  %v62_v1 = vmul.f32 %v8220_v11, %v25_v61  ;;  %v6252_v2 = vld [vmem:[%s10718_s0 + $0x110] sm:$0xff] }
   0x9   :  { %7230 = vmatprep.subr.bf16.mxu1 %v7839_v5  ;;  %v231_v23 = vmul.f32 %v8246_v21, %v6283_v19  ;;  %v6316_v25 = vld [vmem:[%s10718_s0 + $0x300] sm:$0xff]  ;;  %v162_v29 = vadd.f32 %v130_v18, %v60_v13  ;;  %v6383_v36 = vld [vmem:[%s10718_s0 + $0x508] sm:$0xff]  ;;  %v6285_v4 = vld [vmem:[%s10718_s0 + $0x210] sm:$0xff] }
   0xa   :  { %v8262_v27 = vld [vmem:[%s10722_s4 + $0x3] ss:$0 sm:$0xff]  ;;  %v161_v28 = vadd.f32 %v129_v17, %v59_v12  ;;  %v8274_v33 = vld [vmem:[%s10722_s4 + $0x4] ss:$0 sm:$0xff]  ;;  %v8286_v37 = vld [vmem:[%s10722_s4 + $0x5] ss:$0 sm:$0xff]  ;;  %v233_v9 = vmul.f32 %v8246_v21, %v6285_v4 }
   0xb   :  { %7183 = vmatpush3.bf16.msra.mxu0 %v7834_v3  ;;  %v333_v30 = vmul.f32 %v8262_v27, %v6316_v25  ;;  %v6349_v31 = vld [vmem:[%s10718_s0 + $0x400] sm:$0xff]  ;;  %v334_v34 = vmul.f32 %v8262_v27, %v6317_v26  ;;  %v264_v39 = vadd.f32 %v232_v24, %v162_v29  ;;  %v436_v41 = vmul.f32 %v8274_v33, %v6350_v32  ;;  %v6416_v43 = vld [vmem:[%s10718_s0 + $0x608] sm:$0xff]  ;;  %v6253_v3 = vld [vmem:[%s10718_s0 + $0x118] sm:$0xff] }
   0xc   :  { %7184 = vmatprep.subr.bf16.mxu0 %v7836_v6  ;;  %7231 = vmatpush3.bf16.msra.mxu1 %v7839_v5  ;;  %v6382_v35 = vld [vmem:[%s10718_s0 + $0x500] sm:$0xff]  ;;  %v263_v38 = vadd.f32 %v231_v23, %v161_v28  ;;  %v435_v40 = vmul.f32 %v8274_v33, %v6349_v31  ;;  %v6449_v46 = vld [vmem:[%s10718_s0 + $0x708] sm:$0xff]  ;;  %v538_v52 = vmul.f32 %v8286_v37, %v6383_v36  ;;  %v6318_v10 = vld [vmem:[%s10718_s0 + $0x310] sm:$0xff] }
   0xd   :  { %7232 = vmatprep.subr.bf16.mxu1 %v7841_v8  ;;  %v6415_v42 = vld [vmem:[%s10718_s0 + $0x600] sm:$0xff]  ;;  %v7842_v48 = vld [vmem:[%s10721_s3 + $0x28] sm:$0xff]   ;;  %v366_v50 = vadd.f32 %v334_v34, %v264_v39  ;;  %v537_v51 = vmul.f32 %v8286_v37, %v6382_v35  ;;  %v6319_v12 = vld [vmem:[%s10718_s0 + $0x318] sm:$0xff]  ;;  %v335_v24 = vmul.f32 %v8262_v27, %v6318_v10 }
   0xe   :  { %v8299_v44 = vld [vmem:[%s10722_s4 + $0x6] ss:$0 sm:$0xff]  ;;  %v8310_v47 = vld [vmem:[%s10722_s4 + $0x7] ss:$0 sm:$0xff]  ;;  %v365_v49 = vadd.f32 %v333_v30, %v263_v38  ;;  %v8323_v54 = vld [vmem:[%s10722_s4 + $0x8] ss:$0 sm:$0xff]  ;;  %v336_v25 = vmul.f32 %v8262_v27, %v6319_v12 }
   0xf   :  { %7185 = vmatpush3.bf16.msra.mxu0 %v7836_v6  ;;  %v6448_v45 = vld [vmem:[%s10718_s0 + $0x700] sm:$0xff]  ;;  %v639_v55 = vmul.f32 %v8299_v44, %v6415_v42  ;;  %v640_v56 = vmul.f32 %v8299_v44, %v6416_v43  ;;  %v742_v58 = vmul.f32 %v8310_v47, %v6449_v46  ;;  %v6482_v59 = vld [vmem:[%s10718_s0 + $0x808] sm:$0xff]  ;;  %v468_v63 = vadd.f32 %v436_v41, %v366_v50  ;;  %v6351_v18 = vld [vmem:[%s10718_s0 + $0x410] sm:$0xff] }
  0x10   :  { %7186 = vmatprep.subr.bf16.mxu0 %v7838_v7  ;;  %7233 = vmatpush3.bf16.msra.mxu1 %v7841_v8  ;;  %v6481_v53 = vld [vmem:[%s10718_s0 + $0x800] sm:$0xff]  ;;  %v741_v57 = vmul.f32 %v8310_v47, %v6448_v45  ;;  %v467_v62 = vadd.f32 %v435_v40, %v365_v49  ;;  %v131_v6 = vmul.f32 %v8233_v16, %v6252_v2  ;;  %v6286_v8 = vld [vmem:[%s10718_s0 + $0x218] sm:$0xff]  ;;  %v6384_v20 = vld [vmem:[%s10718_s0 + $0x510] sm:$0xff] }
  0x11   :  { %v843_v5 = vmul.f32 %v8323_v54, %v6481_v53  ;;  %v570_v14 = vadd.f32 %v538_v52, %v468_v63  ;;  %v844_v15 = vmul.f32 %v8323_v54, %v6482_v59  ;;  %v234_v17 = vmul.f32 %v8246_v21, %v6286_v8  ;;  %v6352_v19 = vld [vmem:[%s10718_s0 + $0x418] sm:$0xff]  ;;  %v6417_v28 = vld [vmem:[%s10718_s0 + $0x610] sm:$0xff]  ;;  %v7843_v52 = vld [vmem:[%s10721_s3 + $0x20] sm:$0xff]  }
  0x12   :  { %v569_v13 = vadd.f32 %v537_v51, %v467_v62  ;;  %v6385_v26 = vld [vmem:[%s10718_s0 + $0x518] sm:$0xff]  ;;  %v437_v32 = vmul.f32 %v8274_v33, %v6351_v18  ;;  %v438_v34 = vmul.f32 %v8274_v33, %v6352_v19  ;;  %v6450_v35 = vld [vmem:[%s10718_s0 + $0x710] sm:$0xff]  ;;  %v539_v42 = vmul.f32 %v8286_v37, %v6384_v20  ;;  %v7845_v62 = vld [vmem:[%s10719_s1 + $0x8] sm:$0xff]  }
  0x13   :  { %7187 = vmatpush3.bf16.msra.mxu0 %v7838_v7  ;;  %v132_v7 = vmul.f32 %v8233_v16, %v6253_v3  ;;  %v6418_v29 = vld [vmem:[%s10718_s0 + $0x618] sm:$0xff]  ;;  %v672_v31 = vadd.f32 %v640_v56, %v570_v14  ;;  %v6483_v38 = vld [vmem:[%s10718_s0 + $0x810] sm:$0xff]  ;;  %v540_v43 = vmul.f32 %v8286_v37, %v6385_v26  ;;  %v641_v50 = vmul.f32 %v8299_v44, %v6417_v28  ;;  %v26_v63 = vld [vmem:[%s10718_s0 + $0x20] sm:$0xff] }
  0x14   :  { %7188 = vmatprep.subr.bf16.mxu0 %v7840_v22  ;;  %v671_v30 = vadd.f32 %v639_v55, %v569_v13  ;;  %v6451_v36 = vld [vmem:[%s10718_s0 + $0x718] sm:$0xff]  ;;  %v8398_v39 = vld [vmem:[%s10722_s4 + $0x10] ss:$0 sm:$0xff]  ;;  %v642_v51 = vmul.f32 %v8299_v44, %v6418_v29  ;;  %v743_v56 = vmul.f32 %v8310_v47, %v6450_v35  ;;  %v845_v60 = vmul.f32 %v8323_v54, %v6483_v38  ;;  %v6288_v13 = vld [vmem:[%s10718_s0 + $0x228] sm:$0xff] }
  0x15   :  { %v164_v23 = vadd.f32 %v132_v7, %v62_v1  ;;  %v6484_v45 = vld [vmem:[%s10718_s0 + $0x818] sm:$0xff]  ;;  %v774_v49 = vadd.f32 %v742_v58, %v672_v31  ;;  %v744_v59 = vmul.f32 %v8310_v47, %v6451_v36  ;;  %v63_v3 = vmul.f32 %v8220_v11, %v26_v63  ;;  %v6287_v7 = vld [vmem:[%s10718_s0 + $0x220] sm:$0xff]  ;;  %v6354_v28 = vld [vmem:[%s10718_s0 + $0x428] sm:$0xff] }
  0x16   :  { %v773_v46 = vadd.f32 %v741_v57, %v671_v30  ;;  %v846_v61 = vmul.f32 %v8323_v54, %v6484_v45  ;;  %v6320_v14 = vld [vmem:[%s10718_s0 + $0x320] sm:$0xff]  ;;  %v235_v19 = vmul.f32 %v8246_v21, %v6287_v7  ;;  %v236_v20 = vmul.f32 %v8246_v21, %v6288_v13  ;;  %v6387_v35 = vld [vmem:[%s10718_s0 + $0x528] sm:$0xff] }
  0x17   :  { %7189 = vmatpush3.bf16.msra.mxu0 %v7840_v22  ;;  %v163_v22 = vadd.f32 %v131_v6, %v61_v0  ;;  %v266_v41 = vadd.f32 %v234_v17, %v164_v23  ;;  %v876_v58 = vadd.f32 %v844_v15, %v774_v49  ;;  %v27_v0 = vld [vmem:[%s10718_s0 + $0x28] sm:$0xff]  ;;  %v6386_v29 = vld [vmem:[%s10718_s0 + $0x520] sm:$0xff] }
  0x18   :  { %7190 = vmatprep.subr.bf16.mxu0 %v7842_v48  ;;  %v875_v57 = vadd.f32 %v843_v5, %v773_v46  ;;  %v64_v4 = vmul.f32 %v8220_v11, %v27_v0  ;;  %v6254_v5 = vld [vmem:[%s10718_s0 + $0x120] sm:$0xff]  ;;  %v6255_v6 = vld [vmem:[%s10718_s0 + $0x128] sm:$0xff] }
  0x19   :  { %v265_v40 = vadd.f32 %v233_v9, %v163_v22  ;;  %v368_v55 = vadd.f32 %v336_v25, %v266_v41  ;;  %v913_v9 = vadd.f32 %v8398_v39, %v876_v58  ;;  %v133_v10 = vmul.f32 %v8233_v16, %v6254_v5  ;;  %v6321_v15 = vld [vmem:[%s10718_s0 + $0x328] sm:$0xff]  ;;  %v6353_v22 = vld [vmem:[%s10718_s0 + $0x420] sm:$0xff]  ;;  %v28_v58 = vld [vmem:[%s10718_s0 + $0x30] sm:$0xff] }
  0x1a   :  { %v912_v8 = vadd.f32 %v8398_v39, %v875_v57  ;;  %v134_v12 = vmul.f32 %v8233_v16, %v6255_v6  ;;  %v6419_v36 = vld [vmem:[%s10718_s0 + $0x620] sm:$0xff]  ;;  %v542_v57 = vmul.f32 %v8286_v37, %v6387_v35  ;;  %v65_v13 = vmul.f32 %v8220_v11, %v28_v58  ;;  %v6487_v58 = vld [vmem:[%s10718_s0 + $0x830] sm:$0xff] }
  0x1b   :  { %7191 = vmatpush3.bf16.msra.mxu0 %v7842_v48  ;;  %v367_v53 = vadd.f32 %v335_v24, %v265_v40  ;;  %v7844_v48 = vld [vmem:[%s10719_s1] sm:$0xff]   ;;  %v470_v2 = vadd.f32 %v438_v34, %v368_v55  ;;  %v945_v24 = vmax.f32 %v913_v9, 0.0  ;;  %v165_v25 = vadd.f32 %v133_v10, %v63_v3  ;;  %v6256_v3 = vld [vmem:[%s10718_s0 + $0x130] sm:$0xff] }
  0x1c   :  { %7192 = vmatprep.subr.bf16.mxu0 %v7843_v52  ;;  %7194 = vmatprep.mubr.bf16.mxu0 %v7844_v48  ;;  %v944_v23 = vmax.f32 %v912_v8, 0.0  ;;  %v166_v26 = vadd.f32 %v134_v12, %v64_v4  ;;  %v338_v34 = vmul.f32 %v8262_v27, %v6321_v15  ;;  %v6452_v45 = vld [vmem:[%s10718_s0 + $0x720] sm:$0xff]  ;;  %v6290_v8 = vld [vmem:[%s10718_s0 + $0x238] sm:$0xff] }
  0x1d   :  { %v469_v1 = vadd.f32 %v437_v32, %v367_v53  ;;  %v572_v18 = vadd.f32 %v540_v43, %v470_v2  ;;  %v337_v32 = vmul.f32 %v8262_v27, %v6320_v14  ;;  %v267_v40 = vadd.f32 %v235_v19, %v165_v25  ;;  %v6420_v43 = vld [vmem:[%s10718_s0 + $0x628] sm:$0xff]  ;;  %v6485_v53 = vld [vmem:[%s10718_s0 + $0x820] sm:$0xff]  ;;  %v29_v2 = vld [vmem:[%s10718_s0 + $0x38] sm:$0xff] }
  0x1e   :  { %v1008_v38 = vpack.c.bf16 %v945_v24, %v944_v23  ;;  %v268_v41 = vadd.f32 %v236_v20, %v166_v26  ;;  %v644_v0 = vmul.f32 %v8299_v44, %v6420_v43  ;;  %v847_v7 = vmul.f32 %v8323_v54, %v6485_v53  ;;  %v6322_v14 = vld [vmem:[%s10718_s0 + $0x330] sm:$0xff]  ;;  %v6323_v15 = vld [vmem:[%s10718_s0 + $0x338] sm:$0xff] }
  0x1f   :  { %7193 = vmatpush3.bf16.msra.mxu0 %v7843_v52  ;;  %v571_v17 = vadd.f32 %v539_v42, %v469_v1  ;;  %v674_v31 = vadd.f32 %v642_v51, %v572_v18  ;;  %v439_v42 = vmul.f32 %v8274_v33, %v6353_v22  ;;  %v541_v51 = vmul.f32 %v8286_v37, %v6386_v29  ;;  %v6453_v52 = vld [vmem:[%s10718_s0 + $0x728] sm:$0xff]  ;;  %v6356_v23 = vld [vmem:[%s10718_s0 + $0x438] sm:$0xff]  ;;  %v7846_v29 = vld [vmem:[%s10719_s1 + $0x10] sm:$0xff]  }
  0x20   :  { %7234 = vmatprep.mubr.msk.bf16.mxu1 %vm1377_vm0, %v1008_v38  ;;  %v369_v55 = vadd.f32 %v337_v32, %v267_v40  ;;  %v370_v48 = vadd.f32 %v338_v34, %v268_v41  ;;  %v745_v1 = vmul.f32 %v8310_v47, %v6452_v45  ;;  %v746_v6 = vmul.f32 %v8310_v47, %v6453_v52  ;;  %v6389_v38 = vld [vmem:[%s10718_s0 + $0x538] sm:$0xff]  ;;  %v6421_v45 = vld [vmem:[%s10718_s0 + $0x630] sm:$0xff] }
  0x21   :  { %v673_v30 = vadd.f32 %v641_v50, %v571_v17  ;;  %v776_v49 = vadd.f32 %v744_v59, %v674_v31  ;;  %v440_v50 = vmul.f32 %v8274_v33, %v6354_v28  ;;  %v6486_v59 = vld [vmem:[%s10718_s0 + $0x828] sm:$0xff]  ;;  %v6355_v17 = vld [vmem:[%s10718_s0 + $0x430] sm:$0xff]  ;;  %v66_v20 = vmul.f32 %v8220_v11, %v29_v2  ;;  %v6422_v52 = vld [vmem:[%s10718_s0 + $0x638] sm:$0xff] }
  0x22   :  { %7195 = vmatmul.mubr.bf16.vlgmr.msra.gmra.mxu0 %v7845_v62  ;;  %v471_v4 = vadd.f32 %v439_v42, %v369_v55  ;;  %v848_v12 = vmul.f32 %v8323_v54, %v6486_v59  ;;  %v135_v22 = vmul.f32 %v8233_v16, %v6256_v3  ;;  %v238_v35 = vmul.f32 %v8246_v21, %v6290_v8  ;;  %v6454_v53 = vld [vmem:[%s10718_s0 + $0x730] sm:$0xff]  ;;  %v6455_v55 = vld [vmem:[%s10718_s0 + $0x738] sm:$0xff]  ;;  %v30_v3 = vld [vmem:[%s10718_s0 + $0x40] sm:$0xff] }
  0x23   :  { %v775_v46 = vadd.f32 %v743_v56, %v673_v30  ;;  %v643_v56 = vmul.f32 %v8299_v44, %v6419_v36  ;;  %v878_v63 = vadd.f32 %v846_v61, %v776_v49  ;;  %v472_v5 = vadd.f32 %v440_v50, %v370_v48  ;;  %v6289_v61 = vld [vmem:[%s10718_s0 + $0x230] sm:$0xff]  ;;  %v7847_v30 = vld [vmem:[%s10719_s1 + $0x18] sm:$0xff]   ;;  %7198 = vmatprep.mubr.bf16.mxu0 %v7846_v29  ;;  %v6357_v29 = vld [vmem:[%s10718_s0 + $0x440] sm:$0xff] }
  0x24   :  { %v573_v18 = vadd.f32 %v541_v51, %v471_v4  ;;  %v237_v28 = vmul.f32 %v8246_v21, %v6289_v61  ;;  %v167_v34 = vadd.f32 %v135_v22, %v65_v13  ;;  %v6388_v36 = vld [vmem:[%s10718_s0 + $0x530] sm:$0xff]  ;;  %v339_v42 = vmul.f32 %v8262_v27, %v6322_v14  ;;  %v6488_v2 = vld [vmem:[%s10718_s0 + $0x838] sm:$0xff]  ;;  %v31_v4 = vld [vmem:[%s10718_s0 + $0x48] sm:$0xff] }
  0x25   :  { %v877_v62 = vadd.f32 %v845_v60, %v775_v46  ;;  %v6257_v60 = vld [vmem:[%s10718_s0 + $0x138] sm:$0xff]  ;;  %v915_v10 = vadd.f32 %v8398_v39, %v878_v63  ;;  %v574_v19 = vadd.f32 %v542_v57, %v472_v5  ;;  %v340_v43 = vmul.f32 %v8262_v27, %v6323_v15  ;;  %v6258_v61 = vld [vmem:[%s10718_s0 + $0x140] sm:$0xff]  ;;  %v6259_v13 = vld [vmem:[%s10718_s0 + $0x148] sm:$0xff] }
  0x26   :  { %v136_v26 = vmul.f32 %v8233_v16, %v6257_v60  ;;  %v675_v31 = vadd.f32 %v643_v56, %v573_v18  ;;  %v269_v50 = vadd.f32 %v237_v28, %v167_v34  ;;  %v441_v51 = vmul.f32 %v8274_v33, %v6355_v17  ;;  %v6291_v14 = vld [vmem:[%s10718_s0 + $0x240] sm:$0xff]  ;;  %v6292_v15 = vld [vmem:[%s10718_s0 + $0x248] sm:$0xff] }
  0x27   :  { %v914_v9 = vadd.f32 %v8398_v39, %v877_v62  ;;  %v947_v25 = vmax.f32 %v915_v10, 0.0  ;;  %v676_v32 = vadd.f32 %v644_v0, %v574_v19  ;;  %v442_v57 = vmul.f32 %v8274_v33, %v6356_v23  ;;  %v6324_v22 = vld [vmem:[%s10718_s0 + $0x340] sm:$0xff]  ;;  %v6325_v28 = vld [vmem:[%s10718_s0 + $0x348] sm:$0xff] }
  0x28   :  { %v168_v41 = vadd.f32 %v136_v26, %v66_v20  ;;  %v777_v46 = vadd.f32 %v745_v1, %v675_v31  ;;  %v543_v56 = vmul.f32 %v8286_v37, %v6388_v36  ;;  %v544_v59 = vmul.f32 %v8286_v37, %v6389_v38  ;;  %v6390_v36 = vld [vmem:[%s10718_s0 + $0x540] sm:$0xff]  ;;  %v6391_v38 = vld [vmem:[%s10718_s0 + $0x548] sm:$0xff] }
  0x29   :  { %v946_v24 = vmax.f32 %v914_v9, 0.0  ;;  %v778_v49 = vadd.f32 %v746_v6, %v676_v32  ;;  %v371_v0 = vadd.f32 %v339_v42, %v269_v50  ;;  %v645_v1 = vmul.f32 %v8299_v44, %v6421_v45  ;;  %v6423_v45 = vld [vmem:[%s10718_s0 + $0x640] sm:$0xff] }
  0x2a   :  { %7199 = vmatmul.mubr.bf16.gmra.mxu0 %v7847_v30  ;;  %v270_v48 = vadd.f32 %v238_v35, %v168_v41  ;;  %v879_v62 = vadd.f32 %v847_v7, %v777_v46  ;;  %v646_v6 = vmul.f32 %v8299_v44, %v6422_v52  ;;  %v747_v7 = vmul.f32 %v8310_v47, %v6454_v53  ;;  %v6358_v35 = vld [vmem:[%s10718_s0 + $0x448] sm:$0xff] }
  0x2b   :  { %v1009_v40 = vpack.c.bf16 %v947_v25, %v946_v24  ;;  %v880_v63 = vadd.f32 %v848_v12, %v778_v49  ;;  %v748_v60 = vmul.f32 %v8310_v47, %v6455_v55  ;;  %v473_v10 = vadd.f32 %v441_v51, %v371_v0  ;;  %v6424_v46 = vld [vmem:[%s10718_s0 + $0x648] sm:$0xff]  ;;  %v6456_v49 = vld [vmem:[%s10718_s0 + $0x740] sm:$0xff] }
  0x2c   :  { %v372_v5 = vadd.f32 %v340_v43, %v270_v48  ;;  %v916_v8 = vadd.f32 %v8398_v39, %v879_v62  ;;  %v849_v12 = vmul.f32 %v8323_v54, %v6487_v58  ;;  %v850_v18 = vmul.f32 %v8323_v54, %v6488_v2  ;;  %v6457_v55 = vld [vmem:[%s10718_s0 + $0x748] sm:$0xff]  ;;  %v6489_v48 = vld [vmem:[%s10718_s0 + $0x840] sm:$0xff] }
  0x2d   :  { %7235 = vmatmul.mubr.msk.bf16.vlgmr.msra.gmra.mxu1 %vm1377_vm0, %v1009_v40  ;;  %v917_v9 = vadd.f32 %v8398_v39, %v880_v63  ;;  %v67_v19 = vmul.f32 %v8220_v11, %v30_v3  ;;  %v68_v20 = vmul.f32 %v8220_v11, %v31_v4  ;;  %v575_v25 = vadd.f32 %v543_v56, %v473_v10  ;;  %v32_v63 = vld [vmem:[%s10718_s0 + $0x50] sm:$0xff]  ;;  %v7848_v4 = vld [vmem:[%s10719_s1 + $0x20] sm:$0xff]  }
  0x2e   :  { %v474_v17 = vadd.f32 %v442_v57, %v372_v5  ;;  %v948_v23 = vmax.f32 %v916_v8, 0.0  ;;  %v137_v26 = vmul.f32 %v8233_v16, %v6258_v61  ;;  %v138_v31 = vmul.f32 %v8233_v16, %v6259_v13  ;;  %v6490_v57 = vld [vmem:[%s10718_s0 + $0x848] sm:$0xff]  ;;  %v33_v8 = vld [vmem:[%s10718_s0 + $0x58] sm:$0xff]  ;;  %7202 = vmatprep.mubr.bf16.mxu0 %v7848_v4 }
  0x2f   :  { %v949_v24 = vmax.f32 %v917_v9, 0.0  ;;  %v239_v32 = vmul.f32 %v8246_v21, %v6291_v14  ;;  %v240_v34 = vmul.f32 %v8246_v21, %v6292_v15  ;;  %v677_v41 = vadd.f32 %v645_v1, %v575_v25  ;;  %v7849_v9 = vld [vmem:[%s10719_s1 + $0x28] sm:$0xff]   ;;  %v6261_v15 = vld [vmem:[%s10718_s0 + $0x158] sm:$0xff] }
  0x30   :  { %v576_v30 = vadd.f32 %v544_v59, %v474_v17  ;;  %v169_v42 = vadd.f32 %v137_v26, %v67_v19  ;;  %v341_v43 = vmul.f32 %v8262_v27, %v6324_v22  ;;  %v170_v51 = vadd.f32 %v138_v31, %v68_v20  ;;  %v6293_v17 = vld [vmem:[%s10718_s0 + $0x250] sm:$0xff] }
  0x31   :  { %v1010_v40 = vpack.c.bf16 %v949_v24, %v948_v23  ;;  %v342_v52 = vmul.f32 %v8262_v27, %v6325_v28  ;;  %v443_v53 = vmul.f32 %v8274_v33, %v6357_v29  ;;  %v779_v56 = vadd.f32 %v747_v7, %v677_v41  ;;  %v6294_v23 = vld [vmem:[%s10718_s0 + $0x258] sm:$0xff]  ;;  %v6326_v29 = vld [vmem:[%s10718_s0 + $0x350] sm:$0xff] }
  0x32   :  { %v678_v50 = vadd.f32 %v646_v6, %v576_v30  ;;  %v271_v59 = vadd.f32 %v239_v32, %v169_v42  ;;  %v444_v58 = vmul.f32 %v8274_v33, %v6358_v35  ;;  %v545_v62 = vmul.f32 %v8286_v37, %v6390_v36  ;;  %7203 = vmatmul.mubr.bf16.gmra.mxu0 %v7849_v9  ;;  %v6327_v30 = vld [vmem:[%s10718_s0 + $0x358] sm:$0xff]  ;;  %v6359_v36 = vld [vmem:[%s10718_s0 + $0x450] sm:$0xff] }
  0x33   :  { %7238 = vmatprep.mubr.msk.bf16.mxu1 %vm1377_vm0, %v1010_v40  ;;  %v272_v1 = vadd.f32 %v240_v34, %v170_v51  ;;  %v546_v2 = vmul.f32 %v8286_v37, %v6391_v38  ;;  %v647_v3 = vmul.f32 %v8299_v44, %v6423_v45  ;;  %v881_v5 = vadd.f32 %v849_v12, %v779_v56  ;;  %v6392_v45 = vld [vmem:[%s10718_s0 + $0x550] sm:$0xff] }
  0x34   :  { %v780_v0 = vadd.f32 %v748_v60, %v678_v50  ;;  %v373_v6 = vadd.f32 %v341_v43, %v271_v59  ;;  %v648_v7 = vmul.f32 %v8299_v44, %v6424_v46  ;;  %v749_v61 = vmul.f32 %v8310_v47, %v6456_v49  ;;  %v6260_v60 = vld [vmem:[%s10718_s0 + $0x150] sm:$0xff]  ;;  %v6360_v43 = vld [vmem:[%s10718_s0 + $0x458] sm:$0xff] }
  0x35   :  { %v374_v13 = vadd.f32 %v342_v52, %v272_v1  ;;  %v750_v12 = vmul.f32 %v8310_v47, %v6457_v55  ;;  %v851_v14 = vmul.f32 %v8323_v54, %v6489_v48  ;;  %v918_v19 = vadd.f32 %v8398_v39, %v881_v5  ;;  %v6393_v52 = vld [vmem:[%s10718_s0 + $0x558] sm:$0xff] }
  0x36   :  { %v882_v10 = vadd.f32 %v850_v18, %v780_v0  ;;  %v475_v20 = vadd.f32 %v443_v53, %v373_v6  ;;  %v852_v22 = vmul.f32 %v8323_v54, %v6490_v57  ;;  %v69_v18 = vmul.f32 %v8220_v11, %v32_v63  ;;  %v6425_v53 = vld [vmem:[%s10718_s0 + $0x650] sm:$0xff]  ;;  %v6426_v59 = vld [vmem:[%s10718_s0 + $0x658] sm:$0xff] }
  0x37   :  { %v476_v25 = vadd.f32 %v444_v58, %v374_v13  ;;  %v70_v26 = vmul.f32 %v8220_v11, %v33_v8  ;;  %v139_v28 = vmul.f32 %v8233_v16, %v6260_v60  ;;  %v950_v31 = vmax.f32 %v918_v19, 0.0  ;;  %v6458_v58 = vld [vmem:[%s10718_s0 + $0x750] sm:$0xff]  ;;  %v34_v8 = vld [vmem:[%s10718_s0 + $0x60] sm:$0xff] }
  0x38   :  { %v919_v24 = vadd.f32 %v8398_v39, %v882_v10  ;;  %v577_v32 = vadd.f32 %v545_v62, %v475_v20  ;;  %v140_v34 = vmul.f32 %v8233_v16, %v6261_v15  ;;  %v241_v35 = vmul.f32 %v8246_v21, %v6293_v17  ;;  %v6262_v15 = vld [vmem:[%s10718_s0 + $0x160] sm:$0xff]  ;;  %v6263_v17 = vld [vmem:[%s10718_s0 + $0x168] sm:$0xff] }
  0x39   :  { %v578_v40 = vadd.f32 %v546_v2, %v476_v25  ;;  %v171_v41 = vadd.f32 %v139_v28, %v69_v18  ;;  %v242_v42 = vmul.f32 %v8246_v21, %v6294_v23  ;;  %v343_v50 = vmul.f32 %v8262_v27, %v6326_v29  ;;  %v6459_v2 = vld [vmem:[%s10718_s0 + $0x758] sm:$0xff]  ;;  %v6295_v23 = vld [vmem:[%s10718_s0 + $0x260] sm:$0xff] }
  0x3a   :  { %v951_v38 = vmax.f32 %v919_v24, 0.0  ;;  %v679_v46 = vadd.f32 %v647_v3, %v577_v32  ;;  %v172_v49 = vadd.f32 %v140_v34, %v70_v26  ;;  %v344_v51 = vmul.f32 %v8262_v27, %v6327_v30  ;;  %v6491_v3 = vld [vmem:[%s10718_s0 + $0x850] sm:$0xff]  ;;  %v6296_v24 = vld [vmem:[%s10718_s0 + $0x268] sm:$0xff]  ;;  %v6328_v25 = vld [vmem:[%s10718_s0 + $0x360] sm:$0xff] }
  0x3b   :  { %v680_v48 = vadd.f32 %v648_v7, %v578_v40  ;;  %v273_v57 = vadd.f32 %v241_v35, %v171_v41  ;;  %v445_v56 = vmul.f32 %v8274_v33, %v6359_v36  ;;  %v446_v0 = vmul.f32 %v8274_v33, %v6360_v43  ;;  %v6329_v30 = vld [vmem:[%s10718_s0 + $0x368] sm:$0xff]  ;;  %v7850_v36 = vld [vmem:[%s10719_s1 + $0x30] sm:$0xff]   ;;  %v6361_v43 = vld [vmem:[%s10718_s0 + $0x460] sm:$0xff] }
  0x3c   :  { %v1011_v55 = vpack.c.bf16 %v951_v38, %v950_v31  ;;  %v781_v62 = vadd.f32 %v749_v61, %v679_v46  ;;  %v274_v63 = vadd.f32 %v242_v42, %v172_v49  ;;  %v547_v1 = vmul.f32 %v8286_v37, %v6392_v45  ;;  %v6492_v61 = vld [vmem:[%s10718_s0 + $0x858] sm:$0xff]  ;;  %7206 = vmatprep.mubr.bf16.mxu0 %v7850_v36  ;;  %v6330_v36 = vld [vmem:[%s10718_s0 + $0x370] sm:$0xff] }
  0x3d   :  { %v782_v4 = vadd.f32 %v750_v12, %v680_v48  ;;  %v375_v5 = vadd.f32 %v343_v50, %v273_v57  ;;  %v548_v6 = vmul.f32 %v8286_v37, %v6393_v52  ;;  %v649_v7 = vmul.f32 %v8299_v44, %v6425_v53  ;;  %v35_v12 = vld [vmem:[%s10718_s0 + $0x68] sm:$0xff]  ;;  %v7851_v45 = vld [vmem:[%s10719_s1 + $0x38] sm:$0xff]   ;;  %v6394_v53 = vld [vmem:[%s10718_s0 + $0x560] sm:$0xff] }
  0x3e   :  { %7239 = vmatmul.mubr.msk.bf16.gmra.mxu1 %vm1377_vm0, %v1011_v55  ;;  %v883_v60 = vadd.f32 %v851_v14, %v781_v62  ;;  %v376_v9 = vadd.f32 %v344_v51, %v274_v63  ;;  %v650_v10 = vmul.f32 %v8299_v44, %v6426_v59  ;;  %v751_v13 = vmul.f32 %v8310_v47, %v6458_v58  ;;  %v6362_v52 = vld [vmem:[%s10718_s0 + $0x468] sm:$0xff]  ;;  %v6427_v58 = vld [vmem:[%s10718_s0 + $0x660] sm:$0xff] }
  0x3f   :  { %v884_v19 = vadd.f32 %v852_v22, %v782_v4  ;;  %v477_v20 = vadd.f32 %v445_v56, %v375_v5  ;;  %v752_v14 = vmul.f32 %v8310_v47, %v6459_v2  ;;  %v853_v18 = vmul.f32 %v8323_v54, %v6491_v3  ;;  %v6395_v59 = vld [vmem:[%s10718_s0 + $0x568] sm:$0xff]  ;;  %7207 = vmatmul.mubr.bf16.gmra.mxu0 %v7851_v45  ;;  %v6460_v3 = vld [vmem:[%s10718_s0 + $0x760] sm:$0xff]  ;;  %v6363_v45 = vld [vmem:[%s10718_s0 + $0x470] sm:$0xff] }
  0x40   :  { %v920_v26 = vadd.f32 %v8398_v39, %v883_v60  ;;  %v478_v22 = vadd.f32 %v446_v0, %v376_v9  ;;  %v854_v28 = vmul.f32 %v8323_v54, %v6492_v61  ;;  %v71_v29 = vmul.f32 %v8220_v11, %v34_v8  ;;  %v6428_v2 = vld [vmem:[%s10718_s0 + $0x668] sm:$0xff]  ;;  %v6493_v8 = vld [vmem:[%s10718_s0 + $0x860] sm:$0xff] }
  0x41   :  { %v921_v31 = vadd.f32 %v8398_v39, %v884_v19  ;;  %v579_v32 = vadd.f32 %v547_v1, %v477_v20  ;;  %v72_v34 = vmul.f32 %v8220_v11, %v35_v12  ;;  %v141_v35 = vmul.f32 %v8233_v16, %v6262_v15  ;;  %v6461_v61 = vld [vmem:[%s10718_s0 + $0x768] sm:$0xff]  ;;  %v36_v15 = vld [vmem:[%s10718_s0 + $0x70] sm:$0xff] }
  0x42   :  { %v952_v38 = vmax.f32 %v920_v26, 0.0  ;;  %v580_v40 = vadd.f32 %v548_v6, %v478_v22  ;;  %v142_v41 = vmul.f32 %v8233_v16, %v6263_v17  ;;  %v243_v42 = vmul.f32 %v8246_v21, %v6295_v23  ;;  %v6494_v12 = vld [vmem:[%s10718_s0 + $0x868] sm:$0xff]  ;;  %v6264_v23 = vld [vmem:[%s10718_s0 + $0x170] sm:$0xff] }
  0x43   :  { %v953_v46 = vmax.f32 %v921_v31, 0.0  ;;  %v681_v49 = vadd.f32 %v649_v7, %v579_v32  ;;  %v173_v50 = vadd.f32 %v141_v35, %v71_v29  ;;  %v244_v51 = vmul.f32 %v8246_v21, %v6296_v24  ;;  %v6297_v29 = vld [vmem:[%s10718_s0 + $0x270] sm:$0xff]  ;;  %v6298_v35 = vld [vmem:[%s10718_s0 + $0x278] sm:$0xff] }
  0x44   :  { %v682_v55 = vadd.f32 %v650_v10, %v580_v40  ;;  %v174_v48 = vadd.f32 %v142_v41, %v72_v34  ;;  %v345_v57 = vmul.f32 %v8262_v27, %v6328_v25  ;;  %v346_v56 = vmul.f32 %v8262_v27, %v6329_v30 }
  0x45   :  { %v1012_v62 = vpack.c.bf16 %v953_v46, %v952_v38  ;;  %v783_v63 = vadd.f32 %v751_v13, %v681_v49  ;;  %v275_v0 = vadd.f32 %v243_v42, %v173_v50  ;;  %v447_v1 = vmul.f32 %v8274_v33, %v6361_v43  ;;  %v6331_v43 = vld [vmem:[%s10718_s0 + $0x378] sm:$0xff] }
  0x46   :  { %v784_v4 = vadd.f32 %v752_v14, %v682_v55  ;;  %v276_v5 = vadd.f32 %v244_v51, %v174_v48  ;;  %v448_v6 = vmul.f32 %v8274_v33, %v6362_v52  ;;  %v549_v7 = vmul.f32 %v8286_v37, %v6394_v53  ;;  %v6396_v52 = vld [vmem:[%s10718_s0 + $0x570] sm:$0xff]  ;;  %v6397_v53 = vld [vmem:[%s10718_s0 + $0x578] sm:$0xff] }
  0x47   :  { %7242 = vmatprep.mubr.msk.bf16.mxu1 %vm1377_vm0, %v1012_v62  ;;  %v885_v60 = vadd.f32 %v853_v18, %v783_v63  ;;  %v377_v9 = vadd.f32 %v345_v57, %v275_v0  ;;  %v550_v10 = vmul.f32 %v8286_v37, %v6395_v59  ;;  %v651_v13 = vmul.f32 %v8299_v44, %v6427_v58  ;;  %v37_v18 = vld [vmem:[%s10718_s0 + $0x78] sm:$0xff]  ;;  %v6462_v58 = vld [vmem:[%s10718_s0 + $0x770] sm:$0xff] }
  0x48   :  { %v886_v17 = vadd.f32 %v854_v28, %v784_v4  ;;  %v378_v19 = vadd.f32 %v346_v56, %v276_v5  ;;  %v652_v20 = vmul.f32 %v8299_v44, %v6428_v2  ;;  %v753_v14 = vmul.f32 %v8310_v47, %v6460_v3  ;;  %v6265_v28 = vld [vmem:[%s10718_s0 + $0x178] sm:$0xff]  ;;  %v6429_v56 = vld [vmem:[%s10718_s0 + $0x670] sm:$0xff] }
  0x49   :  { %v922_v24 = vadd.f32 %v8398_v39, %v885_v60  ;;  %v479_v25 = vadd.f32 %v447_v1, %v377_v9  ;;  %v754_v26 = vmul.f32 %v8310_v47, %v6461_v61  ;;  %v855_v22 = vmul.f32 %v8323_v54, %v6493_v8  ;;  %v6430_v59 = vld [vmem:[%s10718_s0 + $0x678] sm:$0xff]  ;;  %v6495_v60 = vld [vmem:[%s10718_s0 + $0x870] sm:$0xff]  ;;  %v7853_v9 = vld [vmem:[%s10719_s1 + $0x48] sm:$0xff]  }
  0x4a   :  { %v923_v30 = vadd.f32 %v8398_v39, %v886_v17  ;;  %v480_v31 = vadd.f32 %v448_v6, %v378_v19  ;;  %v856_v32 = vmul.f32 %v8323_v54, %v6494_v12  ;;  %v73_v34 = vmul.f32 %v8220_v11, %v36_v15  ;;  %v7852_v6 = vld [vmem:[%s10719_s1 + $0x40] sm:$0xff]   ;;  %v39_v17 = vld [vmem:[%s10718_s0 + $0x88] sm:$0xff] }
  0x4b   :  { %v954_v38 = vmax.f32 %v922_v24, 0.0  ;;  %v581_v40 = vadd.f32 %v549_v7, %v479_v25  ;;  %v74_v41 = vmul.f32 %v8220_v11, %v37_v18  ;;  %v143_v42 = vmul.f32 %v8233_v16, %v6264_v23  ;;  %v6364_v11 = vld [vmem:[%s10718_s0 + $0x478] sm:$0xff]  ;;  %7210 = vmatprep.mubr.bf16.mxu0 %v7852_v6  ;;  %v6266_v23 = vld [vmem:[%s10718_s0 + $0x180] sm:$0xff] }
  0x4c   :  { %v955_v46 = vmax.f32 %v923_v30, 0.0  ;;  %v582_v49 = vadd.f32 %v550_v10, %v480_v31  ;;  %v144_v50 = vmul.f32 %v8233_v16, %v6265_v28  ;;  %v245_v51 = vmul.f32 %v8246_v21, %v6297_v29  ;;  %7211 = vmatmul.mubr.bf16.gmra.mxu0 %v7853_v9  ;;  %v6300_v28 = vld [vmem:[%s10718_s0 + $0x288] sm:$0xff]  ;;  %v8917_v31 = vld [vmem:[%s10722_s4] ss:$0 sm:$0xff]  ;;  %v8993_v9 = vld [vmem:[%s10722_s4 + $0x6] ss:$0 sm:$0xff] }
  0x4d   :  { %v683_v55 = vadd.f32 %v651_v13, %v581_v40  ;;  %v175_v48 = vadd.f32 %v143_v42, %v73_v34  ;;  %v246_v57 = vmul.f32 %v8246_v21, %v6298_v35  ;;  %v347_v16 = vmul.f32 %v8262_v27, %v6330_v36  ;;  %v6463_v21 = vld [vmem:[%s10718_s0 + $0x778] sm:$0xff]  ;;  %v6332_v34 = vld [vmem:[%s10718_s0 + $0x380] sm:$0xff]  ;;  %v6333_v42 = vld [vmem:[%s10718_s0 + $0x388] sm:$0xff] }
  0x4e   :  { %v1013_v62 = vpack.c.bf16 %v955_v46, %v954_v38  ;;  %v684_v63 = vadd.f32 %v652_v20, %v582_v49  ;;  %v176_v0 = vadd.f32 %v144_v50, %v74_v41  ;;  %v348_v1 = vmul.f32 %v8262_v27, %v6331_v43  ;;  %v8927_v38 = vld [vmem:[%s10722_s4 + $0x1] ss:$0 sm:$0xff]  ;;  %v8940_v49 = vld [vmem:[%s10722_s4 + $0x2] ss:$0 sm:$0xff] }
  0x4f   :  { %v785_v2 = vadd.f32 %v753_v14, %v683_v55  ;;  %v277_v3 = vadd.f32 %v245_v51, %v175_v48  ;;  %v449_v4 = vmul.f32 %v8274_v33, %v6363_v45  ;;  %v450_v5 = vmul.f32 %v8274_v33, %v6364_v11  ;;  %v6496_v33 = vld [vmem:[%s10718_s0 + $0x878] sm:$0xff]  ;;  %v6365_v43 = vld [vmem:[%s10718_s0 + $0x480] sm:$0xff]  ;;  %v6366_v11 = vld [vmem:[%s10718_s0 + $0x488] sm:$0xff] }
  0x50   :  { %7243 = vmatmul.mubr.msk.bf16.gmra.mxu1 %vm1377_vm0, %v1013_v62  ;;  %v786_v7 = vadd.f32 %v754_v26, %v684_v63  ;;  %v278_v61 = vadd.f32 %v246_v57, %v176_v0  ;;  %v551_v27 = vmul.f32 %v8286_v37, %v6396_v52  ;;  %v552_v8 = vmul.f32 %v8286_v37, %v6397_v53  ;;  %v38_v37 = vld [vmem:[%s10718_s0 + $0x80] sm:$0xff] }
  0x51   :  { %v887_v10 = vadd.f32 %v855_v22, %v785_v2  ;;  %v379_v13 = vadd.f32 %v347_v16, %v277_v3  ;;  %v653_v12 = vmul.f32 %v8299_v44, %v6429_v56  ;;  %v654_v15 = vmul.f32 %v8299_v44, %v6430_v59  ;;  %v6267_v44 = vld [vmem:[%s10718_s0 + $0x188] sm:$0xff]  ;;  %v8950_v48 = vld [vmem:[%s10722_s4 + $0x3] ss:$0 sm:$0xff]  ;;  %v8966_v0 = vld [vmem:[%s10722_s4 + $0x4] ss:$0 sm:$0xff] }
  0x52   :  { %v888_v19 = vadd.f32 %v856_v32, %v786_v7  ;;  %v380_v20 = vadd.f32 %v348_v1, %v278_v61  ;;  %v755_v14 = vmul.f32 %v8310_v47, %v6462_v58  ;;  %v756_v18 = vmul.f32 %v8310_v47, %v6463_v21  ;;  %v6299_v47 = vld [vmem:[%s10718_s0 + $0x280] sm:$0xff]  ;;  %v6399_v56 = vld [vmem:[%s10718_s0 + $0x588] sm:$0xff] }
  0x53   :  { %v924_v24 = vadd.f32 %v8398_v39, %v887_v10  ;;  %v481_v25 = vadd.f32 %v449_v4, %v379_v13  ;;  %v857_v26 = vmul.f32 %v8323_v54, %v6495_v60  ;;  %v858_v22 = vmul.f32 %v8323_v54, %v6496_v33  ;;  %v6398_v16 = vld [vmem:[%s10718_s0 + $0x580] sm:$0xff]  ;;  %v6432_v21 = vld [vmem:[%s10718_s0 + $0x688] sm:$0xff] }
  0x54   :  { %v925_v29 = vadd.f32 %v8398_v39, %v888_v19  ;;  %v482_v30 = vadd.f32 %v450_v5, %v380_v20  ;;  %v75_v32 = vmul.f32 %v8917_v31, %v38_v37  ;;  %v76_v54 = vmul.f32 %v8917_v31, %v39_v17  ;;  %v6431_v59 = vld [vmem:[%s10718_s0 + $0x680] sm:$0xff]  ;;  %v6465_v7 = vld [vmem:[%s10718_s0 + $0x788] sm:$0xff] }
  0x55   :  { %v956_v35 = vmax.f32 %v924_v24, 0.0  ;;  %v583_v36 = vadd.f32 %v551_v27, %v481_v25  ;;  %v145_v40 = vmul.f32 %v8927_v38, %v6266_v23  ;;  %v146_v41 = vmul.f32 %v8927_v38, %v6267_v44  ;;  %v6464_v6 = vld [vmem:[%s10718_s0 + $0x780] sm:$0xff]  ;;  %v6498_v13 = vld [vmem:[%s10718_s0 + $0x888] sm:$0xff]  ;;  %v6301_v23 = vld [vmem:[%s10718_s0 + $0x290] sm:$0xff] }
  0x56   :  { %v957_v45 = vmax.f32 %v925_v29, 0.0  ;;  %v584_v46 = vadd.f32 %v552_v8, %v482_v30  ;;  %v247_v50 = vmul.f32 %v8940_v49, %v6299_v47  ;;  %v248_v51 = vmul.f32 %v8940_v49, %v6300_v28  ;;  %v6497_v61 = vld [vmem:[%s10718_s0 + $0x880] sm:$0xff]  ;;  %v9025_v47 = vld [vmem:[%s10722_s4 + $0x8] ss:$0 sm:$0xff] }
  0x57   :  { %v685_v52 = vadd.f32 %v653_v12, %v583_v36  ;;  %v177_v53 = vadd.f32 %v145_v40, %v75_v32  ;;  %v178_v55 = vadd.f32 %v146_v41, %v76_v54  ;;  %v349_v57 = vmul.f32 %v8950_v48, %v6332_v34  ;;  %v8986_v8 = vld [vmem:[%s10722_s4 + $0x5] ss:$0 sm:$0xff]  ;;  %v40_v12 = vld [vmem:[%s10718_s0 + $0x90] sm:$0xff]  ;;  %v9018_v24 = vld [vmem:[%s10722_s4 + $0x7] ss:$0 sm:$0xff] }
  0x58   :  { %v1014_v58 = vpack.c.bf16 %v957_v45, %v956_v35  ;;  %v686_v62 = vadd.f32 %v654_v15, %v584_v46  ;;  %v350_v63 = vmul.f32 %v8950_v48, %v6333_v42  ;;  %v451_v1 = vmul.f32 %v8966_v0, %v6365_v43  ;;  %v41_v15 = vld [vmem:[%s10718_s0 + $0x98] sm:$0xff]  ;;  %v7854_v34 = vld [vmem:[%s10719_s1 + $0x50] sm:$0xff]  }
  0x59   :  { %v787_v2 = vadd.f32 %v755_v14, %v685_v52  ;;  %v279_v3 = vadd.f32 %v247_v50, %v177_v53  ;;  %v280_v4 = vadd.f32 %v248_v51, %v178_v55  ;;  %v452_v5 = vmul.f32 %v8966_v0, %v6366_v11  ;;  %v6268_v14 = vld [vmem:[%s10718_s0 + $0x190] sm:$0xff]  ;;  %v7855_v43 = vld [vmem:[%s10719_s1 + $0x58] sm:$0xff]   ;;  %7214 = vmatprep.mubr.bf16.mxu0 %v7854_v34 }
  0x5a   :  { %7246 = vmatprep.mubr.msk.bf16.mxu1 %vm1377_vm0, %v1014_v58  ;;  %v788_v27 = vadd.f32 %v756_v18, %v686_v62  ;;  %v553_v60 = vmul.f32 %v8986_v8, %v6398_v16  ;;  %v554_v33 = vmul.f32 %v8986_v8, %v6399_v56  ;;  %v655_v10 = vmul.f32 %v8993_v9, %v6431_v59  ;;  %v6269_v18 = vld [vmem:[%s10718_s0 + $0x198] sm:$0xff]  ;;  %v6334_v42 = vld [vmem:[%s10718_s0 + $0x390] sm:$0xff] }
  0x5b   :  { %v889_v37 = vadd.f32 %v857_v26, %v787_v2  ;;  %v381_v17 = vadd.f32 %v349_v57, %v279_v3  ;;  %v382_v19 = vadd.f32 %v350_v63, %v280_v4  ;;  %v656_v20 = vmul.f32 %v8993_v9, %v6432_v21  ;;  %v6367_v11 = vld [vmem:[%s10718_s0 + $0x490] sm:$0xff]  ;;  %v6368_v16 = vld [vmem:[%s10718_s0 + $0x498] sm:$0xff]  ;;  %7215 = vmatmul.mubr.bf16.gmra.mxu0 %v7855_v43 }
  0x5c   :  { %v890_v44 = vadd.f32 %v858_v22, %v788_v27  ;;  %v757_v25 = vmul.f32 %v9018_v24, %v6464_v6  ;;  %v758_v26 = vmul.f32 %v9018_v24, %v6465_v7  ;;  %v859_v28 = vmul.f32 %v9025_v47, %v6497_v61  ;;  %v6302_v22 = vld [vmem:[%s10718_s0 + $0x298] sm:$0xff]  ;;  %v6400_v63 = vld [vmem:[%s10718_s0 + $0x590] sm:$0xff] }
  0x5d   :  { %v926_v29 = vadd.f32 %v8398_v39, %v889_v37  ;;  %v483_v30 = vadd.f32 %v451_v1, %v381_v17  ;;  %v484_v32 = vadd.f32 %v452_v5, %v382_v19  ;;  %v860_v54 = vmul.f32 %v9025_v47, %v6498_v13  ;;  %v6401_v1 = vld [vmem:[%s10718_s0 + $0x598] sm:$0xff]  ;;  %v6433_v21 = vld [vmem:[%s10718_s0 + $0x690] sm:$0xff] }
  0x5e   :  { %v927_v35 = vadd.f32 %v8398_v39, %v890_v44  ;;  %v77_v36 = vmul.f32 %v8917_v31, %v40_v12  ;;  %v78_v40 = vmul.f32 %v8917_v31, %v41_v15  ;;  %v147_v41 = vmul.f32 %v8927_v38, %v6268_v14  ;;  %v6335_v39 = vld [vmem:[%s10718_s0 + $0x398] sm:$0xff]  ;;  %v6499_v13 = vld [vmem:[%s10718_s0 + $0x890] sm:$0xff]  ;;  %v42_v44 = vld [vmem:[%s10718_s0 + $0xa0] sm:$0xff] }
  0x5f   :  { %v958_v45 = vmax.f32 %v926_v29, 0.0  ;;  %v585_v46 = vadd.f32 %v553_v60, %v483_v30  ;;  %v586_v50 = vadd.f32 %v554_v33, %v484_v32  ;;  %v148_v51 = vmul.f32 %v8927_v38, %v6269_v18  ;;  %v6434_v6 = vld [vmem:[%s10718_s0 + $0x698] sm:$0xff]  ;;  %v6466_v33 = vld [vmem:[%s10718_s0 + $0x790] sm:$0xff]  ;;  %v6271_v32 = vld [vmem:[%s10718_s0 + $0x1a8] sm:$0xff] }
  0x60   :  { %v959_v52 = vmax.f32 %v927_v35, 0.0  ;;  %v179_v53 = vadd.f32 %v147_v41, %v77_v36  ;;  %v249_v55 = vmul.f32 %v8940_v49, %v6301_v23  ;;  %v250_v57 = vmul.f32 %v8940_v49, %v6302_v22  ;;  %v6500_v19 = vld [vmem:[%s10718_s0 + $0x898] sm:$0xff]  ;;  %v6303_v41 = vld [vmem:[%s10718_s0 + $0x2a0] sm:$0xff] }
  0x61   :  { %v687_v56 = vadd.f32 %v655_v10, %v585_v46  ;;  %v688_v59 = vadd.f32 %v656_v20, %v586_v50  ;;  %v180_v58 = vadd.f32 %v148_v51, %v78_v40  ;;  %v351_v62 = vmul.f32 %v8950_v48, %v6334_v42  ;;  %v6467_v10 = vld [vmem:[%s10718_s0 + $0x798] sm:$0xff]  ;;  %v6304_v42 = vld [vmem:[%s10718_s0 + $0x2a8] sm:$0xff]  ;;  %v6336_v51 = vld [vmem:[%s10718_s0 + $0x3a0] sm:$0xff] }
  0x62   :  { %v1015_v2 = vpack.c.bf16 %v959_v52, %v958_v45  ;;  %v281_v3 = vadd.f32 %v249_v55, %v179_v53  ;;  %v352_v4 = vmul.f32 %v8950_v48, %v6335_v39  ;;  %v453_v5 = vmul.f32 %v8966_v0, %v6367_v11  ;;  %v6337_v39 = vld [vmem:[%s10718_s0 + $0x3a8] sm:$0xff]  ;;  %v6369_v11 = vld [vmem:[%s10718_s0 + $0x4a0] sm:$0xff] }
  0x63   :  { %v789_v7 = vadd.f32 %v757_v25, %v687_v56  ;;  %v790_v61 = vadd.f32 %v758_v26, %v688_v59  ;;  %v282_v27 = vadd.f32 %v250_v57, %v180_v58  ;;  %v454_v60 = vmul.f32 %v8966_v0, %v6368_v16  ;;  %v43_v25 = vld [vmem:[%s10718_s0 + $0xa8] sm:$0xff]  ;;  %v6270_v26 = vld [vmem:[%s10718_s0 + $0x1a0] sm:$0xff] }
  0x64   :  { %7247 = vmatmul.mubr.msk.bf16.gmra.mxu1 %vm1377_vm0, %v1015_v2  ;;  %v383_v12 = vadd.f32 %v351_v62, %v281_v3  ;;  %v555_v15 = vmul.f32 %v8986_v8, %v6400_v63  ;;  %v556_v37 = vmul.f32 %v8986_v8, %v6401_v1  ;;  %v657_v17 = vmul.f32 %v8993_v9, %v6433_v21  ;;  %v6370_v16 = vld [vmem:[%s10718_s0 + $0x4a8] sm:$0xff]  ;;  %v6402_v56 = vld [vmem:[%s10718_s0 + $0x5a0] sm:$0xff] }
  0x65   :  { %v891_v20 = vadd.f32 %v859_v28, %v789_v7  ;;  %v892_v14 = vadd.f32 %v860_v54, %v790_v61  ;;  %v384_v18 = vadd.f32 %v352_v4, %v282_v27  ;;  %v658_v23 = vmul.f32 %v8993_v9, %v6434_v6  ;;  %v9109_v54 = vld [vmem:[%s10722_s4 + $0x10] ss:$0 sm:$0xff]  ;;  %v6403_v59 = vld [vmem:[%s10718_s0 + $0x5a8] sm:$0xff]  ;;  %v6435_v21 = vld [vmem:[%s10718_s0 + $0x6a0] sm:$0xff] }
  0x66   :  { %v485_v22 = vadd.f32 %v453_v5, %v383_v12  ;;  %v759_v29 = vmul.f32 %v9018_v24, %v6466_v33  ;;  %v760_v28 = vmul.f32 %v9018_v24, %v6467_v10  ;;  %v861_v30 = vmul.f32 %v9025_v47, %v6499_v13  ;;  %v7856_v6 = vld [vmem:[%s10719_s1 + $0x60] sm:$0xff]   ;;  %v6436_v33 = vld [vmem:[%s10718_s0 + $0x6a8] sm:$0xff] }
  0x67   :  { %v928_v34 = vadd.f32 %v9109_v54, %v891_v20  ;;  %v929_v35 = vadd.f32 %v9109_v54, %v892_v14  ;;  %v486_v36 = vadd.f32 %v454_v60, %v384_v18  ;;  %v862_v40 = vmul.f32 %v9025_v47, %v6500_v19  ;;  %v6468_v10 = vld [vmem:[%s10718_s0 + $0x7a0] sm:$0xff]  ;;  %v7857_v13 = vld [vmem:[%s10719_s1 + $0x68] sm:$0xff]   ;;  %7218 = vmatprep.mubr.bf16.mxu0 %v7856_v6  ;;  %v6405_v6 = vld [vmem:[%s10718_s0 + $0x5b8] sm:$0xff] }
  0x68   :  { %v587_v43 = vadd.f32 %v555_v15, %v485_v22  ;;  %v79_v45 = vmul.f32 %v8917_v31, %v42_v44  ;;  %v80_v46 = vmul.f32 %v8917_v31, %v43_v25  ;;  %v149_v50 = vmul.f32 %v8927_v38, %v6270_v26  ;;  %v6469_v19 = vld [vmem:[%s10718_s0 + $0x7a8] sm:$0xff]  ;;  %v6501_v20 = vld [vmem:[%s10718_s0 + $0x8a0] sm:$0xff]  ;;  %v44_v26 = vld [vmem:[%s10718_s0 + $0xb0] sm:$0xff]  ;;  %7219 = vmatmul.mubr.bf16.gmra.mxu0 %v7857_v13 }
  0x69   :  { %v960_v52 = vmax.f32 %v928_v34, 0.0  ;;  %v961_v53 = vmax.f32 %v929_v35, 0.0  ;;  %v588_v55 = vadd.f32 %v556_v37, %v486_v36  ;;  %v150_v57 = vmul.f32 %v8927_v38, %v6271_v32  ;;  %v6502_v25 = vld [vmem:[%s10718_s0 + $0x8a8] sm:$0xff]  ;;  %v45_v32 = vld [vmem:[%s10718_s0 + $0xb8] sm:$0xff]  ;;  %v6272_v34 = vld [vmem:[%s10718_s0 + $0x1b0] sm:$0xff] }
  0x6a   :  { %v689_v58 = vadd.f32 %v657_v17, %v587_v43  ;;  %v181_v62 = vadd.f32 %v149_v50, %v79_v45  ;;  %v251_v63 = vmul.f32 %v8940_v49, %v6303_v41  ;;  %v252_v1 = vmul.f32 %v8940_v49, %v6304_v42  ;;  %v6273_v42 = vld [vmem:[%s10718_s0 + $0x1b8] sm:$0xff]  ;;  %v6305_v43 = vld [vmem:[%s10718_s0 + $0x2b0] sm:$0xff] }
  0x6b   :  { %v1016_v2 = vpack.c.bf16 %v961_v53, %v960_v52  ;;  %v690_v3 = vadd.f32 %v658_v23, %v588_v55  ;;  %v182_v4 = vadd.f32 %v150_v57, %v80_v46  ;;  %v353_v5 = vmul.f32 %v8950_v48, %v6336_v51  ;;  %v6470_v13 = vld [vmem:[%s10718_s0 + $0x7b0] sm:$0xff] }
  0x6c   :  { %v791_v7 = vadd.f32 %v759_v29, %v689_v58  ;;  %v283_v61 = vadd.f32 %v251_v63, %v181_v62  ;;  %v354_v27 = vmul.f32 %v8950_v48, %v6337_v39  ;;  %v455_v60 = vmul.f32 %v8966_v0, %v6369_v11  ;;  %v6306_v39 = vld [vmem:[%s10718_s0 + $0x2b8] sm:$0xff]  ;;  %v6338_v11 = vld [vmem:[%s10718_s0 + $0x3b0] sm:$0xff] }
  0x6d   :  { %7250 = vmatprep.mubr.msk.bf16.mxu1 %vm1377_vm0, %v1016_v2  ;;  %v792_v12 = vadd.f32 %v760_v28, %v690_v3  ;;  %v284_v15 = vadd.f32 %v252_v1, %v182_v4  ;;  %v456_v37 = vmul.f32 %v8966_v0, %v6370_v16  ;;  %v557_v17 = vmul.f32 %v8986_v8, %v6402_v56  ;;  %v6339_v16 = vld [vmem:[%s10718_s0 + $0x3b8] sm:$0xff]  ;;  %v6371_v63 = vld [vmem:[%s10718_s0 + $0x4b0] sm:$0xff] }
  0x6e   :  { %v893_v14 = vadd.f32 %v861_v30, %v791_v7  ;;  %v385_v18 = vadd.f32 %v353_v5, %v283_v61  ;;  %v558_v23 = vmul.f32 %v8986_v8, %v6403_v59  ;;  %v659_v44 = vmul.f32 %v8993_v9, %v6435_v21  ;;  %v6372_v1 = vld [vmem:[%s10718_s0 + $0x4b8] sm:$0xff]  ;;  %v6404_v5 = vld [vmem:[%s10718_s0 + $0x5b0] sm:$0xff] }
  0x6f   :  { %v894_v22 = vadd.f32 %v862_v40, %v792_v12  ;;  %v386_v29 = vadd.f32 %v354_v27, %v284_v15  ;;  %v660_v28 = vmul.f32 %v8993_v9, %v6436_v33  ;;  %v761_v30 = vmul.f32 %v9018_v24, %v6468_v10  ;;  %v6437_v7 = vld [vmem:[%s10718_s0 + $0x6b0] sm:$0xff]  ;;  %v6438_v10 = vld [vmem:[%s10718_s0 + $0x6b8] sm:$0xff] }
  0x70   :  { %v930_v35 = vadd.f32 %v9109_v54, %v893_v14  ;;  %v487_v36 = vadd.f32 %v455_v60, %v385_v18  ;;  %v762_v41 = vmul.f32 %v9018_v24, %v6469_v19  ;;  %v863_v40 = vmul.f32 %v9025_v47, %v6501_v20  ;;  %v6471_v12 = vld [vmem:[%s10718_s0 + $0x7b8] sm:$0xff]  ;;  %v6503_v20 = vld [vmem:[%s10718_s0 + $0x8b0] sm:$0xff]  ;;  %v46_v18 = vld [vmem:[%s10718_s0 + $0xc0] sm:$0xff] }
  0x71   :  { %v931_v45 = vadd.f32 %v9109_v54, %v894_v22  ;;  %v488_v46 = vadd.f32 %v456_v37, %v386_v29  ;;  %v864_v50 = vmul.f32 %v9025_v47, %v6502_v25  ;;  %v81_v51 = vmul.f32 %v8917_v31, %v44_v26  ;;  %v6504_v14 = vld [vmem:[%s10718_s0 + $0x8b8] sm:$0xff]  ;;  %v47_v22 = vld [vmem:[%s10718_s0 + $0xc8] sm:$0xff]  ;;  %v6274_v29 = vld [vmem:[%s10718_s0 + $0x1c0] sm:$0xff] }
  0x72   :  { %v962_v52 = vmax.f32 %v930_v35, 0.0  ;;  %v589_v53 = vadd.f32 %v557_v17, %v487_v36  ;;  %v82_v55 = vmul.f32 %v8917_v31, %v45_v32  ;;  %v151_v57 = vmul.f32 %v8927_v38, %v6272_v34  ;;  %v6307_v36 = vld [vmem:[%s10718_s0 + $0x2c0] sm:$0xff] }
  0x73   :  { %v963_v56 = vmax.f32 %v931_v45, 0.0  ;;  %v590_v59 = vadd.f32 %v558_v23, %v488_v46  ;;  %v152_v58 = vmul.f32 %v8927_v38, %v6273_v42  ;;  %v253_v62 = vmul.f32 %v8940_v49, %v6305_v43 }
  0x74   :  { %v691_v21 = vadd.f32 %v659_v44, %v589_v53  ;;  %v183_v2 = vadd.f32 %v151_v57, %v81_v51  ;;  %v254_v3 = vmul.f32 %v8940_v49, %v6306_v39  ;;  %v355_v4 = vmul.f32 %v8950_v48, %v6338_v11  ;;  %v7858_v51 = vld [vmem:[%s10719_s1 + $0x70] sm:$0xff]   ;;  %v6341_v53 = vld [vmem:[%s10718_s0 + $0x3c8] sm:$0xff]  ;;  %v7859_v57 = vld [vmem:[%s10719_s1 + $0x78] sm:$0xff]  }
  0x75   :  { %v1017_v61 = vpack.c.bf16 %v963_v56, %v962_v52  ;;  %v692_v27 = vadd.f32 %v660_v28, %v590_v59  ;;  %v184_v60 = vadd.f32 %v152_v58, %v82_v55  ;;  %v356_v33 = vmul.f32 %v8950_v48, %v6339_v16  ;;  %v6275_v28 = vld [vmem:[%s10718_s0 + $0x1c8] sm:$0xff]  ;;  %v6373_v55 = vld [vmem:[%s10718_s0 + $0x4c0] sm:$0xff]  ;;  %7222 = vmatprep.mubr.bf16.mxu0 %v7858_v51 }
  0x76   :  { %v793_v15 = vadd.f32 %v761_v30, %v691_v21  ;;  %v285_v37 = vadd.f32 %v253_v62, %v183_v2  ;;  %v457_v17 = vmul.f32 %v8966_v0, %v6371_v63  ;;  %v458_v19 = vmul.f32 %v8966_v0, %v6372_v1  ;;  %v6374_v62 = vld [vmem:[%s10718_s0 + $0x4c8] sm:$0xff]  ;;  %7223 = vmatmul.mubr.bf16.gmra.mxu0 %v7859_v57  ;;  %v7866_v51 = vld [vmem:[%s10721_s3 + $0x80] sm:$0xff]   ;;  %v6310_v57 = vld [vmem:[%s10718_s0 + $0x2d8] sm:$0xff] }
  0x77   :  { %7251 = vmatmul.mubr.msk.bf16.gmra.mxu1 %vm1377_vm0, %v1017_v61  ;;  %v794_v23 = vadd.f32 %v762_v41, %v692_v27  ;;  %v286_v44 = vadd.f32 %v254_v3, %v184_v60  ;;  %v559_v25 = vmul.f32 %v8986_v8, %v6404_v5  ;;  %v560_v26 = vmul.f32 %v8986_v8, %v6405_v6  ;;  %v6308_v41 = vld [vmem:[%s10718_s0 + $0x2c8] sm:$0xff]  ;;  %v6439_v6 = vld [vmem:[%s10718_s0 + $0x6c0] sm:$0xff] }
  0x78   :  { %v895_v30 = vadd.f32 %v863_v40, %v793_v15  ;;  %v387_v32 = vadd.f32 %v355_v4, %v285_v37  ;;  %v661_v34 = vmul.f32 %v8993_v9, %v6437_v7  ;;  %v662_v35 = vmul.f32 %v8993_v9, %v6438_v10  ;;  %v6340_v40 = vld [vmem:[%s10718_s0 + $0x3c0] sm:$0xff]  ;;  %v7860_v63 = vld [vmem:[%s10721_s3 + $0xc8] sm:$0xff]  }
  0x79   :  { %v896_v42 = vadd.f32 %v864_v50, %v794_v23  ;;  %v388_v43 = vadd.f32 %v356_v33, %v286_v44  ;;  %v763_v45 = vmul.f32 %v9018_v24, %v6470_v13  ;;  %v764_v46 = vmul.f32 %v9018_v24, %v6471_v12  ;;  %v6406_v4 = vld [vmem:[%s10718_s0 + $0x5c0] sm:$0xff]  ;;  %v6407_v5 = vld [vmem:[%s10718_s0 + $0x5c8] sm:$0xff]  ;;  %7266 = vmatprep.subr.bf16.mxu1 %v7860_v63 }
  0x7a   :  { %v932_v39 = vadd.f32 %v9109_v54, %v895_v30  ;;  %v489_v11 = vadd.f32 %v457_v17, %v387_v32  ;;  %v865_v52 = vmul.f32 %v9025_v47, %v6503_v20  ;;  %v9281_v50 = vmul.f32 %v9025_v47, %v6504_v14  ;;  %v7861_v7 = vld [vmem:[%s10721_s3 + $0xc0] sm:$0xff]   ;;  %v6440_v10 = vld [vmem:[%s10718_s0 + $0x6c8] sm:$0xff]  ;;  %7267 = vmatpush3.bf16.msra.mxu1 %v7860_v63  ;;  %v48_v32 = vld [vmem:[%s10718_s0 + $0xd0] sm:$0xff] }
  0x7b   :  { %v933_v16 = vadd.f32 %v9109_v54, %v896_v42  ;;  %v490_v56 = vadd.f32 %v458_v19, %v388_v43  ;;  %v83_v59 = vmul.f32 %v8917_v31, %v46_v18  ;;  %v84_v58 = vmul.f32 %v8917_v31, %v47_v22  ;;  %v7862_v13 = vld [vmem:[%s10721_s3 + $0x88] sm:$0xff]   ;;  %v6472_v19 = vld [vmem:[%s10718_s0 + $0x7c0] sm:$0xff]  ;;  %7268 = vmatprep.subr.bf16.mxu1 %v7861_v7 }
  0x7c   :  { %v964_v1 = vmax.f32 %v932_v39, 0.0  ;;  %v591_v21 = vadd.f32 %v559_v25, %v489_v11  ;;  %v153_v2 = vmul.f32 %v8927_v38, %v6274_v29  ;;  %v154_v3 = vmul.f32 %v8927_v38, %v6275_v28  ;;  %v6473_v20 = vld [vmem:[%s10718_s0 + $0x7c8] sm:$0xff]  ;;  %v6505_v14 = vld [vmem:[%s10718_s0 + $0x8c0] sm:$0xff]  ;;  %7314 = vmatprep.subr.bf16.mxu0 %v7862_v13 }
  0x7d   :  { %v965_v61 = vmax.f32 %v933_v16, 0.0  ;;  %v592_v27 = vadd.f32 %v560_v26, %v490_v56  ;;  %v255_v60 = vmul.f32 %v8940_v49, %v6307_v36  ;;  %v256_v33 = vmul.f32 %v8940_v49, %v6308_v41  ;;  %v6506_v26 = vld [vmem:[%s10718_s0 + $0x8c8] sm:$0xff]  ;;  %v7863_v36 = vld [vmem:[%s10721_s3 + $0xb8] sm:$0xff]   ;;  %7315 = vmatpush3.bf16.msra.mxu0 %v7862_v13 }
  0x7e   :  { %v693_v12 = vadd.f32 %v661_v34, %v591_v21  ;;  %v185_v15 = vadd.f32 %v153_v2, %v83_v59  ;;  %v186_v37 = vadd.f32 %v154_v3, %v84_v58  ;;  %v357_v17 = vmul.f32 %v8950_v48, %v6340_v40  ;;  %v49_v34 = vld [vmem:[%s10718_s0 + $0xd8] sm:$0xff]  ;;  %7269 = vmatpush3.bf16.msra.mxu1 %v7861_v7  ;;  %v6342_v58 = vld [vmem:[%s10718_s0 + $0x3d0] sm:$0xff] }
  0x7f   :  { %v1018_v18 = vpack.c.bf16 %v965_v61, %v964_v1  ;;  %v694_v23 = vadd.f32 %v662_v35, %v592_v27  ;;  %v358_v44 = vmul.f32 %v8950_v48, %v6341_v53  ;;  %v459_v25 = vmul.f32 %v8966_v0, %v6373_v55  ;;  %v6276_v35 = vld [vmem:[%s10718_s0 + $0x1d0] sm:$0xff]  ;;  %v6277_v40 = vld [vmem:[%s10718_s0 + $0x1d8] sm:$0xff]  ;;  %7270 = vmatprep.subr.bf16.mxu1 %v7863_v36 }
  0x80   :  { %v795_v22 = vadd.f32 %v763_v45, %v693_v12  ;;  %v287_v29 = vadd.f32 %v255_v60, %v185_v15  ;;  %v288_v28 = vadd.f32 %v256_v33, %v186_v37  ;;  %v460_v30 = vmul.f32 %v8966_v0, %v6374_v62  ;;  %v7864_v62 = vld [vmem:[%s10721_s3 + $0xb0] sm:$0xff]   ;;  %v6343_v2 = vld [vmem:[%s10718_s0 + $0x3d8] sm:$0xff]  ;;  %7316 = vmatprep.subr.bf16.mxu0 %v7866_v51 }
  0x81   :  { %7254 = vmatprep.mubr.msk.bf16.mxu1 %vm1377_vm0, %v1018_v18  ;;  %v796_v41 = vadd.f32 %v764_v46, %v694_v23  ;;  %v561_v42 = vmul.f32 %v8986_v8, %v6406_v4  ;;  %v562_v43 = vmul.f32 %v8986_v8, %v6407_v5  ;;  %v663_v45 = vmul.f32 %v8993_v9, %v6439_v6  ;;  %v6309_v46 = vld [vmem:[%s10718_s0 + $0x2d0] sm:$0xff]  ;;  %v9391_v4 = vld [vmem:[%s10721_s3 + $0x78] sm:$0xff]   ;;  %v7865_v23 = vld [vmem:[%s10721_s3 + $0xa8] sm:$0xff]  }
  0x82   :  { %v897_v39 = vadd.f32 %v865_v52, %v795_v22  ;;  %v389_v11 = vadd.f32 %v357_v17, %v287_v29  ;;  %v390_v53 = vadd.f32 %v358_v44, %v288_v28  ;;  %v664_v55 = vmul.f32 %v8993_v9, %v6440_v10  ;;  %v6375_v3 = vld [vmem:[%s10718_s0 + $0x4d0] sm:$0xff]  ;;  %v6376_v27 = vld [vmem:[%s10718_s0 + $0x4d8] sm:$0xff]  ;;  %7271 = vmatpush3.bf16.msra.mxu1 %v7863_v36 }
  0x83   :  { %v898_v16 = vadd.f32 %v9281_v50, %v796_v41  ;;  %v765_v56 = vmul.f32 %v9018_v24, %v6472_v19  ;;  %v766_v59 = vmul.f32 %v9018_v24, %v6473_v20  ;;  %v9372_v52 = vmul.f32 %v9025_v47, %v6505_v14  ;;  %v6408_v12 = vld [vmem:[%s10718_s0 + $0x5d0] sm:$0xff]  ;;  %v6409_v15 = vld [vmem:[%s10718_s0 + $0x5d8] sm:$0xff]  ;;  %7272 = vmatprep.subr.bf16.mxu1 %v7864_v62 }
  0x84   :  { %v934_v63 = vadd.f32 %v9109_v54, %v897_v39  ;;  %v491_v1 = vadd.f32 %v459_v25, %v389_v11  ;;  %v492_v50 = vadd.f32 %v460_v30, %v390_v53  ;;  %v868_v21 = vmul.f32 %v9025_v47, %v6506_v26  ;;  %v6441_v37 = vld [vmem:[%s10718_s0 + $0x6d0] sm:$0xff]  ;;  %v6442_v18 = vld [vmem:[%s10718_s0 + $0x6d8] sm:$0xff]  ;;  %7317 = vmatpush3.bf16.msra.mxu0 %v7866_v51  ;;  %v50_v39 = vld [vmem:[%s10718_s0 + $0xe0] sm:$0xff] }
  0x85   :  { %v935_v5 = vadd.f32 %v9109_v54, %v898_v16  ;;  %v85_v6 = vmul.f32 %v8917_v31, %v48_v32  ;;  %v86_v7 = vmul.f32 %v8917_v31, %v49_v34  ;;  %v155_v61 = vmul.f32 %v8927_v38, %v6276_v35  ;;  %v6474_v29 = vld [vmem:[%s10718_s0 + $0x7d0] sm:$0xff]  ;;  %v6475_v28 = vld [vmem:[%s10718_s0 + $0x7d8] sm:$0xff]  ;;  %7318 = vmatprep.subr.bf16.mxu0 %v9391_v4  ;;  %v51_v11 = vld [vmem:[%s10718_s0 + $0xe8] sm:$0xff] }
  0x86   :  { %v966_v60 = vmax.f32 %v934_v63, 0.0  ;;  %v593_v33 = vadd.f32 %v561_v42, %v491_v1  ;;  %v594_v10 = vadd.f32 %v562_v43, %v492_v50  ;;  %v156_v13 = vmul.f32 %v8927_v38, %v6277_v40  ;;  %v6507_v30 = vld [vmem:[%s10718_s0 + $0x8d0] sm:$0xff]  ;;  %v6508_v41 = vld [vmem:[%s10718_s0 + $0x8d8] sm:$0xff]  ;;  %v9437_v42 = vld [vmem:[%s10721_s3 + $0xa0] sm:$0xff]   ;;  %7273 = vmatpush3.bf16.msra.mxu1 %v7864_v62 }
  0x87   :  { %v967_v17 = vmax.f32 %v935_v5, 0.0  ;;  %v187_v19 = vadd.f32 %v155_v61, %v85_v6  ;;  %v257_v20 = vmul.f32 %v8940_v49, %v6309_v46  ;;  %v258_v14 = vmul.f32 %v8940_v49, %v6310_v57  ;;  %v6278_v53 = vld [vmem:[%s10718_s0 + $0x1e0] sm:$0xff]  ;;  %7274 = vmatprep.subr.bf16.mxu1 %v7865_v23 }
  0x88   :  { %v695_v44 = vadd.f32 %v663_v45, %v593_v33  ;;  %v696_v25 = vadd.f32 %v664_v55, %v594_v10  ;;  %v188_v26 = vadd.f32 %v156_v13, %v86_v7  ;;  %v359_v22 = vmul.f32 %v8950_v48, %v6342_v58  ;;  %v7870_v55 = vld [vmem:[%s10721_s3 + $0x70] sm:$0xff]   ;;  %v6311_v50 = vld [vmem:[%s10718_s0 + $0x2e0] sm:$0xff]  ;;  %7319 = vmatpush3.bf16.msra.mxu0 %v9391_v4  ;;  %v9477_v7 = vld [vmem:[%s10721_s3 + $0x98] sm:$0xff]  }
  0x89   :  { %v1019_v32 = vpack.c.bf16 %v967_v17, %v966_v60  ;;  %v289_v34 = vadd.f32 %v257_v20, %v187_v19  ;;  %v360_v35 = vmul.f32 %v8950_v48, %v6343_v2  ;;  %v461_v36 = vmul.f32 %v8966_v0, %v6375_v3  ;;  %v6312_v2 = vld [vmem:[%s10718_s0 + $0x2e8] sm:$0xff]  ;;  %v6377_v4 = vld [vmem:[%s10718_s0 + $0x4e0] sm:$0xff]  ;;  %7320 = vmatprep.subr.bf16.mxu0 %v7870_v55 }
  0x8a   :  { %v797_v43 = vadd.f32 %v765_v56, %v695_v44  ;;  %v798_v45 = vadd.f32 %v766_v59, %v696_v25  ;;  %v290_v40 = vadd.f32 %v258_v14, %v188_v26  ;;  %v462_v51 = vmul.f32 %v8966_v0, %v6376_v27  ;;  %v6279_v59 = vld [vmem:[%s10718_s0 + $0x1e8] sm:$0xff]  ;;  %7275 = vmatpush3.bf16.msra.mxu1 %v7865_v23  ;;  %v6410_v19 = vld [vmem:[%s10718_s0 + $0x5e0] sm:$0xff] }
  0x8b   :  { %7255 = vmatmul.mubr.msk.bf16.gmra.mxu1 %vm1377_vm0, %v1019_v32  ;;  %v391_v46 = vadd.f32 %v359_v22, %v289_v34  ;;  %v563_v57 = vmul.f32 %v8986_v8, %v6408_v12  ;;  %v564_v16 = vmul.f32 %v8986_v8, %v6409_v15  ;;  %v665_v56 = vmul.f32 %v8993_v9, %v6441_v37  ;;  %v6345_v10 = vld [vmem:[%s10718_s0 + $0x3e8] sm:$0xff]  ;;  %v6443_v25 = vld [vmem:[%s10718_s0 + $0x6e0] sm:$0xff] }
  0x8c   :  { %v899_v58 = vadd.f32 %v9372_v52, %v797_v43  ;;  %v900_v62 = vadd.f32 %v868_v21, %v798_v45  ;;  %v392_v63 = vadd.f32 %v360_v35, %v290_v40  ;;  %v666_v1 = vmul.f32 %v8993_v9, %v6442_v18  ;;  %v6344_v21 = vld [vmem:[%s10718_s0 + $0x3e0] sm:$0xff]  ;;  %v6378_v17 = vld [vmem:[%s10718_s0 + $0x4e8] sm:$0xff]  ;;  %7276 = vmatprep.subr.bf16.mxu1 %v9437_v42  ;;  %v7871_v43 = vld [vmem:[%s10721_s3 + $0x90] sm:$0xff]  }
  0x8d   :  { %v493_v3 = vadd.f32 %v461_v36, %v391_v46  ;;  %v767_v5 = vmul.f32 %v9018_v24, %v6474_v29  ;;  %v768_v6 = vmul.f32 %v9018_v24, %v6475_v28  ;;  %v869_v52 = vmul.f32 %v9025_v47, %v6507_v30  ;;  %v9501_v20 = vld [vmem:[%s10721_s3 + $0x68] sm:$0xff]   ;;  %7321 = vmatpush3.bf16.msra.mxu0 %v7870_v55 }
  0x8e   :  { %v936_v61 = vadd.f32 %v9109_v54, %v899_v58  ;;  %v937_v27 = vadd.f32 %v9109_v54, %v900_v62  ;;  %v494_v60 = vadd.f32 %v462_v51, %v392_v63  ;;  %v870_v33 = vmul.f32 %v9025_v47, %v6508_v41  ;;  %v6411_v44 = vld [vmem:[%s10718_s0 + $0x5e8] sm:$0xff]  ;;  %7277 = vmatpush3.bf16.msra.mxu1 %v9437_v42  ;;  %v7873_v42 = vld [vmem:[%s10721_s3 + $0x60] sm:$0xff]  }
  0x8f   :  { %v595_v13 = vadd.f32 %v563_v57, %v493_v3  ;;  %v87_v12 = vmul.f32 %v8917_v31, %v50_v39  ;;  %v88_v15 = vmul.f32 %v8917_v31, %v51_v11  ;;  %v157_v37 = vmul.f32 %v8927_v38, %v6278_v53  ;;  %v6444_v30 = vld [vmem:[%s10718_s0 + $0x6e8] sm:$0xff]  ;;  %v52_v53 = vld [vmem:[%s10718_s0 + $0xf0] sm:$0xff]  ;;  %7278 = vmatprep.subr.bf16.mxu1 %v9477_v7 }
  0x90   :  { %v968_v14 = vmax.f32 %v936_v61, 0.0  ;;  %v969_v18 = vmax.f32 %v937_v27, 0.0  ;;  %v596_v31 = vadd.f32 %v564_v16, %v494_v60  ;;  %v158_v23 = vmul.f32 %v8927_v38, %v6279_v59  ;;  %v6476_v38 = vld [vmem:[%s10718_s0 + $0x7e0] sm:$0xff]  ;;  %v6477_v41 = vld [vmem:[%s10718_s0 + $0x7e8] sm:$0xff]  ;;  %v53_v16 = vld [vmem:[%s10718_s0 + $0xf8] sm:$0xff]  ;;  %7322 = vmatprep.subr.bf16.mxu0 %v9501_v20 }
  0x91   :  { %v697_v26 = vadd.f32 %v665_v56, %v595_v13  ;;  %v189_v22 = vadd.f32 %v157_v37, %v87_v12  ;;  %v259_v29 = vmul.f32 %v8940_v49, %v6311_v50  ;;  %v260_v28 = vmul.f32 %v8940_v49, %v6312_v2  ;;  %v6509_v49 = vld [vmem:[%s10718_s0 + $0x8e0] sm:$0xff]  ;;  %v6510_v11 = vld [vmem:[%s10718_s0 + $0x8e8] sm:$0xff]  ;;  %v6280_v56 = vld [vmem:[%s10718_s0 + $0x1f0] sm:$0xff]  ;;  %7323 = vmatpush3.bf16.msra.mxu0 %v9501_v20 }
  0x92   :  { %v1020_v32 = vpack.c.bf16 %v969_v18, %v968_v14  ;;  %v698_v34 = vadd.f32 %v666_v1, %v596_v31  ;;  %v190_v35 = vadd.f32 %v158_v23, %v88_v15  ;;  %v361_v36 = vmul.f32 %v8950_v48, %v6344_v21  ;;  %v6313_v1 = vld [vmem:[%s10718_s0 + $0x2f0] sm:$0xff]  ;;  %7279 = vmatpush3.bf16.msra.mxu1 %v9477_v7  ;;  %v8100_v7 = vld [vmem:[%s10722_s4] ss:$0 sm:$0xff]  ;;  %v8101_v37 = vld [vmem:[%s10722_s4 + $0x1] ss:$0 sm:$0xff] }
  0x93   :  { %v799_v45 = vadd.f32 %v767_v5, %v697_v26  ;;  %v291_v40 = vadd.f32 %v259_v29, %v189_v22  ;;  %v362_v51 = vmul.f32 %v8950_v48, %v6345_v10  ;;  %v463_v39 = vmul.f32 %v8966_v0, %v6377_v4  ;;  %7280 = vmatprep.subr.bf16.mxu1 %v7871_v43  ;;  %v8102_v20 = vld [vmem:[%s10722_s4 + $0x2] ss:$0 sm:$0xff]  ;;  %v6412_v23 = vld [vmem:[%s10718_s0 + $0x5f0] sm:$0xff]  ;;  %v8103_v22 = vld [vmem:[%s10722_s4 + $0x3] ss:$0 sm:$0xff] }
  0x94   :  { %7258 = vmatprep.mubr.msk.bf16.mxu1 %vm1377_vm0, %v1020_v32  ;;  %v800_v55 = vadd.f32 %v768_v6, %v698_v34  ;;  %v292_v48 = vadd.f32 %v260_v28, %v190_v35  ;;  %v464_v46 = vmul.f32 %v8966_v0, %v6378_v17  ;;  %v565_v57 = vmul.f32 %v8986_v8, %v6410_v19  ;;  %v6281_v0 = vld [vmem:[%s10718_s0 + $0x1f8] sm:$0xff]  ;;  %v6346_v6 = vld [vmem:[%s10718_s0 + $0x3f0] sm:$0xff] }
  0x95   :  { %v901_v59 = vadd.f32 %v869_v52, %v799_v45  ;;  %v393_v58 = vadd.f32 %v361_v36, %v291_v40  ;;  %v566_v62 = vmul.f32 %v8986_v8, %v6411_v44  ;;  %v667_v63 = vmul.f32 %v8993_v9, %v6443_v25  ;;  %v6314_v8 = vld [vmem:[%s10718_s0 + $0x2f8] sm:$0xff]  ;;  %7324 = vmatprep.subr.bf16.mxu0 %v7873_v42  ;;  %v6445_v35 = vld [vmem:[%s10718_s0 + $0x6f0] sm:$0xff] }
  0x96   :  { %v902_v50 = vadd.f32 %v870_v33, %v800_v55  ;;  %v394_v2 = vadd.f32 %v362_v51, %v292_v48  ;;  %v668_v3 = vmul.f32 %v8993_v9, %v6444_v30  ;;  %v769_v5 = vmul.f32 %v9018_v24, %v6476_v38  ;;  %v6347_v9 = vld [vmem:[%s10718_s0 + $0x3f8] sm:$0xff]  ;;  %7281 = vmatpush3.bf16.msra.mxu1 %v7871_v43  ;;  %v8105_v55 = vld [vmem:[%s10722_s4 + $0x5] ss:$0 sm:$0xff] }
  0x97   :  { %v938_v52 = vadd.f32 %v9109_v54, %v901_v59  ;;  %v495_v21 = vadd.f32 %v463_v39, %v393_v58  ;;  %v770_v61 = vmul.f32 %v9018_v24, %v6477_v41  ;;  %v871_v27 = vmul.f32 %v9025_v47, %v6509_v49  ;;  %v6379_v24 = vld [vmem:[%s10718_s0 + $0x4f0] sm:$0xff]  ;;  %v6413_v28 = vld [vmem:[%s10718_s0 + $0x5f8] sm:$0xff]  ;;  %7325 = vmatpush3.bf16.msra.mxu0 %v7873_v42  ;;  %v8104_v49 = vld [vmem:[%s10722_s4 + $0x4] ss:$0 sm:$0xff] }
  0x98   :  { %v939_v60 = vadd.f32 %v9109_v54, %v902_v50  ;;  %v496_v33 = vadd.f32 %v464_v46, %v394_v2  ;;  %v872_v10 = vmul.f32 %v9025_v47, %v6510_v11  ;;  %v89_v4 = vmul.f32 %v8100_v7, %v52_v53  ;;  %v6380_v47 = vld [vmem:[%s10718_s0 + $0x4f8] sm:$0xff]  ;;  %v6478_v11 = vld [vmem:[%s10718_s0 + $0x7f0] sm:$0xff] }
  0x99   :  { %v970_v13 = vmax.f32 %v938_v52, 0.0  ;;  %v597_v12 = vadd.f32 %v565_v57, %v495_v21  ;;  %v90_v15 = vmul.f32 %v8100_v7, %v53_v16  ;;  %v159_v17 = vmul.f32 %v8101_v37, %v6280_v56  ;;  %v6446_v45 = vld [vmem:[%s10718_s0 + $0x6f8] sm:$0xff]  ;;  %v6511_v2 = vld [vmem:[%s10718_s0 + $0x8f0] sm:$0xff] }
  0x9a   :  { %v971_v19 = vmax.f32 %v939_v60, 0.0  ;;  %v598_v14 = vadd.f32 %v566_v62, %v496_v33  ;;  %v160_v18 = vmul.f32 %v8101_v37, %v6281_v0  ;;  %v261_v31 = vmul.f32 %v8102_v20, %v6313_v1  ;;  %v6479_v46 = vld [vmem:[%s10718_s0 + $0x7f8] sm:$0xff]  ;;  %v8106_v62 = vld [vmem:[%s10722_s4 + $0x6] ss:$0 sm:$0xff] }
  0x9b   :  { %v699_v44 = vadd.f32 %v667_v63, %v597_v12  ;;  %v191_v25 = vadd.f32 %v159_v17, %v89_v4  ;;  %v262_v26 = vmul.f32 %v8102_v20, %v6314_v8  ;;  %v363_v29 = vmul.f32 %v8103_v22, %v6346_v6  ;;  %v8107_v8 = vld [vmem:[%s10722_s4 + $0x7] ss:$0 sm:$0xff]  ;;  %v6512_v52 = vld [vmem:[%s10718_s0 + $0x8f8] sm:$0xff]  ;;  %v8111_v20 = vld [vmem:[%s10719_s1 + $0x8] sm:$0xff]  }
  0x9c   :  { %v1021_v30 = vpack.c.bf16 %v971_v19, %v970_v13  ;;  %v700_v38 = vadd.f32 %v668_v3, %v598_v14  ;;  %v192_v32 = vadd.f32 %v160_v18, %v90_v15  ;;  %v364_v34 = vmul.f32 %v8103_v22, %v6347_v9  ;;  %v8108_v9 = vld [vmem:[%s10722_s4 + $0x8] ss:$0 sm:$0xff]  ;;  %v8109_v15 = vld [vmem:[%s10722_s4 + $0x10] ss:$0 sm:$0xff]  ;;  %v8110_v18 = vld [vmem:[%s10719_s1] sm:$0xff]  }
  0x9d   :  { %v801_v36 = vadd.f32 %v769_v5, %v699_v44  ;;  %v293_v41 = vadd.f32 %v261_v31, %v191_v25  ;;  %v465_v43 = vmul.f32 %v8104_v49, %v6379_v24  ;;  %v466_v39 = vmul.f32 %v8104_v49, %v6380_v47  ;;  %v8112_v31 = vld [vmem:[%s10719_s1 + $0x10] sm:$0xff]   ;;  %v8114_v44 = vld [vmem:[%s10719_s1 + $0x20] sm:$0xff]   ;;  %v8115_v25 = vld [vmem:[%s10719_s1 + $0x28] sm:$0xff]  }
  0x9e   :  { %7259 = vmatmul.mubr.msk.bf16.gmra.mxu1 %vm1377_vm0, %v1021_v30  ;;  %v802_v40 = vadd.f32 %v770_v61, %v700_v38  ;;  %v294_v51 = vadd.f32 %v262_v26, %v192_v32  ;;  %v567_v48 = vmul.f32 %v8105_v55, %v6412_v23  ;;  %v568_v56 = vmul.f32 %v8105_v55, %v6413_v28  ;;  %v8113_v23 = vld [vmem:[%s10719_s1 + $0x18] sm:$0xff]   ;;  %v8116_v26 = vld [vmem:[%s10719_s1 + $0x30] sm:$0xff]   ;;  %v8119_v28 = vld [vmem:[%s10719_s1 + $0x48] sm:$0xff]  }
  0x9f   :  { %v903_v53 = vadd.f32 %v871_v27, %v801_v36  ;;  %v395_v42 = vadd.f32 %v363_v29, %v293_v41  ;;  %v669_v63 = vmul.f32 %v8106_v62, %v6445_v35  ;;  %v670_v50 = vmul.f32 %v8106_v62, %v6446_v45  ;;  %v8117_v22 = vld [vmem:[%s10719_s1 + $0x38] sm:$0xff]   ;;  %v8118_v29 = vld [vmem:[%s10719_s1 + $0x40] sm:$0xff]   ;;  %v8120_v30 = vld [vmem:[%s10719_s1 + $0x50] sm:$0xff]  }
  0xa0   :  { %v904_v57 = vadd.f32 %v872_v10, %v802_v40  ;;  %v396_v16 = vadd.f32 %v364_v34, %v294_v51  ;;  %v771_v6 = vmul.f32 %v8107_v8, %v6478_v11  ;;  %v873_v60 = vmul.f32 %v8108_v9, %v6511_v2 }
  0xa1   :  { %v940_v59 = vadd.f32 %v9109_v54, %v903_v53  ;;  %v497_v58 = vadd.f32 %v465_v43, %v395_v42  ;;  %v874_v7 = vmul.f32 %v8108_v9, %v6512_v52 }
  0xa2   :  { %v941_v0 = vadd.f32 %v9109_v54, %v904_v57  ;;  %v498_v1 = vadd.f32 %v466_v39, %v396_v16  ;;  %v772_v54 = vmul.f32 %v8107_v8, %v6479_v46 }
  0xa3   :  { %v972_v3 = vmax.f32 %v940_v59, 0.0  ;;  %v599_v5 = vadd.f32 %v567_v48, %v497_v58 }
  0xa4   :  { %v973_v21 = vmax.f32 %v941_v0, 0.0  ;;  %v600_v61 = vadd.f32 %v568_v56, %v498_v1 }
  0xa5   :  { %v701_v27 = vadd.f32 %v669_v63, %v599_v5 }
  0xa6   :  { %v1022_v33 = vpack.c.bf16 %v973_v21, %v972_v3  ;;  %v702_v10 = vadd.f32 %v670_v50, %v600_v61 }
  0xa7   :  { %v803_v4 = vadd.f32 %v771_v6, %v701_v27 }
  0xa8   :  { %7262 = vmatprep.mubr.msk.bf16.mxu1 %vm1377_vm0, %v1022_v33  ;;  %v804_v24 = vadd.f32 %v772_v54, %v702_v10 }
  0xa9   :  { %v905_v13 = vadd.f32 %v873_v60, %v803_v4 }
  0xaa   :  { %v906_v12 = vadd.f32 %v874_v7, %v804_v24 }
  0xab   :  { %v942_v37 = vadd.f32 %v8109_v15, %v905_v13 }
  0xac   :  { %v943_v17 = vadd.f32 %v8109_v15, %v906_v12 }
  0xad   :  { %v974_v47 = vmax.f32 %v942_v37, 0.0 }
  0xae   :  { %v975_v19 = vmax.f32 %v943_v17, 0.0 }
  0xb0   :  { %v1023_v14 = vpack.c.bf16 %v975_v19, %v974_v47 }
  0xb2   :  { %7263 = vmatmul.mubr.msk.bf16.gmra.mxu1 %vm1377_vm0, %v1023_v14 }
  0xb3   :  { %7282 = vmatprep.mubr.bf16.mxu1 %v8110_v18 }
  0xba   :  { %7283 = vmatmul.mubr.bf16.vlgmr.msra.gmra.mxu1 %v8111_v20 }
  0xbb   :  { %7286 = vmatprep.mubr.bf16.mxu1 %v8112_v31 }
  0xc2   :  { %7287 = vmatmul.mubr.bf16.gmra.mxu1 %v8113_v23 }
  0xc3   :  { %7290 = vmatprep.mubr.bf16.mxu1 %v8114_v44 }
  0xca   :  { %7291 = vmatmul.mubr.bf16.gmra.mxu1 %v8115_v25 }
  0xcb   :  { %7294 = vmatprep.mubr.bf16.mxu1 %v8116_v26 }
  0xd2   :  { %7295 = vmatmul.mubr.bf16.gmra.mxu1 %v8117_v22 }
  0xd3   :  { %7298 = vmatprep.mubr.bf16.mxu1 %v8118_v29 }
  0xda   :  { %7299 = vmatmul.mubr.bf16.gmra.mxu1 %v8119_v28 }
  0xdb   :  { %7302 = vmatprep.mubr.bf16.mxu1 %v8120_v30 }
  0xdc   :  { %10 = vsyncpa [#allocation3], 0  ;;  %v8121_v32 = vld [vmem:[%s10719_s1 + $0x58] sm:$0xff]   ;;  %v8122_v34 = vld [vmem:[%s10719_s1 + $0x60] sm:$0xff]   ;;  %vm1945_vm1 = vcmask 785408   ;;  %vm2649_vm2 = vcmask 261120  }
  0xdd   :  { %v8123_v49 = vld [vmem:[%s10719_s1 + $0x68] sm:$0xff]   ;;  %v8124_v45 = vld [vmem:[%s10719_s1 + $0x70] sm:$0xff]   ;;  %v9690_v53 = vld [vmem:[%s10722_s4 + $0x18] ss:$0 sm:$0xff]  ;;  %s8148_s18 = smov 96   ;;  %s8149_s22 = smov 64  }
  0xde   :  { %v8125_v59 = vld [vmem:[%s10719_s1 + $0x78] sm:$0xff]   ;;  %s8150_s23 = smov 32   ;;  %s8151_s29 = smov [#allocation2]  }
  0xdf   :  { %s6238_s30 = sshll.u32 %s8151_s29, 4  ;;  %s6239_s30 = int_to_ptr.vmem [resolvable:$true] %s6238_s30 }
  0xe0   :  { %p8131_p1 = scmp.lt.s32.totalorder %s6239_s30, %s6239_s30 }
  0xe2   :  { %v7196_v38 = vpop.f32.mrf.mxu0  ;;  %7303 = vmatmul.mubr.bf16.gmra.mxu1 %v8121_v32 }
  0xe3   :  { %7306 = vmatprep.mubr.bf16.mxu1 %v8122_v34 }
  0xe4   :  { %v1226_v35 = vpop.f32.mrf.mxu0 }
  0xe6   :  { %v7197_v41 = vpop.f32.mrf.mxu0 }
  0xe8   :  { %v1229_v11 = vpop.f32.mrf.mxu0 }
  0xea   :  { %7307 = vmatmul.mubr.bf16.gmra.mxu1 %v8123_v49  ;;  %v7200_v1 = vpop.f32.mrf.mxu0 }
  0xeb   :  { %7310 = vmatprep.mubr.bf16.mxu1 %v8124_v45 }
  0xec   :  { %v1242_v3 = vpop.f32.mrf.mxu0 }
  0xed   :  { %v7236_v36 = vpop.f32.mrf.mxu1 }
  0xee   :  { %v1469_v39 = vadd.f32 %v7236_v36, %v7196_v38  ;;  %v7201_v8 = vpop.f32.mrf.mxu0 }
  0xef   :  { %v1460_v43 = vpop.f32.mrf.mxu1 }
  0xf0   :  { %v1461_v40 = vadd.f32 %v1460_v43, %v1226_v35  ;;  %v1594_v16 = vadd.f32 %v9690_v53, %v1469_v39  ;;  %v1245_v54 = vpop.f32.mrf.mxu0 }
  0xf1   :  { %v7237_v51 = vpop.f32.mrf.mxu1 }
  0xf2   :  { %v1472_v42 = vadd.f32 %v7237_v51, %v7197_v41  ;;  %v1592_v48 = vadd.f32 %v9690_v53, %v1461_v40  ;;  %7311 = vmatmul.mubr.bf16.gmra.mxu1 %v8125_v59  ;;  %v1626_v0 = vmax.f32 %v1594_v16, 0.0  ;;  %v7204_v15 = vpop.f32.mrf.mxu0 }
  0xf3   :  { %v1463_v55 = vpop.f32.mrf.mxu1 }
  0xf4   :  { %v1595_v46 = vadd.f32 %v9690_v53, %v1472_v42  ;;  %v1464_v57 = vadd.f32 %v1463_v55, %v1229_v11  ;;  %v1624_v62 = vmax.f32 %v1592_v48, 0.0  ;;  %v1258_v19 = vpop.f32.mrf.mxu0 }
  0xf6   :  { %v1593_v56 = vadd.f32 %v9690_v53, %v1464_v57  ;;  %v1627_v58 = vmax.f32 %v1595_v46, 0.0  ;;  %v7205_v18 = vpop.f32.mrf.mxu0 }
  0xf8   :  { %v1625_v63 = vmax.f32 %v1593_v56, 0.0  ;;  %v1657_v2 = vpack.c.bf16 %v1627_v58, %v1626_v0  ;;  %v1261_v25 = vpop.f32.mrf.mxu0 }
  0xfa   :  { %v1656_v50 = vpack.c.bf16 %v1625_v63, %v1624_v62 }
  0xfc   :  { %7326 = vmatprep.mubr.msk.bf16.mxu0 %vm1945_vm1, %v1656_v50 }
  0xfd   :  { %7327 = vmatmul.mubr.msk.bf16.vlgmr.msra.gmra.mxu0 %vm1945_vm1, %v1657_v2 }
  0xfe   :  { %v7240_v5 = vpop.f32.mrf.mxu1 }
  0xff   :  { %v1485_v61 = vadd.f32 %v7240_v5, %v7200_v1  ;;  %v7208_v49 = vpop.f32.mrf.mxu0 }
 0x100   :  { %v1476_v6 = vpop.f32.mrf.mxu1 }
 0x101   :  { %v1477_v52 = vadd.f32 %v1476_v6, %v1242_v3  ;;  %v1598_v7 = vadd.f32 %v9690_v53, %v1485_v61  ;;  %v1274_v40 = vpop.f32.mrf.mxu0 }
 0x102   :  { %v7241_v21 = vpop.f32.mrf.mxu1 }
 0x103   :  { %v1488_v27 = vadd.f32 %v7241_v21, %v7201_v8  ;;  %v1596_v60 = vadd.f32 %v9690_v53, %v1477_v52  ;;  %v1630_v37 = vmax.f32 %v1598_v7, 0.0  ;;  %v7209_v39 = vpop.f32.mrf.mxu0 }
 0x104   :  { %v1479_v9 = vpop.f32.mrf.mxu1 }
 0x105   :  { %v1599_v33 = vadd.f32 %v9690_v53, %v1488_v27  ;;  %v1480_v10 = vadd.f32 %v1479_v9, %v1245_v54  ;;  %v1628_v13 = vmax.f32 %v1596_v60, 0.0  ;;  %v1277_v46 = vpop.f32.mrf.mxu0 }
 0x107   :  { %v1597_v4 = vadd.f32 %v9690_v53, %v1480_v10  ;;  %v1631_v24 = vmax.f32 %v1599_v33, 0.0 }
 0x109   :  { %v1629_v12 = vmax.f32 %v1597_v4, 0.0  ;;  %v1659_v47 = vpack.c.bf16 %v1631_v24, %v1630_v37 }
 0x10b   :  { %v1658_v17 = vpack.c.bf16 %v1629_v12, %v1628_v13 }
 0x10c   :  { %v7212_v2 = vpop.f32.mrf.mxu0 }
 0x10d   :  { %7330 = vmatprep.mubr.msk.bf16.mxu0 %vm1945_vm1, %v1658_v17 }
 0x10e   :  { %7331 = vmatmul.mubr.msk.bf16.gmra.mxu0 %vm1945_vm1, %v1659_v47  ;;  %v1290_v6 = vpop.f32.mrf.mxu0 }
 0x110   :  { %v7244_v14 = vpop.f32.mrf.mxu1  ;;  %v7213_v21 = vpop.f32.mrf.mxu0 }
 0x111   :  { %v1501_v44 = vadd.f32 %v7244_v14, %v7204_v15 }
 0x112   :  { %v1492_v20 = vpop.f32.mrf.mxu1  ;;  %v1293_v60 = vpop.f32.mrf.mxu0 }
 0x113   :  { %v1493_v31 = vadd.f32 %v1492_v20, %v1258_v19  ;;  %v1602_v38 = vadd.f32 %v9690_v53, %v1501_v44 }
 0x114   :  { %v7245_v23 = vpop.f32.mrf.mxu1 }
 0x115   :  { %v1504_v26 = vadd.f32 %v7245_v23, %v7205_v18  ;;  %v1600_v29 = vadd.f32 %v9690_v53, %v1493_v31  ;;  %v1634_v41 = vmax.f32 %v1602_v38, 0.0 }
 0x116   :  { %v1495_v22 = vpop.f32.mrf.mxu1 }
 0x117   :  { %v1603_v28 = vadd.f32 %v9690_v53, %v1504_v26  ;;  %v1496_v30 = vadd.f32 %v1495_v22, %v1261_v25  ;;  %v1632_v35 = vmax.f32 %v1600_v29, 0.0 }
 0x119   :  { %v1601_v32 = vadd.f32 %v9690_v53, %v1496_v30  ;;  %v1635_v34 = vmax.f32 %v1603_v28, 0.0 }
 0x11b   :  { %v1633_v36 = vmax.f32 %v1601_v32, 0.0  ;;  %v1661_v45 = vpack.c.bf16 %v1635_v34, %v1634_v41  ;;  %v7216_v19 = vpop.f32.mrf.mxu0 }
 0x11d   :  { %v1660_v43 = vpack.c.bf16 %v1633_v36, %v1632_v35  ;;  %v1306_v20 = vpop.f32.mrf.mxu0 }
 0x11f   :  { %7334 = vmatprep.mubr.msk.bf16.mxu0 %vm1945_vm1, %v1660_v43  ;;  %v7217_v23 = vpop.f32.mrf.mxu0 }
 0x120   :  { %7335 = vmatmul.mubr.msk.bf16.gmra.mxu0 %vm1945_vm1, %v1661_v45 }
 0x121   :  { %v1309_v29 = vpop.f32.mrf.mxu0 }
 0x124   :  { %v7248_v51 = vpop.f32.mrf.mxu1 }
 0x125   :  { %v1517_v48 = vadd.f32 %v7248_v51, %v7208_v49 }
 0x126   :  { %v1508_v11 = vpop.f32.mrf.mxu1 }
 0x127   :  { %v1509_v42 = vadd.f32 %v1508_v11, %v1274_v40  ;;  %v1606_v62 = vadd.f32 %v9690_v53, %v1517_v48 }
 0x128   :  { %v7249_v55 = vpop.f32.mrf.mxu1  ;;  %v7220_v45 = vpop.f32.mrf.mxu0 }
 0x129   :  { %v1520_v57 = vadd.f32 %v7249_v55, %v7209_v39  ;;  %v1604_v56 = vadd.f32 %v9690_v53, %v1509_v42  ;;  %v1638_v3 = vmax.f32 %v1606_v62, 0.0 }
 0x12a   :  { %v1511_v16 = vpop.f32.mrf.mxu1  ;;  %v1322_v11 = vpop.f32.mrf.mxu0 }
 0x12b   :  { %v1607_v59 = vadd.f32 %v9690_v53, %v1520_v57  ;;  %v1512_v58 = vadd.f32 %v1511_v16, %v1277_v46  ;;  %v1636_v1 = vmax.f32 %v1604_v56, 0.0 }
 0x12c   :  { %v7221_v55 = vpop.f32.mrf.mxu0 }
 0x12d   :  { %v1605_v63 = vadd.f32 %v9690_v53, %v1512_v58  ;;  %v1639_v0 = vmax.f32 %v1607_v59, 0.0 }
 0x12e   :  { %v1325_v56 = vpop.f32.mrf.mxu0 }
 0x12f   :  { %v1637_v50 = vmax.f32 %v1605_v63, 0.0  ;;  %v1663_v8 = vpack.c.bf16 %v1639_v0, %v1638_v3 }
 0x131   :  { %v1662_v5 = vpack.c.bf16 %v1637_v50, %v1636_v1 }
 0x133   :  { %7338 = vmatprep.mubr.msk.bf16.mxu0 %vm1945_vm1, %v1662_v5 }
 0x134   :  { %7339 = vmatmul.mubr.msk.bf16.gmra.mxu0 %vm1945_vm1, %v1663_v8 }
 0x137   :  { %v7252_v52 = vpop.f32.mrf.mxu1 }
 0x138   :  { %v1533_v9 = vadd.f32 %v7252_v52, %v7212_v2 }
 0x139   :  { %v1524_v61 = vpop.f32.mrf.mxu1 }
 0x13a   :  { %v1525_v54 = vadd.f32 %v1524_v61, %v1290_v6  ;;  %v1610_v13 = vadd.f32 %v9690_v53, %v1533_v9  ;;  %v7224_v6 = vpop.f32.mrf.mxu0 }
 0x13b   :  { %v7253_v27 = vpop.f32.mrf.mxu1 }
 0x13c   :  { %v1536_v33 = vadd.f32 %v7253_v27, %v7213_v21  ;;  %v1608_v7 = vadd.f32 %v9690_v53, %v1525_v54  ;;  %v1642_v47 = vmax.f32 %v1610_v13, 0.0  ;;  %v1338_v61 = vpop.f32.mrf.mxu0 }
 0x13d   :  { %v1527_v10 = vpop.f32.mrf.mxu1 }
 0x13e   :  { %v1611_v4 = vadd.f32 %v9690_v53, %v1536_v33  ;;  %v1528_v24 = vadd.f32 %v1527_v10, %v1293_v60  ;;  %v1640_v37 = vmax.f32 %v1608_v7, 0.0  ;;  %v7225_v27 = vpop.f32.mrf.mxu0 }
 0x140   :  { %v1609_v12 = vadd.f32 %v9690_v53, %v1528_v24  ;;  %v1643_v15 = vmax.f32 %v1611_v4, 0.0  ;;  %v1341_v7 = vpop.f32.mrf.mxu0 }
 0x142   :  { %v1641_v17 = vmax.f32 %v1609_v12, 0.0  ;;  %v1665_v18 = vpack.c.bf16 %v1643_v15, %v1642_v47 }
 0x144   :  { %v1664_v14 = vpack.c.bf16 %v1641_v17, %v1640_v37 }
 0x146   :  { %7342 = vmatprep.mubr.msk.bf16.mxu0 %vm1945_vm1, %v1664_v14 }
 0x147   :  { %7343 = vmatmul.mubr.msk.bf16.gmra.mxu0 %vm1945_vm1, %v1665_v18 }
 0x14b   :  { %v7256_v31 = vpop.f32.mrf.mxu1 }
 0x14c   :  { %v1549_v22 = vadd.f32 %v7256_v31, %v7216_v19 }
 0x14d   :  { %v1540_v44 = vpop.f32.mrf.mxu1 }
 0x14e   :  { %v1541_v25 = vadd.f32 %v1540_v44, %v1306_v20  ;;  %v1614_v35 = vadd.f32 %v9690_v53, %v1549_v22  ;;  %v9746_v22 = vld [vmem:[%s10722_s4 + $0x20] ss:$0 sm:$0xff] }
 0x14f   :  { %v7257_v26 = vpop.f32.mrf.mxu1 }
 0x150   :  { %v1552_v28 = vadd.f32 %v7257_v26, %v7217_v23  ;;  %v1612_v38 = vadd.f32 %v9690_v53, %v1541_v25  ;;  %v1646_v40 = vmax.f32 %v1614_v35, 0.0 }
 0x151   :  { %v1543_v30 = vpop.f32.mrf.mxu1 }
 0x152   :  { %v1615_v32 = vadd.f32 %v9690_v53, %v1552_v28  ;;  %v1544_v34 = vadd.f32 %v1543_v30, %v1309_v29  ;;  %v1644_v49 = vmax.f32 %v1612_v38, 0.0 }
 0x154   :  { %v1613_v36 = vadd.f32 %v9690_v53, %v1544_v34  ;;  %v1647_v41 = vmax.f32 %v1615_v32, 0.0 }
 0x156   :  { %v1645_v43 = vmax.f32 %v1613_v36, 0.0  ;;  %v1667_v39 = vpack.c.bf16 %v1647_v41, %v1646_v40 }
 0x158   :  { %v1666_v51 = vpack.c.bf16 %v1645_v43, %v1644_v49 }
 0x15a   :  { %7346 = vmatprep.mubr.msk.bf16.mxu0 %vm1945_vm1, %v1666_v51 }
 0x15b   :  { %7347 = vmatmul.mubr.msk.bf16.gmra.mxu0 %vm1945_vm1, %v1667_v39 }
 0x15e   :  { %v7260_v42 = vpop.f32.mrf.mxu1 }
 0x15f   :  { %v1565_v16 = vadd.f32 %v7260_v42, %v7220_v45 }
 0x160   :  { %v1556_v48 = vpop.f32.mrf.mxu1 }
 0x161   :  { %v1557_v46 = vadd.f32 %v1556_v48, %v1322_v11  ;;  %v1618_v1 = vadd.f32 %v9690_v53, %v1565_v16 }
 0x162   :  { %v7261_v57 = vpop.f32.mrf.mxu1 }
 0x163   :  { %v1568_v59 = vadd.f32 %v7261_v57, %v7221_v55  ;;  %v1616_v62 = vadd.f32 %v9690_v53, %v1557_v46  ;;  %v1650_v8 = vmax.f32 %v1618_v1, 0.0 }
 0x164   :  { %v1559_v58 = vpop.f32.mrf.mxu1 }
 0x165   :  { %v1619_v63 = vadd.f32 %v9690_v53, %v1568_v59  ;;  %v1560_v0 = vadd.f32 %v1559_v58, %v1325_v56  ;;  %v1648_v3 = vmax.f32 %v1616_v62, 0.0 }
 0x167   :  { %v1617_v50 = vadd.f32 %v9690_v53, %v1560_v0  ;;  %v1651_v2 = vmax.f32 %v1619_v63, 0.0  ;;  %v7876_v63 = vld [vmem:[%s10720_s2 + $0x4] ss:$8 sps:$4 sm:$0xff]  }
 0x168   :  { %2300 = vmatprep.mubr.bf16.mxu1 %v7876_v63 }
 0x169   :  { %v1649_v5 = vmax.f32 %v1617_v50, 0.0  ;;  %v1669_v21 = vpack.c.bf16 %v1651_v2, %v1650_v8 }
 0x16b   :  { %v1668_v52 = vpack.c.bf16 %v1649_v5, %v1648_v3 }
 0x16d   :  { %7350 = vmatprep.mubr.msk.bf16.mxu0 %vm1945_vm1, %v1668_v52 }
 0x16e   :  { %7351 = vmatmul.mubr.msk.bf16.gmra.mxu0 %vm1945_vm1, %v1669_v21 }
 0x172   :  { %v7264_v54 = vpop.f32.mrf.mxu1 }
 0x173   :  { %v1581_v10 = vadd.f32 %v7264_v54, %v7224_v6 }
 0x174   :  { %v1572_v9 = vpop.f32.mrf.mxu1 }
 0x175   :  { %v1573_v60 = vadd.f32 %v1572_v9, %v1338_v61  ;;  %v1622_v37 = vadd.f32 %v9690_v53, %v1581_v10 }
 0x176   :  { %v7265_v33 = vpop.f32.mrf.mxu1 }
 0x177   :  { %v1584_v4 = vadd.f32 %v7265_v33, %v7225_v27  ;;  %v1620_v13 = vadd.f32 %v9690_v53, %v1573_v60  ;;  %v1654_v18 = vmax.f32 %v1622_v37, 0.0 }
 0x178   :  { %v1575_v24 = vpop.f32.mrf.mxu1 }
 0x179   :  { %v1623_v12 = vadd.f32 %v9690_v53, %v1584_v4  ;;  %v1576_v15 = vadd.f32 %v1575_v24, %v1341_v7  ;;  %v1652_v19 = vmax.f32 %v1620_v13, 0.0 }
 0x17a   :  { %v7284_v23 = vpop.f32.mrf.mxu1 }
 0x17b   :  { %v1621_v17 = vadd.f32 %v9690_v53, %v1576_v15  ;;  %v1655_v47 = vmax.f32 %v1623_v12, 0.0 }
 0x17c   :  { %v1782_v44 = vpop.f32.mrf.mxu1 }
 0x17d   :  { %v1653_v14 = vmax.f32 %v1621_v17, 0.0  ;;  %v1671_v31 = vpack.c.bf16 %v1655_v47, %v1654_v18 }
 0x17e   :  { %v7285_v28 = vpop.f32.mrf.mxu1 }
 0x17f   :  { %v1670_v20 = vpack.c.bf16 %v1653_v14, %v1652_v19 }
 0x180   :  { %v9754_v49 = vpop.f32.mrf.mxu1 }
 0x181   :  { %7354 = vmatprep.mubr.msk.bf16.mxu0 %vm1945_vm1, %v1670_v20  ;;  %10726 = vst [vmem:[#allocation7_spill] sm:$0xff] %v9754_v49 }
 0x182   :  { %7355 = vmatmul.mubr.msk.bf16.gmra.mxu0 %vm1945_vm1, %v1671_v31  ;;  %v7288_v43 = vpop.f32.mrf.mxu1 }
 0x184   :  { %v9758_v40 = vpop.f32.mrf.mxu1 }
 0x186   :  { %v7289_v42 = vpop.f32.mrf.mxu1 }
 0x188   :  { %v9766_v58 = vpop.f32.mrf.mxu1 }
 0x18a   :  { %v9768_v62 = vpop.f32.mrf.mxu1 }
 0x18c   :  { %v9775_v1 = vpop.f32.mrf.mxu1 }
 0x18e   :  { %v7293_v2 = vpop.f32.mrf.mxu1 }
 0x190   :  { %v9781_v5 = vpop.f32.mrf.mxu1 }
 0x192   :  { %v7296_v6 = vpop.f32.mrf.mxu1 }
 0x194   :  { %v1830_v21 = vpop.f32.mrf.mxu1 }
 0x196   :  { %v7297_v54 = vpop.f32.mrf.mxu1 }
 0x198   :  { %v1833_v9 = vpop.f32.mrf.mxu1 }
 0x19a   :  { %v9785_v33 = vpop.f32.mrf.mxu1 }
 0x19c   :  { %v9787_v7 = vpop.f32.mrf.mxu1 }
 0x19e   :  { %v9791_v24 = vpop.f32.mrf.mxu1 }
 0x1a0   :  { %v9795_v12 = vpop.f32.mrf.mxu1 }
 0x1a2   :  { %v9799_v37 = vpop.f32.mrf.mxu1 }
 0x1a4   :  { %v9803_v47 = vpop.f32.mrf.mxu1 }
 0x1a6   :  { %v7305_v14 = vpop.f32.mrf.mxu1 }
 0x1a8   :  { %v9809_v20 = vpop.f32.mrf.mxu1 }
 0x1bd   :  { %v7328_v25 = vpop.f32.mrf.mxu0 }
 0x1be   :  { %v2037_v26 = vadd.f32 %v7328_v25, %v7284_v23  ;;  %v7308_v23 = vpop.f32.mrf.mxu1 }
 0x1bf   :  { %v2028_v53 = vpop.f32.mrf.mxu0 }
 0x1c0   :  { %v9748_v29 = vadd.f32 %v2028_v53, %v1782_v44  ;;  %v2162_v38 = vadd.f32 %v9746_v22, %v2037_v26  ;;  %v1878_v25 = vpop.f32.mrf.mxu1 }
 0x1c1   :  { %v7329_v30 = vpop.f32.mrf.mxu0 }
 0x1c2   :  { %10724 = vst [vmem:[#allocation5_spill] sm:$0xff] %v9748_v29  ;;  %v2040_v32 = vadd.f32 %v7329_v30, %v7285_v28  ;;  %v2194_v35 = vmax.f32 %v2162_v38, 0.0  ;;  %v7309_v53 = vpop.f32.mrf.mxu1 }
 0x1c3   :  { %v9756_v45 = vpop.f32.mrf.mxu0 }
 0x1c4   :  { %v2163_v34 = vadd.f32 %v9746_v22, %v2040_v32  ;;  %10727 = vst [vmem:[#allocation8_spill] sm:$0xff] %v9756_v45  ;;  %v1881_v30 = vpop.f32.mrf.mxu1 }
 0x1c6   :  { %v2195_v36 = vmax.f32 %v2163_v34, 0.0  ;;  %v7312_v32 = vpop.f32.mrf.mxu1 }
 0x1c8   :  { %v9752_v41 = vpack.c.bf16 %v2195_v36, %v2194_v35  ;;  %v1894_v35 = vpop.f32.mrf.mxu1 }
 0x1ca   :  { %10725 = vst [vmem:[#allocation6_spill] sm:$0xff] %v9752_v41 }
 0x1ce   :  { %v7332_v51 = vpop.f32.mrf.mxu0 }
 0x1cf   :  { %v2053_v39 = vadd.f32 %v7332_v51, %v7288_v43 }
 0x1d0   :  { %v9760_v11 = vpop.f32.mrf.mxu0 }
 0x1d1   :  { %v2166_v48 = vadd.f32 %v9746_v22, %v2053_v39 }
 0x1d2   :  { %v7333_v55 = vpop.f32.mrf.mxu0 }
 0x1d3   :  { %v2056_v46 = vadd.f32 %v7333_v55, %v7289_v42  ;;  %v2198_v16 = vmax.f32 %v2166_v48, 0.0  ;;  %v7313_v42 = vpop.f32.mrf.mxu1 }
 0x1d4   :  { %v9773_v0 = vpop.f32.mrf.mxu0 }
 0x1d5   :  { %v2167_v57 = vadd.f32 %v9746_v22, %v2056_v46  ;;  %v1897_v49 = vpop.f32.mrf.mxu1 }
 0x1d7   :  { %v2199_v56 = vmax.f32 %v2167_v57, 0.0 }
 0x1d9   :  { %v9764_v59 = vpack.c.bf16 %v2199_v56, %v2198_v16 }
 0x1db   :  { %10728 = vst [vmem:[#allocation9_spill] sm:$0xff] %v9764_v59 }
 0x1e0   :  { %v9777_v50 = vpop.f32.mrf.mxu0 }
 0x1e2   :  { %v9779_v3 = vpop.f32.mrf.mxu0 }
 0x1e4   :  { %v7337_v8 = vpop.f32.mrf.mxu0 }
 0x1e6   :  { %v9783_v52 = vpop.f32.mrf.mxu0 }
 0x1f4   :  { %v7340_v61 = vpop.f32.mrf.mxu0 }
 0x1f5   :  { %v2085_v39 = vadd.f32 %v7340_v61, %v7296_v6 }
 0x1f6   :  { %v2076_v27 = vpop.f32.mrf.mxu0 }
 0x1f7   :  { %v2174_v29 = vadd.f32 %v9746_v22, %v2085_v39  ;;  %v2077_v59 = vadd.f32 %v2076_v27, %v1830_v21  ;;  %v2069_v21 = vadd.f32 %v9777_v50, %v9768_v62 }
 0x1f8   :  { %v7341_v60 = vpop.f32.mrf.mxu0 }
 0x1f9   :  { %v2088_v36 = vadd.f32 %v7341_v60, %v7297_v54  ;;  %v2206_v27 = vmax.f32 %v2174_v29, 0.0 }
 0x1fa   :  { %v2079_v10 = vpop.f32.mrf.mxu0 }
 0x1fb   :  { %v2175_v46 = vadd.f32 %v9746_v22, %v2088_v36  ;;  %v2080_v57 = vadd.f32 %v2079_v10, %v1833_v9 }
 0x1fd   :  { %v2173_v9 = vadd.f32 %v9746_v22, %v2080_v57 }
 0x1ff   :  { %v2205_v39 = vmax.f32 %v2173_v9, 0.0 }
 0x207   :  { %v9789_v4 = vpop.f32.mrf.mxu0 }
 0x209   :  { %v9793_v13 = vpop.f32.mrf.mxu0 }
 0x20b   :  { %v9797_v15 = vpop.f32.mrf.mxu0 }
 0x20d   :  { %v9801_v17 = vpop.f32.mrf.mxu0 }
 0x21b   :  { %v9805_v19 = vpop.f32.mrf.mxu0 }
 0x21d   :  { %v9807_v18 = vpop.f32.mrf.mxu0 }
 0x21f   :  { %v7349_v31 = vpop.f32.mrf.mxu0 }
 0x221   :  { %v9811_v44 = vpop.f32.mrf.mxu0 }
 0x22e   :  { %v7352_v26 = vpop.f32.mrf.mxu0 }
 0x22f   :  { %v2133_v45 = vadd.f32 %v7352_v26, %v7308_v23  ;;  %v2172_v23 = vadd.f32 %v9746_v22, %v2077_v59  ;;  %v2170_v59 = vadd.f32 %v9746_v22, %v2069_v21 }
 0x230   :  { %v2124_v28 = vpop.f32.mrf.mxu0 }
 0x231   :  { %v2204_v50 = vmax.f32 %v2172_v23, 0.0 }
 0x232   :  { %v7353_v38 = vpop.f32.mrf.mxu0 }
 0x233   :  { %v2136_v16 = vadd.f32 %v7353_v38, %v7309_v53 }
 0x234   :  { %v2127_v34 = vpop.f32.mrf.mxu0 }
 0x235   :  { %v2187_v10 = vadd.f32 %v9746_v22, %v2136_v16  ;;  %v2128_v53 = vadd.f32 %v2127_v34, %v1881_v30  ;;  %v2064_v30 = vadd.f32 %v9783_v52, %v9781_v5 }
 0x237   :  { %v2185_v62 = vadd.f32 %v9746_v22, %v2128_v53 }
 0x239   :  { %v2217_v57 = vmax.f32 %v2185_v62, 0.0  ;;  %v10733_v62 = vld [vmem:[#allocation6_spill] sm:$0xff] }
 0x242   :  { %v7356_v43 = vpop.f32.mrf.mxu0 }
 0x243   :  { %v2149_v51 = vadd.f32 %v7356_v43, %v7312_v32  ;;  %v2072_v32 = vadd.f32 %v7337_v8, %v7293_v2 }
 0x244   :  { %v2140_v55 = vpop.f32.mrf.mxu0 }
 0x245   :  { %v2141_v48 = vadd.f32 %v2140_v55, %v1894_v35  ;;  %v2190_v63 = vadd.f32 %v9746_v22, %v2149_v51  ;;  %v2207_v35 = vmax.f32 %v2175_v46, 0.0  ;;  %v2171_v51 = vadd.f32 %v9746_v22, %v2072_v32 }
 0x246   :  { %v7357_v56 = vpop.f32.mrf.mxu0  ;;  %v2219_v55 = vmax.f32 %v2187_v10, 0.0  ;;  %v2112_v46 = vadd.f32 %v9811_v44, %v9809_v20  ;;  %v2104_v20 = vadd.f32 %v9797_v15, %v9791_v24  ;;  %v2045_v32 = vadd.f32 %v9760_v11, %v9758_v40 }
 0x247   :  { %v2152_v41 = vadd.f32 %v7357_v56, %v7313_v42  ;;  %v2188_v60 = vadd.f32 %v9746_v22, %v2141_v48  ;;  %v2222_v38 = vmax.f32 %v2190_v63, 0.0  ;;  %v2235_v34 = vpack.c.bf16 %v2207_v35, %v2206_v27 }
 0x248   :  { %v2143_v54 = vpop.f32.mrf.mxu0  ;;  %v2120_v42 = vadd.f32 %v7349_v31, %v7305_v14  ;;  %v2203_v52 = vmax.f32 %v2171_v51, 0.0  ;;  %v2169_v14 = vadd.f32 %v9746_v22, %v2064_v30  ;;  %v2234_v31 = vpack.c.bf16 %v2205_v39, %v2204_v50  ;;  %v10732_v51 = vld [vmem:[#allocation5_spill] sm:$0xff] }
 0x249   :  { %v2191_v6 = vadd.f32 %v9746_v22, %v2152_v41  ;;  %v2144_v61 = vadd.f32 %v2143_v54, %v1897_v49  ;;  %v2186_v41 = vadd.f32 %v9746_v22, %v2133_v45  ;;  %v2125_v49 = vadd.f32 %v2124_v28, %v1878_v25 }
 0x24a   :  { %v2220_v2 = vmax.f32 %v2188_v60, 0.0  ;;  %v2061_v45 = vadd.f32 %v9779_v3, %v9775_v1  ;;  %v2117_v25 = vadd.f32 %v9805_v19, %v9799_v37  ;;  %v2183_v48 = vadd.f32 %v9746_v22, %v2120_v42 }
 0x24b   :  { %v2223_v36 = vmax.f32 %v2191_v6, 0.0  ;;  %v2189_v43 = vadd.f32 %v9746_v22, %v2144_v61  ;;  %v2218_v28 = vmax.f32 %v2186_v41, 0.0  ;;  %v2184_v5 = vadd.f32 %v9746_v22, %v2125_v49  ;;  %v10731_v41 = vld [vmem:[#allocation9_spill] sm:$0xff] }
 0x24c   :  { %v2202_v3 = vmax.f32 %v2170_v59, 0.0  ;;  %v2168_v16 = vadd.f32 %v9746_v22, %v2061_v45  ;;  %v2182_v37 = vadd.f32 %v9746_v22, %v2117_v25  ;;  %v2109_v19 = vadd.f32 %v9807_v18, %v9803_v47  ;;  %v7874_v59 = vld [vmem:[%s10720_s2] ss:$8 sps:$4 sm:$0xff]   ;;  %v7877_v45 = vld [vmem:[%s10720_s2 + $0x14] ss:$8 sps:$4 sm:$0xff]  }
 0x24d   :  { %v2221_v8 = vmax.f32 %v2189_v43, 0.0  ;;  %v2243_v26 = vpack.c.bf16 %v2223_v36, %v2222_v38  ;;  %v2241_v1 = vpack.c.bf16 %v2219_v55, %v2218_v28  ;;  %v2216_v56 = vmax.f32 %v2184_v5, 0.0  ;;  %v10729_v38 = vld [vmem:[#allocation7_spill] sm:$0xff]  ;;  %v10730_v36 = vld [vmem:[#allocation8_spill] sm:$0xff] }
 0x24e   :  { %v2048_v63 = vadd.f32 %v9773_v0, %v9766_v58  ;;  %v2233_v54 = vpack.c.bf16 %v2203_v52, %v2202_v3  ;;  %v2201_v60 = vmax.f32 %v2169_v14, 0.0  ;;  %v2215_v44 = vmax.f32 %v2183_v48, 0.0  ;;  %v2244_v25 = vld [vmem:[%s10722_s4 + $0x90] sm:$0xff] }
 0x24f   :  { %6920 = vmatprep.subr.bf16.mxu1 %v2243_v26  ;;  %v2242_v29 = vpack.c.bf16 %v2221_v8, %v2220_v2  ;;  %v2181_v6 = vadd.f32 %v9746_v22, %v2112_v46  ;;  %v2240_v61 = vpack.c.bf16 %v2217_v57, %v2216_v56  ;;  %v2200_v35 = vmax.f32 %v2168_v16, 0.0  ;;  %v2246_v16 = vld [vmem:[%s10722_s4 + $0xa0] sm:$0xff] }
 0x250   :  { %6921 = vmatpush3.bf16.msra.mxu1 %v2235_v34  ;;  %v2101_v47 = vadd.f32 %v9789_v4, %v9785_v33  ;;  %v2214_v18 = vmax.f32 %v2182_v37, 0.0  ;;  %v2180_v58 = vadd.f32 %v9746_v22, %v2109_v19  ;;  %v2165_v0 = vadd.f32 %v9746_v22, %v2048_v63 }
 0x251   :  { %6922 = vmatprep.subr.bf16.mxu1 %v2242_v29  ;;  %v2232_v9 = vpack.c.bf16 %v2201_v60, %v2200_v35  ;;  %v2179_v24 = vadd.f32 %v9746_v22, %v2104_v20  ;;  %v2096_v15 = vadd.f32 %v9801_v17, %v9795_v12  ;;  %v2213_v10 = vmax.f32 %v2181_v6, 0.0  ;;  %v2247_v60 = vld [vmem:[%s10722_s4 + $0xa8] sm:$0xff] }
 0x252   :  { %v2239_v53 = vpack.c.bf16 %v2215_v44, %v2214_v18  ;;  %v2164_v40 = vadd.f32 %v9746_v22, %v2045_v32  ;;  %v2178_v11 = vadd.f32 %v9746_v22, %v2101_v47  ;;  %v2093_v33 = vadd.f32 %v9793_v13, %v9787_v7 }
 0x253   :  { %v2212_v4 = vmax.f32 %v2180_v58, 0.0  ;;  %v2032_v43 = vadd.f32 %v10730_v36, %v10729_v38  ;;  %v2197_v21 = vmax.f32 %v2165_v0, 0.0  ;;  %v2211_v27 = vmax.f32 %v2179_v24, 0.0 }
 0x254   :  { %6923 = vmatpush3.bf16.msra.mxu1 %v2234_v31  ;;  %v2177_v23 = vadd.f32 %v9746_v22, %v2096_v15  ;;  %v2196_v17 = vmax.f32 %v2164_v40, 0.0  ;;  %v2210_v49 = vmax.f32 %v2178_v11, 0.0  ;;  %v2176_v2 = vadd.f32 %v9746_v22, %v2093_v33  ;;  %v2245_v31 = vld [vmem:[%s10722_s4 + $0x98] sm:$0xff] }
 0x255   :  { %6924 = vmatprep.subr.bf16.mxu1 %v2241_v1  ;;  %v2238_v12 = vpack.c.bf16 %v2213_v10, %v2212_v4  ;;  %v2161_v8 = vadd.f32 %v9746_v22, %v2032_v43  ;;  %v2160_v30 = vadd.f32 %v9746_v22, %v10732_v51  ;;  %v7879_v22 = vld [vmem:[%s10720_s2 + $0x10] ss:$8 sps:$4 sm:$0xff]  }
 0x256   :  { %v2230_v7 = vpack.c.bf16 %v2197_v21, %v2196_v17  ;;  %v2209_v13 = vmax.f32 %v2177_v23, 0.0  ;;  %v2237_v26 = vpack.c.bf16 %v2211_v27, %v2210_v49  ;;  %v2208_v34 = vmax.f32 %v2176_v2, 0.0  ;;  %v7881_v17 = vld [vmem:[%s10721_s3 + $0x108] sm:$0xff]   ;;  %v7883_v49 = vld [vmem:[%s10721_s3 + $0x100] sm:$0xff]   ;;  %v7884_v2 = vld [vmem:[%s10721_s3 + $0xd8] sm:$0xff]  }
 0x257   :  { %v2193_v39 = vmax.f32 %v2161_v8, 0.0  ;;  %v2192_v55 = vmax.f32 %v2160_v30, 0.0  ;;  %v7885_v8 = vld [vmem:[%s10721_s3 + $0xf8] sm:$0xff]  }
 0x258   :  { %6925 = vmatpush3.bf16.msra.mxu1 %v2233_v54  ;;  %v2236_v42 = vpack.c.bf16 %v2209_v13, %v2208_v34  ;;  %v7887_v13 = vld [vmem:[%s10721_s3 + $0xf0] sm:$0xff]  }
 0x259   :  { %6926 = vmatprep.subr.bf16.mxu1 %v2240_v61  ;;  %v2228_v29 = vpack.c.bf16 %v2193_v39, %v2192_v55 }
 0x25c   :  { %6927 = vmatpush3.bf16.msra.mxu1 %v2232_v9 }
 0x25d   :  { %6928 = vmatprep.subr.bf16.mxu1 %v2239_v53 }
 0x260   :  { %6929 = vmatpush3.bf16.msra.mxu1 %v10731_v41  ;;  %v7882_v41 = vld [vmem:[%s10721_s3 + $0xe0] sm:$0xff]  }
 0x261   :  { %6930 = vmatprep.subr.bf16.mxu1 %v2238_v12  ;;  %v7880_v12 = vld [vmem:[%s10721_s3 + $0xe8] sm:$0xff]  }
 0x262   :  { %7358 = vmatprep.subr.bf16.mxu0 %v7880_v12 }
 0x263   :  { %7359 = vmatpush3.bf16.msra.mxu0 %v7880_v12 }
 0x264   :  { %6931 = vmatpush3.bf16.msra.mxu1 %v2230_v7  ;;  %7360 = vmatprep.subr.bf16.mxu0 %v7882_v41  ;;  %v7886_v7 = vld [vmem:[%s10721_s3 + $0xd0] sm:$0xff]  }
 0x265   :  { %6932 = vmatprep.subr.bf16.mxu1 %v2237_v26  ;;  %v7888_v26 = vld [vmem:[%s10721_s3 + $0x128] sm:$0xff]  }
 0x267   :  { %7361 = vmatpush3.bf16.msra.mxu0 %v7882_v41 }
 0x268   :  { %6933 = vmatpush3.bf16.msra.mxu1 %v10733_v62  ;;  %7362 = vmatprep.subr.bf16.mxu0 %v7884_v2 }
 0x269   :  { %6934 = vmatprep.subr.bf16.mxu1 %v2236_v42 }
 0x26b   :  { %7363 = vmatpush3.bf16.msra.mxu0 %v7884_v2 }
 0x26c   :  { %6935 = vmatpush3.bf16.msra.mxu1 %v2228_v29  ;;  %7364 = vmatprep.subr.bf16.mxu0 %v7886_v7 }
 0x26d   :  { %7370 = vmatprep.subr.bf16.mxu1 %v7881_v17 }
 0x26f   :  { %2301 = vmatmul.mubr.bf16.vlgmr.msra.gmra.mxu1 %v7874_v59  ;;  %7365 = vmatpush3.bf16.msra.mxu0 %v7886_v7  ;;  %v10009_v7 = vld [vmem:[%s10722_s4 + $0x70] sm:$0xff] }
 0x270   :  { %2308 = vmatprep.mubr.bf16.mxu1 %v7877_v45  ;;  %7371 = vmatpush3.bf16.msra.mxu1 %v7881_v17 }
 0x271   :  { %7372 = vmatprep.subr.bf16.mxu1 %v7883_v49  ;;  %7382 = vmatprep.subr.bf16.mxu0 %v7888_v26 }
 0x274   :  { %7373 = vmatpush3.bf16.msra.mxu1 %v7883_v49 }
 0x275   :  { %7374 = vmatprep.subr.bf16.mxu1 %v7885_v8 }
 0x277   :  { %2309 = vmatmul.mubr.bf16.gmra.mxu1 %v7879_v22 }
 0x278   :  { %7375 = vmatpush3.bf16.msra.mxu1 %v7885_v8 }
 0x279   :  { %7376 = vmatprep.subr.bf16.mxu1 %v7887_v13 }
 0x27c   :  { %7377 = vmatpush3.bf16.msra.mxu1 %v7887_v13 }
 0x32f   :  { %v6936_v50 = vpop.f32.mrf.mxu1 }
 0x331   :  { %v6937_v28 = vpop.f32.mrf.mxu1 }
 0x332   :  { %v6938_v5 = vadd.f32 %v6937_v28, %v6936_v50 }
 0x333   :  { %v6939_v52 = vpop.f32.mrf.mxu1 }
 0x334   :  { %v9882_v14 = vadd.f32 %v6938_v5, %v2244_v25  ;;  %v6595_v5 = vld [vmem:[%s10722_s4 + $0x28] ss:$0 sm:$0xff] }
 0x335   :  { %v6940_v48 = vpop.f32.mrf.mxu1 }
 0x336   :  { %v6941_v46 = vadd.f32 %v6940_v48, %v6939_v52  ;;  %v2319_v57 = vsel %vm1377_vm0, %v9882_v14, 0.0 }
 0x337   :  { %v6942_v1 = vpop.f32.mrf.mxu1  ;;  %2320 = vadd.xlane.f32.xlu0 %v2319_v57 }
 0x338   :  { %v9889_v3 = vadd.f32 %v6941_v46, %v2245_v31  ;;  %v6596_v46 = vld [vmem:[%s10722_s4 + $0x30] ss:$0 sm:$0xff] }
 0x339   :  { %v6943_v37 = vpop.f32.mrf.mxu1 }
 0x33a   :  { %v6944_v19 = vadd.f32 %v6943_v37, %v6942_v1  ;;  %v2322_v56 = vsel %vm1377_vm0, %v9889_v3, 0.0 }
 0x33b   :  { %v6945_v63 = vpop.f32.mrf.mxu1  ;;  %2323 = vadd.xlane.f32.xlu0 %v2322_v56 }
 0x33c   :  { %v9896_v54 = vadd.f32 %v6944_v19, %v2246_v16 }
 0x33d   :  { %v6946_v20 = vpop.f32.mrf.mxu1 }
 0x33e   :  { %v6947_v44 = vadd.f32 %v6946_v20, %v6945_v63  ;;  %v2325_v6 = vsel %vm1377_vm0, %v9896_v54, 0.0 }
 0x33f   :  { %2326 = vadd.xlane.f32.xlu1 %v2325_v6 }
 0x340   :  { %v9903_v61 = vadd.f32 %v6947_v44, %v2247_v60 }
 0x342   :  { %v2328_v32 = vsel %vm1377_vm0, %v9903_v61, 0.0 }
 0x343   :  { %2329 = vadd.xlane.f32.xlu1 %v2328_v32 }
 0x3c0   :  { %v2321_v35 = vpop.xlane.xlu0 %2320 }
 0x3c1   :  { %v2332_v47 = vmul.f32 0.015625, %v2321_v35 }
 0x3c3   :  { %v9908_v18 = vsub.f32 %v9882_v14, %v2332_v47  ;;  %v7889_v47 = vld [vmem:[%s10721_s3 + $0x120] sm:$0xff]  }
 0x3c4   :  { %v2324_v58 = vpop.xlane.xlu0 %2323 }
 0x3c5   :  { %v2333_v0 = vmul.f32 0.015625, %v2324_v58  ;;  %v2340_v9 = vmul.f32 %v9908_v18, %v9908_v18  ;;  %v7891_v58 = vld [vmem:[%s10721_s3 + $0x110] sm:$0xff]  }
 0x3c7   :  { %v9913_v24 = vsub.f32 %v9889_v3, %v2333_v0  ;;  %v2344_v15 = vsel %vm1377_vm0, %v2340_v9, 0.0 }
 0x3c8   :  { %v2327_v10 = vpop.xlane.xlu1 %2326  ;;  %2345 = vadd.xlane.f32.xlu0 %v2344_v15 }
 0x3c9   :  { %v2334_v53 = vmul.f32 0.015625, %v2327_v10  ;;  %v2341_v40 = vmul.f32 %v9913_v24, %v9913_v24 }
 0x3cb   :  { %v9919_v11 = vsub.f32 %v9896_v54, %v2334_v53  ;;  %v2347_v33 = vsel %vm1377_vm0, %v2341_v40, 0.0 }
 0x3cc   :  { %v2330_v4 = vpop.xlane.xlu1 %2329  ;;  %2348 = vadd.xlane.f32.xlu1 %v2347_v33 }
 0x3cd   :  { %v2335_v38 = vmul.f32 0.015625, %v2330_v4  ;;  %v2342_v36 = vmul.f32 %v9919_v11, %v9919_v11 }
 0x3cf   :  { %v2339_v43 = vsub.f32 %v9903_v61, %v2335_v38  ;;  %v2350_v21 = vsel %vm1377_vm0, %v2342_v36, 0.0 }
 0x3d0   :  { %2351 = vadd.xlane.f32.xlu0 %v2350_v21 }
 0x3d1   :  { %v2343_v27 = vmul.f32 %v2339_v43, %v2339_v43 }
 0x3d3   :  { %v2353_v23 = vsel %vm1377_vm0, %v2343_v27, 0.0 }
 0x3d4   :  { %2354 = vadd.xlane.f32.xlu1 %v2353_v23 }
 0x451   :  { %v2346_v51 = vpop.xlane.xlu0 %2345 }
 0x452   :  { %v2356_v30 = vmul.f32 0.015625, %v2346_v51 }
 0x454   :  { %v2360_v34 = vadd.f32 1e-05, %v2356_v30  ;;  %v10014_v30 = vld [vmem:[%s10722_s4 + $0x80] sm:$0xff] }
 0x455   :  { %v2349_v39 = vpop.xlane.xlu1 %2348 }
 0x456   :  { %8002 = vrsqrt.f32 %v2360_v34  ;;  %v2357_v42 = vmul.f32 0.015625, %v2349_v39 }
 0x458   :  { %v2361_v55 = vadd.f32 1e-05, %v2357_v42  ;;  %v10020_v42 = vld [vmem:[%s10722_s4 + $0x78] sm:$0xff] }
 0x459   :  { %v2352_v62 = vpop.xlane.xlu0 %2351 }
 0x45a   :  { %8004 = vrsqrt.f32 %v2361_v55  ;;  %v2358_v29 = vmul.f32 0.015625, %v2352_v62 }
 0x45c   :  { %v2362_v59 = vadd.f32 1e-05, %v2358_v29 }
 0x45d   :  { %v2355_v45 = vpop.xlane.xlu1 %2354 }
 0x45e   :  { %8006 = vrsqrt.f32 %v2362_v59  ;;  %v2359_v22 = vmul.f32 0.015625, %v2355_v45  ;;  %v10027_v45 = vld [vmem:[%s10722_s4 + $0x88] sm:$0xff] }
 0x460   :  { %v2363_v50 = vadd.f32 1e-05, %v2359_v22 }
 0x462   :  { %8008 = vrsqrt.f32 %v2363_v50 }
 0x463   :  { %v8003_v25 = vpop.eup %8002 }
 0x464   :  { %v2368_v28 = vmul.f32 %v8003_v25, %v9908_v18  ;;  %v7890_v18 = vld [vmem:[%s10721_s3 + $0x118] sm:$0xff]  }
 0x466   :  { %v2376_v48 = vmul.f32 %v6595_v5, %v2368_v28 }
 0x467   :  { %v8005_v52 = vpop.eup %8004 }
 0x468   :  { %v2369_v31 = vmul.f32 %v8005_v52, %v9913_v24  ;;  %v2384_v37 = vadd.f32 %v6596_v46, %v2376_v48 }
 0x46a   :  { %v2377_v57 = vmul.f32 %v6595_v5, %v2369_v31 }
 0x46b   :  { %v8007_v1 = vpop.eup %8006 }
 0x46c   :  { %v2370_v16 = vmul.f32 %v8007_v1, %v9919_v11  ;;  %v2385_v19 = vadd.f32 %v6596_v46, %v2377_v57 }
 0x46e   :  { %v2388_v56 = vpack.c.bf16 %v2385_v19, %v2384_v37  ;;  %v2378_v20 = vmul.f32 %v6595_v5, %v2370_v16 }
 0x46f   :  { %v8009_v63 = vpop.eup %8008 }
 0x470   :  { %v2371_v60 = vmul.f32 %v8009_v63, %v2339_v43  ;;  %7366 = vmatprep.mubr.msk.bf16.mxu0 %vm1377_vm0, %v2388_v56  ;;  %7378 = vmatprep.mubr.msk.bf16.mxu1 %vm1377_vm0, %v2388_v56  ;;  %v2386_v6 = vadd.f32 %v6596_v46, %v2378_v20 }
 0x472   :  { %v2379_v44 = vmul.f32 %v6595_v5, %v2371_v60 }
 0x474   :  { %v2387_v32 = vadd.f32 %v6596_v46, %v2379_v44 }
 0x476   :  { %v2389_v35 = vpack.c.bf16 %v2387_v32, %v2386_v6 }
 0x478   :  { %7367 = vmatmul.mubr.msk.bf16.vlgmr.msra.gmra.mxu0 %vm1377_vm0, %v2389_v35  ;;  %7379 = vmatmul.mubr.msk.bf16.vlgmr.msra.gmra.mxu1 %vm1377_vm0, %v2389_v35 }
 0x479   :  { %7383 = vmatpush3.bf16.msra.mxu0 %v7888_v26  ;;  %7390 = vmatprep.mubr.msk.bf16.mxu0 %vm1377_vm0, %v2388_v56 }
 0x47a   :  { %7384 = vmatprep.subr.bf16.mxu0 %v7889_v47 }
 0x47d   :  { %7385 = vmatpush3.bf16.msra.mxu0 %v7889_v47 }
 0x47e   :  { %7386 = vmatprep.subr.bf16.mxu0 %v7890_v18 }
 0x481   :  { %7387 = vmatpush3.bf16.msra.mxu0 %v7890_v18 }
 0x482   :  { %7388 = vmatprep.subr.bf16.mxu0 %v7891_v58 }
 0x485   :  { %7389 = vmatpush3.bf16.msra.mxu0 %v7891_v58 }
 0x488   :  { %7391 = vmatmul.mubr.msk.bf16.vlgmr.msra.gmra.mxu0 %vm1377_vm0, %v2389_v35 }
 0x538   :  { %v7368_v0 = vpop.f32.mrf.mxu0  ;;  %v7380_v9 = vpop.f32.mrf.mxu1 }
 0x53a   :  { %v2462_v24 = vpop.f32.mrf.mxu0  ;;  %v2543_v15 = vpop.f32.mrf.mxu1 }
 0x53c   :  { %v7369_v10 = vpop.f32.mrf.mxu0  ;;  %v7381_v53 = vpop.f32.mrf.mxu1 }
 0x53d   :  { %v9978_v40 = vpack.c.bf16 %v7381_v53, %v7380_v9  ;;  %v9994_v12 = vpack.c.bf16 %v7369_v10, %v7368_v0 }
 0x53e   :  { %v2465_v11 = vpop.f32.mrf.mxu0  ;;  %v2546_v33 = vpop.f32.mrf.mxu1 }
 0x53f   :  { %v9980_v4 = vpack.c.bf16 %v2465_v11, %v2462_v24  ;;  %v9982_v38 = vpack.c.bf16 %v2546_v33, %v2543_v15  ;;  %7818 = vmatprep.subr.msk.bf16.mxu1 %vm2649_vm2, %v9978_v40  ;;  %v2660_v36 = vsel %vm2649_vm2, %v9978_v40, 0 }
 0x540   :  { %7395 = vmatpush3.bf16.xpose.msra.mxu1 %v2660_v36 }
 0x541   :  { %7819 = vmatprep.subr.msk.bf16.mxu1 %vm2649_vm2, %v9982_v38  ;;  %7398 = vmatprep.mubr.msk.bf16.mxu1 %vm2649_vm2, %v9980_v4  ;;  %v2657_v43 = vsel %vm2649_vm2, %v9982_v38, 0 }
 0x548   :  { %v7392_v21 = vpop.f32.mrf.mxu0  ;;  %7397 = vmatpush3.bf16.xpose.msra.mxu1 %v2657_v43 }
 0x54a   :  { %v2624_v27 = vpop.f32.mrf.mxu0 }
 0x54c   :  { %v7393_v23 = vpop.f32.mrf.mxu0 }
 0x54d   :  { %v9996_v17 = vpack.c.bf16 %v7393_v23, %v7392_v21 }
 0x54e   :  { %v2627_v41 = vpop.f32.mrf.mxu0 }
 0x54f   :  { %v9998_v49 = vpack.c.bf16 %v2627_v41, %v2624_v27  ;;  %7402 = vmatprep.subr.bf16.mxu1 %v9996_v17  ;;  %7399 = vmatmul.mubr.msk.bf16.vlgmr.msra.gmra.mxu1 %vm2649_vm2, %v9994_v12 }
 0x550   :  { %7403 = vmatpush3.bf16.msra.mxu1 %v9996_v17 }
 0x551   :  { %7404 = vmatprep.subr.bf16.mxu1 %v9998_v49 }
 0x554   :  { %7405 = vmatpush3.bf16.msra.mxu1 %v9998_v49 }
 0x60f   :  { %v7400_v2 = vpop.f32.mrf.mxu1 }
 0x610   :  { %v2713_v13 = vmul.f32 0.17677669, %v7400_v2 }
 0x611   :  { %v2696_v8 = vpop.f32.mrf.mxu1 }
 0x612   :  { %v2711_v26 = vmul.f32 0.17677669, %v2696_v8  ;;  %v2717_v59 = vadd.f32 %v2713_v13, %v10014_v30 }
 0x613   :  { %v7401_v51 = vpop.f32.mrf.mxu1 }
 0x614   :  { %v2715_v34 = vadd.f32 %v2711_v26, %v10009_v7  ;;  %v2714_v55 = vmul.f32 0.17677669, %v7401_v51  ;;  %v2725_v50 = vsel %vm2649_vm2, %v2717_v59, -inf }
 0x615   :  { %v2699_v39 = vpop.f32.mrf.mxu1 }
 0x616   :  { %v2712_v62 = vmul.f32 0.17677669, %v2699_v39  ;;  %v2719_v29 = vsel %vm2649_vm2, %v2715_v34, -inf  ;;  %v2718_v28 = vadd.f32 %v2714_v55, %v10027_v45  ;;  %v7892_v39 = vld [vmem:[%s10721_s3 + $0x138] sm:$0xff]   ;;  %v7893_v55 = vld [vmem:[%s10721_s3 + $0x130] sm:$0xff]  }
 0x617   :  { %2720 = vmax.xlane.f32.xlu0 %v2719_v29 }
 0x618   :  { %v2716_v22 = vadd.f32 %v2712_v62, %v10020_v42  ;;  %v2728_v5 = vsel %vm2649_vm2, %v2718_v28, -inf }
 0x61a   :  { %v2722_v25 = vsel %vm2649_vm2, %v2716_v22, -inf }
 0x61b   :  { %2726 = vmax.xlane.f32.xlu0 %v2725_v50  ;;  %2723 = vmax.xlane.f32.xlu1 %v2722_v25 }
 0x61f   :  { %2729 = vmax.xlane.f32.xlu1 %v2728_v5 }
 0x6a0   :  { %v2721_v52 = vpop.xlane.xlu0 %2720 }
 0x6a1   :  { %v2731_v31 = vsub.f32 %v2715_v34, %v2721_v52 }
 0x6a3   :  { %v2735_v16 = vmul.f32 1.442695, %v2731_v31 }
 0x6a4   :  { %v2727_v48 = vpop.xlane.xlu0 %2726  ;;  %v2724_v46 = vpop.xlane.xlu1 %2723 }
 0x6a5   :  { %v2733_v57 = vsub.f32 %v2717_v59, %v2727_v48  ;;  %v2732_v1 = vsub.f32 %v2716_v22, %v2724_v46 }
 0x6a7   :  { %v2739_v37 = vmul.f32 1.442695, %v2733_v57  ;;  %v2737_v19 = vmul.f32 1.442695, %v2732_v1 }
 0x6a8   :  { %v2730_v56 = vpop.xlane.xlu1 %2729 }
 0x6a9   :  { %8010 = vpow2.f32 %v2739_v37  ;;  %v2734_v63 = vsub.f32 %v2718_v28, %v2730_v56 }
 0x6aa   :  { %8012 = vpow2.f32 %v2737_v19 }
 0x6ab   :  { %8014 = vpow2.f32 %v2735_v16  ;;  %v2741_v60 = vmul.f32 1.442695, %v2734_v63 }
 0x6ad   :  { %8016 = vpow2.f32 %v2741_v60 }
 0x6b6   :  { %v8011_v20 = vpop.eup %8010 }
 0x6b7   :  { %v8013_v44 = vpop.eup %8012  ;;  %v2749_v6 = vsel %vm2649_vm2, %v8011_v20, 0.0 }
 0x6b8   :  { %v8015_v32 = vpop.eup %8014  ;;  %2750 = vadd.xlane.f32.xlu0 %v2749_v6  ;;  %v2746_v35 = vsel %vm2649_vm2, %v8013_v44, 0.0 }
 0x6b9   :  { %2747 = vadd.xlane.f32.xlu1 %v2746_v35  ;;  %v2743_v18 = vsel %vm2649_vm2, %v8015_v32, 0.0 }
 0x6ba   :  { %v8017_v47 = vpop.eup %8016 }
 0x6bb   :  { %v2752_v58 = vsel %vm2649_vm2, %v8017_v47, 0.0 }
 0x6bc   :  { %2744 = vadd.xlane.f32.xlu0 %v2743_v18 }
 0x6bd   :  { %2753 = vadd.xlane.f32.xlu1 %v2752_v58 }
 0x6ce   :  { %2834 = vrot.lane.b32.xlu1 %v9982_v38, %s8148_s18 }
 0x6d2   :  { %2828 = vrot.lane.b32.xlu1 %v9980_v4, %s8148_s18  ;;  %2836 = vrot.lane.b32.xlu0 %v9978_v40, %s8148_s18 }
 0x6d6   :  { %2830 = vrot.lane.b32.xlu1 %v9994_v12, %s8148_s18 }
 0x741   :  { %v2751_v0 = vpop.xlane.xlu0 %2750 }
 0x742   :  { %v2748_v9 = vpop.xlane.xlu1 %2747 }
 0x743   :  { %8018 = vrcp.f32 %v2748_v9 }
 0x744   :  { %8020 = vrcp.f32 %v2751_v0 }
 0x745   :  { %v2745_v24 = vpop.xlane.xlu0 %2744 }
 0x746   :  { %8022 = vrcp.f32 %v2745_v24  ;;  %v2754_v15 = vpop.xlane.xlu1 %2753 }
 0x747   :  { %8024 = vrcp.f32 %v2754_v15 }
 0x749   :  { %v2837_v10 = vpop.permute.xlu0 %2836 }
 0x74a   :  { %7820 = vmatprep.subr.msk.bf16.mxu1 %vm2649_vm2, %v2837_v10  ;;  %v2835_v36 = vpop.permute.xlu1 %2834  ;;  %v2848_v13 = vsel %vm2649_vm2, %v2837_v10, 0 }
 0x74b   :  { %v2845_v51 = vsel %vm2649_vm2, %v2835_v36, 0 }
 0x74e   :  { %v2829_v26 = vpop.permute.xlu1 %2828 }
 0x750   :  { %v8019_v53 = vpop.eup %8018 }
 0x751   :  { %v8021_v11 = vpop.eup %8020  ;;  %v2760_v27 = vmul.f32 %v8019_v53, %v8013_v44 }
 0x752   :  { %v2761_v23 = vmul.f32 %v8021_v11, %v8011_v20  ;;  %v2831_v34 = vpop.permute.xlu1 %2830 }
 0x753   :  { %v8023_v33 = vpop.eup %8022 }
 0x754   :  { %v8025_v43 = vpop.eup %8024  ;;  %v2759_v21 = vmul.f32 %v8023_v33, %v8015_v32 }
 0x755   :  { %v2762_v41 = vmul.f32 %v8025_v43, %v8017_v47 }
 0x756   :  { %v2763_v2 = vpack.c.bf16 %v2760_v27, %v2759_v21 }
 0x757   :  { %v2764_v8 = vpack.c.bf16 %v2762_v41, %v2761_v23 }
 0x758   :  { %7406 = vmatprep.mubr.msk.bf16.mxu1 %vm2649_vm2, %v2763_v2 }
 0x759   :  { %7407 = vmatmul.mubr.msk.bf16.vlgmr.msra.gmra.mxu1 %vm2649_vm2, %v2764_v8 }
 0x75a   :  { %7411 = vmatpush3.bf16.xpose.msra.mxu1 %v2848_v13  ;;  %7414 = vmatprep.mubr.msk.bf16.mxu1 %vm2649_vm2, %v2829_v26 }
 0x75b   :  { %7821 = vmatprep.subr.msk.bf16.mxu1 %vm2649_vm2, %v2835_v36 }
 0x762   :  { %7413 = vmatpush3.bf16.xpose.msra.mxu1 %v2845_v51 }
 0x763   :  { %7434 = vmatprep.subr.bf16.mxu1 %v7892_v39 }
 0x769   :  { %7415 = vmatmul.mubr.msk.bf16.vlgmr.msra.gmra.mxu1 %vm2649_vm2, %v2831_v34 }
 0x76a   :  { %7435 = vmatpush3.bf16.msra.mxu1 %v7892_v39 }
 0x76b   :  { %7436 = vmatprep.subr.bf16.mxu1 %v7893_v55 }
 0x76e   :  { %7437 = vmatpush3.bf16.msra.mxu1 %v7893_v55 }
 0x819   :  { %v7408_v62 = vpop.f32.mrf.mxu1 }
 0x81b   :  { %v2805_v29 = vpop.f32.mrf.mxu1 }
 0x81d   :  { %v7409_v59 = vpop.f32.mrf.mxu1 }
 0x81e   :  { %v2821_v25 = vpack.c.bf16 %v7409_v59, %v7408_v62 }
 0x81f   :  { %v2808_v22 = vpop.f32.mrf.mxu1 }
 0x820   :  { %v2820_v50 = vpack.c.bf16 %v2808_v22, %v2805_v29 }
 0x822   :  { %7438 = vmatprep.mubr.msk.bf16.mxu1 %vm2649_vm2, %v2820_v50 }
 0x823   :  { %7439 = vmatmul.mubr.msk.bf16.vlgmr.msra.gmra.mxu1 %vm2649_vm2, %v2821_v25  ;;  %v7895_v25 = vld [vmem:[%s10721_s3 + $0x140] sm:$0xff]  }
 0x829   :  { %v7416_v28 = vpop.f32.mrf.mxu1 }
 0x82a   :  { %v2901_v52 = vmul.f32 0.17677669, %v7416_v28 }
 0x82b   :  { %v2884_v5 = vpop.f32.mrf.mxu1 }
 0x82c   :  { %v2899_v31 = vmul.f32 0.17677669, %v2884_v5  ;;  %v2905_v19 = vadd.f32 %v2901_v52, %v10014_v30 }
 0x82d   :  { %v7417_v48 = vpop.f32.mrf.mxu1 }
 0x82e   :  { %v2903_v46 = vadd.f32 %v2899_v31, %v10009_v7  ;;  %v2902_v1 = vmul.f32 0.17677669, %v7417_v48  ;;  %v2913_v63 = vsel %vm2649_vm2, %v2905_v19, -inf }
 0x82f   :  { %v2887_v57 = vpop.f32.mrf.mxu1 }
 0x830   :  { %v2900_v16 = vmul.f32 0.17677669, %v2887_v57  ;;  %v2907_v37 = vsel %vm2649_vm2, %v2903_v46, -inf  ;;  %v2906_v20 = vadd.f32 %v2902_v1, %v10027_v45 }
 0x831   :  { %2908 = vmax.xlane.f32.xlu0 %v2907_v37 }
 0x832   :  { %v2904_v56 = vadd.f32 %v2900_v16, %v10020_v42  ;;  %v2916_v44 = vsel %vm2649_vm2, %v2906_v20, -inf }
 0x834   :  { %v2910_v60 = vsel %vm2649_vm2, %v2904_v56, -inf }
 0x835   :  { %2914 = vmax.xlane.f32.xlu0 %v2913_v63  ;;  %2911 = vmax.xlane.f32.xlu1 %v2910_v60 }
 0x839   :  { %2917 = vmax.xlane.f32.xlu0 %v2916_v44 }
 0x8ba   :  { %v2909_v6 = vpop.xlane.xlu0 %2908 }
 0x8bb   :  { %v2919_v32 = vsub.f32 %v2903_v46, %v2909_v6 }
 0x8bd   :  { %v2923_v58 = vmul.f32 1.442695, %v2919_v32 }
 0x8be   :  { %v2915_v35 = vpop.xlane.xlu0 %2914  ;;  %v2912_v47 = vpop.xlane.xlu1 %2911 }
 0x8bf   :  { %v2921_v18 = vsub.f32 %v2905_v19, %v2915_v35  ;;  %v2920_v9 = vsub.f32 %v2904_v56, %v2912_v47 }
 0x8c1   :  { %v2927_v0 = vmul.f32 1.442695, %v2921_v18  ;;  %v2925_v10 = vmul.f32 1.442695, %v2920_v9 }
 0x8c2   :  { %v2918_v24 = vpop.xlane.xlu0 %2917 }
 0x8c3   :  { %8026 = vpow2.f32 %v2927_v0  ;;  %v2922_v15 = vsub.f32 %v2906_v20, %v2918_v24 }
 0x8c4   :  { %8028 = vpow2.f32 %v2923_v58 }
 0x8c5   :  { %v2929_v53 = vmul.f32 1.442695, %v2922_v15 }
 0x8c7   :  { %8030 = vpow2.f32 %v2929_v53 }
 0x8c8   :  { %8032 = vpow2.f32 %v2925_v10 }
 0x8d0   :  { %v8027_v11 = vpop.eup %8026 }
 0x8d1   :  { %v2937_v33 = vsel %vm2649_vm2, %v8027_v11, 0.0  ;;  %v8029_v36 = vpop.eup %8028 }
 0x8d2   :  { %2938 = vadd.xlane.f32.xlu0 %v2937_v33  ;;  %v2931_v21 = vsel %vm2649_vm2, %v8029_v36, 0.0 }
 0x8d4   :  { %v8031_v43 = vpop.eup %8030 }
 0x8d5   :  { %v2940_v27 = vsel %vm2649_vm2, %v8031_v43, 0.0  ;;  %v8033_v23 = vpop.eup %8032 }
 0x8d6   :  { %2932 = vadd.xlane.f32.xlu0 %v2931_v21  ;;  %2941 = vadd.xlane.f32.xlu1 %v2940_v27  ;;  %v2934_v41 = vsel %vm2649_vm2, %v8033_v23, 0.0 }
 0x8da   :  { %2935 = vadd.xlane.f32.xlu1 %v2934_v41 }
 0x8eb   :  { %2955 = vrot.lane.b32.xlu1 %v9998_v49, %s8148_s18 }
 0x8ec   :  { %2957 = vrot.lane.b32.xlu0 %v9996_v17, %s8148_s18 }
 0x8ef   :  { %3162 = vrot.lane.b32.xlu1 %v9978_v40, %s8149_s22 }
 0x8f0   :  { %3156 = vrot.lane.b32.xlu0 %v9980_v4, %s8149_s22 }
 0x8f3   :  { %3160 = vrot.lane.b32.xlu1 %v9982_v38, %s8149_s22 }
 0x8f4   :  { %3423 = vrot.lane.b32.xlu0 %v9978_v40, %s8150_s23 }
 0x8f7   :  { %3158 = vrot.lane.b32.xlu1 %v9994_v12, %s8149_s22 }
 0x8f8   :  { %3417 = vrot.lane.b32.xlu0 %v9980_v4, %s8150_s23  ;;  %v7894_v4 = vld [vmem:[%s10721_s3 + $0x148] sm:$0xff]  }
 0x8fb   :  { %3421 = vrot.lane.b32.xlu1 %v9982_v38, %s8150_s23 }
 0x8ff   :  { %3419 = vrot.lane.b32.xlu1 %v9994_v12, %s8150_s23 }
 0x95b   :  { %v2939_v2 = vpop.xlane.xlu0 %2938 }
 0x95f   :  { %v2933_v8 = vpop.xlane.xlu0 %2932  ;;  %v2942_v13 = vpop.xlane.xlu1 %2941 }
 0x960   :  { %8034 = vrcp.f32 %v2942_v13 }
 0x961   :  { %8036 = vrcp.f32 %v2933_v8 }
 0x962   :  { %8038 = vrcp.f32 %v2939_v2 }
 0x963   :  { %v2958_v26 = vpop.permute.xlu0 %2957  ;;  %v2936_v40 = vpop.xlane.xlu1 %2935 }
 0x964   :  { %8040 = vrcp.f32 %v2936_v40  ;;  %7418 = vmatprep.subr.bf16.mxu0 %v2958_v26 }
 0x965   :  { %7419 = vmatpush3.bf16.msra.mxu0 %v2958_v26 }
 0x967   :  { %v2956_v51 = vpop.permute.xlu1 %2955  ;;  %v3157_v1 = vpop.permute.xlu0 %3156 }
 0x968   :  { %7420 = vmatprep.subr.bf16.mxu0 %v2956_v51 }
 0x969   :  { %7421 = vmatpush3.bf16.msra.mxu0 %v2956_v51 }
 0x96a   :  { %7426 = vmatprep.subr.bf16.mxu0 %v7894_v4 }
 0x96b   :  { %v3163_v28 = vpop.permute.xlu1 %3162  ;;  %v3424_v56 = vpop.permute.xlu0 %3423 }
 0x96c   :  { %v3174_v16 = vsel %vm2649_vm2, %v3163_v28, 0  ;;  %v3435_v60 = vsel %vm2649_vm2, %v3424_v56, 0 }
 0x96d   :  { %v8035_v38 = vpop.eup %8034 }
 0x96e   :  { %v8037_v12 = vpop.eup %8036  ;;  %v2950_v55 = vmul.f32 %v8035_v38, %v8031_v43 }
 0x96f   :  { %v8039_v34 = vpop.eup %8038  ;;  %v2947_v62 = vmul.f32 %v8037_v12, %v8029_v36  ;;  %v3161_v37 = vpop.permute.xlu1 %3160 }
 0x970   :  { %v2949_v59 = vmul.f32 %v8039_v34, %v8027_v11  ;;  %v3171_v19 = vsel %vm2649_vm2, %v3161_v37, 0  ;;  %v3418_v20 = vpop.permute.xlu0 %3417 }
 0x971   :  { %v8041_v39 = vpop.eup %8040 }
 0x972   :  { %v2948_v29 = vmul.f32 %v8041_v39, %v8033_v23  ;;  %v2952_v50 = vpack.c.bf16 %v2950_v55, %v2949_v59 }
 0x973   :  { %v3159_v63 = vpop.permute.xlu1 %3158 }
 0x974   :  { %v2951_v22 = vpack.c.bf16 %v2948_v29, %v2947_v62 }
 0x976   :  { %7422 = vmatprep.mubr.msk.bf16.mxu0 %vm2649_vm2, %v2951_v22 }
 0x977   :  { %7423 = vmatmul.mubr.msk.bf16.vlgmr.msra.gmra.mxu0 %vm2649_vm2, %v2952_v50  ;;  %v3422_v44 = vpop.permute.xlu1 %3421 }
 0x978   :  { %7427 = vmatpush3.bf16.msra.mxu0 %v7894_v4  ;;  %v3432_v6 = vsel %vm2649_vm2, %v3422_v44, 0 }
 0x979   :  { %7428 = vmatprep.subr.bf16.mxu0 %v7895_v25 }
 0x97b   :  { %v3420_v32 = vpop.permute.xlu1 %3419 }
 0x97c   :  { %7429 = vmatpush3.bf16.msra.mxu0 %v7895_v25 }
 0x97d   :  { %7822 = vmatprep.subr.msk.bf16.mxu0 %vm2649_vm2, %v3163_v28 }
 0xa37   :  { %v7424_v5 = vpop.f32.mrf.mxu0 }
 0xa39   :  { %v3001_v52 = vpop.f32.mrf.mxu0 }
 0xa3b   :  { %v7425_v31 = vpop.f32.mrf.mxu0 }
 0xa3c   :  { %v3017_v57 = vpack.c.bf16 %v7425_v31, %v7424_v5 }
 0xa3d   :  { %v3004_v48 = vpop.f32.mrf.mxu0 }
 0xa3e   :  { %v3016_v46 = vpack.c.bf16 %v3004_v48, %v3001_v52 }
 0xa40   :  { %7430 = vmatprep.mubr.msk.bf16.mxu0 %vm2649_vm2, %v3016_v46 }
 0xa41   :  { %7431 = vmatmul.mubr.msk.bf16.vlgmr.msra.gmra.mxu0 %vm2649_vm2, %v3017_v57 }
 0xa42   :  { %7443 = vmatpush3.bf16.xpose.msra.mxu0 %v3174_v16  ;;  %7446 = vmatprep.mubr.msk.bf16.mxu0 %vm2649_vm2, %v3157_v1 }
 0xa43   :  { %7823 = vmatprep.subr.msk.bf16.mxu0 %vm2649_vm2, %v3161_v37 }
 0xa4a   :  { %7445 = vmatpush3.bf16.xpose.msra.mxu0 %v3171_v19 }
 0xa4b   :  { %7824 = vmatprep.subr.msk.bf16.mxu0 %vm2649_vm2, %v3424_v56 }
 0xa51   :  { %7447 = vmatmul.mubr.msk.bf16.vlgmr.msra.gmra.mxu0 %vm2649_vm2, %v3159_v63 }
 0xa52   :  { %7467 = vmatpush3.bf16.xpose.msra.mxu0 %v3435_v60  ;;  %7470 = vmatprep.mubr.msk.bf16.mxu0 %vm2649_vm2, %v3418_v20 }
 0xa53   :  { %7825 = vmatprep.subr.msk.bf16.mxu0 %vm2649_vm2, %v3422_v44 }
 0xa5a   :  { %7469 = vmatpush3.bf16.xpose.msra.mxu0 %v3432_v6 }
 0xa61   :  { %7471 = vmatmul.mubr.msk.bf16.vlgmr.msra.gmra.mxu0 %vm2649_vm2, %v3420_v32 }
 0xb01   :  { %v10116_v35 = vpop.f32.mrf.mxu0 }
 0xb03   :  { %v10118_v47 = vpop.f32.mrf.mxu0 }
 0xb05   :  { %v10120_v18 = vpop.f32.mrf.mxu0 }
 0xb07   :  { %v10122_v58 = vpop.f32.mrf.mxu0 }
 0xb11   :  { %v7448_v0 = vpop.f32.mrf.mxu0 }
 0xb12   :  { %v3227_v24 = vmul.f32 0.17677669, %v7448_v0 }
 0xb13   :  { %v3210_v9 = vpop.f32.mrf.mxu0 }
 0xb14   :  { %v3225_v15 = vmul.f32 0.17677669, %v3210_v9  ;;  %v3231_v21 = vadd.f32 %v3227_v24, %v10014_v30 }
 0xb15   :  { %v7449_v10 = vpop.f32.mrf.mxu0 }
 0xb16   :  { %v3229_v53 = vadd.f32 %v3225_v15, %v10009_v7  ;;  %v3228_v33 = vmul.f32 0.17677669, %v7449_v10  ;;  %v3239_v23 = vsel %vm2649_vm2, %v3231_v21, -inf }
 0xb17   :  { %v3213_v11 = vpop.f32.mrf.mxu0 }
 0xb18   :  { %v3226_v36 = vmul.f32 0.17677669, %v3213_v11  ;;  %v3233_v43 = vsel %vm2649_vm2, %v3229_v53, -inf  ;;  %v3232_v2 = vadd.f32 %v3228_v33, %v10027_v45 }
 0xb19   :  { %3234 = vmax.xlane.f32.xlu0 %v3233_v43 }
 0xb1a   :  { %v3230_v27 = vadd.f32 %v3226_v36, %v10020_v42  ;;  %v3242_v8 = vsel %vm2649_vm2, %v3232_v2, -inf }
 0xb1c   :  { %v3236_v41 = vsel %vm2649_vm2, %v3230_v27, -inf }
 0xb1d   :  { %3240 = vmax.xlane.f32.xlu0 %v3239_v23  ;;  %3237 = vmax.xlane.f32.xlu1 %v3236_v41 }
 0xb21   :  { %3243 = vmax.xlane.f32.xlu0 %v3242_v8  ;;  %v7472_v48 = vpop.f32.mrf.mxu0 }
 0xb22   :  { %v3488_v37 = vmul.f32 0.17677669, %v7472_v48  ;;  %v7440_v48 = vpop.f32.mrf.mxu1 }
 0xb23   :  { %v3471_v46 = vpop.f32.mrf.mxu0 }
 0xb24   :  { %v3486_v19 = vmul.f32 0.17677669, %v3471_v46  ;;  %v3492_v20 = vadd.f32 %v3488_v37, %v10014_v30  ;;  %v3141_v46 = vpop.f32.mrf.mxu1 }
 0xb25   :  { %v7473_v57 = vpop.f32.mrf.mxu0 }
 0xb26   :  { %v3489_v63 = vmul.f32 0.17677669, %v7473_v57  ;;  %v3490_v44 = vadd.f32 %v3486_v19, %v10009_v7  ;;  %v3500_v6 = vsel %vm2649_vm2, %v3492_v20, -inf  ;;  %v7441_v57 = vpop.f32.mrf.mxu1 }
 0xb27   :  { %v3474_v1 = vpop.f32.mrf.mxu0 }
 0xb28   :  { %v3487_v16 = vmul.f32 0.17677669, %v3474_v1  ;;  %v3494_v32 = vsel %vm2649_vm2, %v3490_v44, -inf  ;;  %v3493_v0 = vadd.f32 %v3489_v63, %v10027_v45  ;;  %v3144_v1 = vpop.f32.mrf.mxu1 }
 0xb2a   :  { %v3491_v56 = vadd.f32 %v3487_v16, %v10020_v42  ;;  %v3503_v9 = vsel %vm2649_vm2, %v3493_v0, -inf }
 0xb2c   :  { %v3497_v60 = vsel %vm2649_vm2, %v3491_v56, -inf }
 0xba2   :  { %v3235_v13 = vpop.xlane.xlu0 %3234 }
 0xba3   :  { %v3245_v26 = vsub.f32 %v3229_v53, %v3235_v13 }
 0xba5   :  { %v3249_v38 = vmul.f32 1.442695, %v3245_v26 }
 0xba6   :  { %v3241_v40 = vpop.xlane.xlu0 %3240  ;;  %v3238_v4 = vpop.xlane.xlu1 %3237 }
 0xba7   :  { %v3247_v51 = vsub.f32 %v3231_v21, %v3241_v40  ;;  %v3246_v34 = vsub.f32 %v3230_v27, %v3238_v4 }
 0xba9   :  { %v3253_v12 = vmul.f32 1.442695, %v3247_v51  ;;  %v3251_v62 = vmul.f32 1.442695, %v3246_v34 }
 0xbaa   :  { %v3244_v39 = vpop.xlane.xlu0 %3243 }
 0xbab   :  { %8042 = vpow2.f32 %v3253_v12  ;;  %v3248_v55 = vsub.f32 %v3232_v2, %v3244_v39 }
 0xbac   :  { %8044 = vpow2.f32 %v3249_v38 }
 0xbad   :  { %v3255_v29 = vmul.f32 1.442695, %v3248_v55 }
 0xbaf   :  { %8046 = vpow2.f32 %v3255_v29 }
 0xbb0   :  { %8048 = vpow2.f32 %v3251_v62 }
 0xbb8   :  { %v8043_v59 = vpop.eup %8042 }
 0xbb9   :  { %v3263_v22 = vsel %vm2649_vm2, %v8043_v59, 0.0  ;;  %v8045_v50 = vpop.eup %8044 }
 0xbba   :  { %3264 = vadd.xlane.f32.xlu0 %v3263_v22  ;;  %v3257_v28 = vsel %vm2649_vm2, %v8045_v50, 0.0 }
 0xbbc   :  { %v8047_v25 = vpop.eup %8046 }
 0xbbd   :  { %v3266_v5 = vsel %vm2649_vm2, %v8047_v25, 0.0  ;;  %v8049_v52 = vpop.eup %8048 }
 0xbbe   :  { %3258 = vadd.xlane.f32.xlu0 %v3257_v28  ;;  %3267 = vadd.xlane.f32.xlu1 %v3266_v5  ;;  %v3260_v31 = vsel %vm2649_vm2, %v8049_v52, 0.0 }
 0xbc2   :  { %3261 = vadd.xlane.f32.xlu1 %v3260_v31  ;;  %v7897_v31 = vld [vmem:[%s10721_s3 + $0x150] sm:$0xff]  }
 0xbd3   :  { %3279 = vrot.lane.b32.xlu1 %v9998_v49, %s8149_s22 }
 0xbd4   :  { %3281 = vrot.lane.b32.xlu0 %v9996_v17, %s8149_s22 }
 0xbf3   :  { %3498 = vmax.xlane.f32.xlu0 %v3497_v60 }
 0xbf7   :  { %3501 = vmax.xlane.f32.xlu0 %v3500_v6  ;;  %3495 = vmax.xlane.f32.xlu1 %v3494_v32 }
 0xbfb   :  { %3504 = vmax.xlane.f32.xlu1 %v3503_v9 }
 0xc43   :  { %v3265_v42 = vpop.xlane.xlu0 %3264 }
 0xc47   :  { %v3259_v24 = vpop.xlane.xlu0 %3258  ;;  %v3268_v15 = vpop.xlane.xlu1 %3267 }
 0xc48   :  { %8050 = vrcp.f32 %v3268_v15 }
 0xc49   :  { %8052 = vrcp.f32 %v3259_v24 }
 0xc4a   :  { %8054 = vrcp.f32 %v3265_v42 }
 0xc4b   :  { %v3282_v30 = vpop.permute.xlu0 %3281  ;;  %v3262_v7 = vpop.xlane.xlu1 %3261 }
 0xc4c   :  { %8056 = vrcp.f32 %v3262_v7  ;;  %7450 = vmatprep.subr.bf16.mxu1 %v3282_v30 }
 0xc4d   :  { %7451 = vmatpush3.bf16.msra.mxu1 %v3282_v30 }
 0xc4f   :  { %v3280_v10 = vpop.permute.xlu1 %3279 }
 0xc50   :  { %7452 = vmatprep.subr.bf16.mxu1 %v3280_v10 }
 0xc51   :  { %7453 = vmatpush3.bf16.msra.mxu1 %v3280_v10 }
 0xc55   :  { %v8051_v45 = vpop.eup %8050 }
 0xc56   :  { %v8053_v53 = vpop.eup %8052  ;;  %v3276_v36 = vmul.f32 %v8051_v45, %v8047_v25 }
 0xc57   :  { %v8055_v11 = vpop.eup %8054  ;;  %v3273_v43 = vmul.f32 %v8053_v53, %v8045_v50 }
 0xc58   :  { %v3275_v27 = vmul.f32 %v8055_v11, %v8043_v59  ;;  %v7898_v11 = vld [vmem:[%s10721_s3 + $0x168] sm:$0xff]  }
 0xc59   :  { %v8057_v33 = vpop.eup %8056 }
 0xc5a   :  { %v3274_v21 = vmul.f32 %v8057_v33, %v8049_v52  ;;  %v3278_v41 = vpack.c.bf16 %v3276_v36, %v3275_v27  ;;  %v7896_v52 = vld [vmem:[%s10721_s3 + $0x158] sm:$0xff]   ;;  %v7899_v33 = vld [vmem:[%s10721_s3 + $0x160] sm:$0xff]   ;;  %v3150_v36 = vadd.f32 %v7440_v48, %v10116_v35 }
 0xc5b   :  { %7458 = vmatprep.subr.bf16.mxu1 %v7896_v52 }
 0xc5c   :  { %v3277_v23 = vpack.c.bf16 %v3274_v21, %v3273_v43  ;;  %v3142_v21 = vadd.f32 %v3141_v46, %v10118_v47 }
 0xc5e   :  { %7454 = vmatprep.mubr.msk.bf16.mxu1 %vm2649_vm2, %v3277_v23 }
 0xc5f   :  { %7455 = vmatmul.mubr.msk.bf16.vlgmr.msra.gmra.mxu1 %vm2649_vm2, %v3278_v41  ;;  %v3153_v41 = vadd.f32 %v7441_v57, %v10120_v18 }
 0xc60   :  { %7459 = vmatpush3.bf16.msra.mxu1 %v7896_v52 }
 0xc61   :  { %7460 = vmatprep.subr.bf16.mxu1 %v7897_v31 }
 0xc64   :  { %7461 = vmatpush3.bf16.msra.mxu1 %v7897_v31 }
 0xc7c   :  { %v3499_v2 = vpop.xlane.xlu0 %3498 }
 0xc7d   :  { %v3507_v4 = vsub.f32 %v3491_v56, %v3499_v2 }
 0xc7f   :  { %v3512_v39 = vmul.f32 1.442695, %v3507_v4 }
 0xc80   :  { %v3502_v8 = vpop.xlane.xlu0 %3501  ;;  %v3496_v13 = vpop.xlane.xlu1 %3495 }
 0xc81   :  { %v3508_v26 = vsub.f32 %v3492_v20, %v3502_v8  ;;  %v3506_v40 = vsub.f32 %v3490_v44, %v3496_v13  ;;  %v3145_v13 = vadd.f32 %v3144_v1, %v10122_v58  ;;  %v6647_v58 = vld [vmem:[%s10722_s4 + $0x48] ss:$0 sm:$0xff] }
 0xc83   :  { %v3514_v51 = vmul.f32 1.442695, %v3508_v26  ;;  %v3510_v38 = vmul.f32 1.442695, %v3506_v40 }
 0xc84   :  { %v3505_v12 = vpop.xlane.xlu1 %3504 }
 0xc85   :  { %8058 = vpow2.f32 %v3514_v51  ;;  %v3509_v34 = vsub.f32 %v3493_v0, %v3505_v12 }
 0xc86   :  { %8060 = vpow2.f32 %v3510_v38 }
 0xc87   :  { %v3516_v55 = vmul.f32 1.442695, %v3509_v34 }
 0xc89   :  { %8062 = vpow2.f32 %v3516_v55 }
 0xc8a   :  { %8064 = vpow2.f32 %v3512_v39 }
 0xc92   :  { %v8059_v62 = vpop.eup %8058 }
 0xc93   :  { %v3524_v29 = vsel %vm2649_vm2, %v8059_v62, 0.0  ;;  %v8061_v59 = vpop.eup %8060 }
 0xc94   :  { %3525 = vadd.xlane.f32.xlu0 %v3524_v29  ;;  %v3518_v50 = vsel %vm2649_vm2, %v8061_v59, 0.0 }
 0xc96   :  { %v8063_v22 = vpop.eup %8062 }
 0xc97   :  { %v3527_v25 = vsel %vm2649_vm2, %v8063_v22, 0.0  ;;  %v8065_v28 = vpop.eup %8064 }
 0xc98   :  { %3519 = vadd.xlane.f32.xlu0 %v3518_v50  ;;  %3528 = vadd.xlane.f32.xlu1 %v3527_v25  ;;  %v3521_v5 = vsel %vm2649_vm2, %v8065_v28, 0.0 }
 0xc9c   :  { %3522 = vadd.xlane.f32.xlu1 %v3521_v5 }
 0xcad   :  { %3540 = vrot.lane.b32.xlu1 %v9998_v49, %s8150_s23 }
 0xcae   :  { %3542 = vrot.lane.b32.xlu0 %v9996_v17, %s8150_s23 }
 0xd1d   :  { %v3526_v16 = vpop.xlane.xlu0 %3525 }
 0xd1f   :  { %v7456_v37 = vpop.f32.mrf.mxu1 }
 0xd21   :  { %v3520_v19 = vpop.xlane.xlu0 %3519  ;;  %v3529_v56 = vpop.xlane.xlu1 %3528 }
 0xd22   :  { %v3325_v63 = vpop.f32.mrf.mxu1  ;;  %8066 = vrcp.f32 %v3529_v56 }
 0xd23   :  { %8068 = vrcp.f32 %v3520_v19 }
 0xd24   :  { %v7457_v60 = vpop.f32.mrf.mxu1  ;;  %8070 = vrcp.f32 %v3526_v16 }
 0xd25   :  { %v3543_v20 = vpop.permute.xlu0 %3542  ;;  %v3523_v44 = vpop.xlane.xlu1 %3522  ;;  %v3341_v17 = vpack.c.bf16 %v7457_v60, %v7456_v37 }
 0xd26   :  { %8072 = vrcp.f32 %v3523_v44  ;;  %v3328_v49 = vpop.f32.mrf.mxu1  ;;  %7474 = vmatprep.subr.bf16.mxu1 %v3543_v20 }
 0xd27   :  { %v3340_v6 = vpack.c.bf16 %v3328_v49, %v3325_v63 }
 0xd29   :  { %7462 = vmatprep.mubr.msk.bf16.mxu1 %vm2649_vm2, %v3340_v6  ;;  %v3541_v32 = vpop.permute.xlu1 %3540 }
 0xd2a   :  { %7463 = vmatmul.mubr.msk.bf16.vlgmr.msra.gmra.mxu1 %vm2649_vm2, %v3341_v17 }
 0xd2b   :  { %7475 = vmatpush3.bf16.msra.mxu1 %v3543_v20 }
 0xd2c   :  { %7476 = vmatprep.subr.bf16.mxu1 %v3541_v32 }
 0xd2f   :  { %7477 = vmatpush3.bf16.msra.mxu1 %v3541_v32  ;;  %v8067_v0 = vpop.eup %8066 }
 0xd30   :  { %v8069_v9 = vpop.eup %8068  ;;  %v3537_v15 = vmul.f32 %v8067_v0, %v8063_v22  ;;  %7482 = vmatprep.subr.bf16.mxu1 %v7898_v11 }
 0xd31   :  { %v8071_v42 = vpop.eup %8070  ;;  %v3534_v30 = vmul.f32 %v8069_v9, %v8061_v59 }
 0xd32   :  { %v3536_v10 = vmul.f32 %v8071_v42, %v8059_v62 }
 0xd33   :  { %v8073_v24 = vpop.eup %8072 }
 0xd34   :  { %v3535_v7 = vmul.f32 %v8073_v24, %v8065_v28  ;;  %v3539_v53 = vpack.c.bf16 %v3537_v15, %v3536_v10  ;;  %v7900_v10 = vld [vmem:[%s10721_s3 + $0x188] sm:$0xff]  }
 0xd35   :  { %7490 = vmatprep.subr.bf16.mxu0 %v7900_v10 }
 0xd36   :  { %v3538_v45 = vpack.c.bf16 %v3535_v7, %v3534_v30  ;;  %7491 = vmatpush3.bf16.msra.mxu0 %v7900_v10 }
 0xd38   :  { %7478 = vmatprep.mubr.msk.bf16.mxu1 %vm2649_vm2, %v3538_v45  ;;  %v7901_v45 = vld [vmem:[%s10721_s3 + $0x180] sm:$0xff]  }
 0xd39   :  { %7479 = vmatmul.mubr.msk.bf16.vlgmr.msra.gmra.mxu1 %vm2649_vm2, %v3539_v53  ;;  %7492 = vmatprep.subr.bf16.mxu0 %v7901_v45  ;;  %v7902_v53 = vld [vmem:[%s10721_s3 + $0x178] sm:$0xff]  }
 0xd3a   :  { %7483 = vmatpush3.bf16.msra.mxu1 %v7898_v11  ;;  %7493 = vmatpush3.bf16.msra.mxu0 %v7901_v45  ;;  %v7903_v11 = vld [vmem:[%s10721_s3 + $0x170] sm:$0xff]  }
 0xd3b   :  { %7484 = vmatprep.subr.bf16.mxu1 %v7899_v33  ;;  %7494 = vmatprep.subr.bf16.mxu0 %v7902_v53 }
 0xd3e   :  { %7485 = vmatpush3.bf16.msra.mxu1 %v7899_v33  ;;  %7495 = vmatpush3.bf16.msra.mxu0 %v7902_v53 }
 0xd3f   :  { %7496 = vmatprep.subr.bf16.mxu0 %v7903_v11 }
 0xd42   :  { %7497 = vmatpush3.bf16.msra.mxu0 %v7903_v11 }
 0xdea   :  { %v7464_v43 = vpop.f32.mrf.mxu1 }
 0xdeb   :  { %v3415_v27 = vadd.f32 %v7464_v43, %v3150_v36 }
 0xdec   :  { %v3398_v23 = vpop.f32.mrf.mxu1 }
 0xded   :  { %v3413_v2 = vadd.f32 %v3398_v23, %v3142_v21 }
 0xdee   :  { %v7465_v8 = vpop.f32.mrf.mxu1 }
 0xdef   :  { %v3416_v26 = vadd.f32 %v7465_v8, %v3153_v41 }
 0xdf0   :  { %v3401_v40 = vpop.f32.mrf.mxu1 }
 0xdf1   :  { %v3414_v4 = vadd.f32 %v3401_v40, %v3145_v13 }
 0xdf9   :  { %v7480_v51 = vpop.f32.mrf.mxu1 }
 0xdfb   :  { %v3586_v38 = vpop.f32.mrf.mxu1 }
 0xdfd   :  { %v7481_v12 = vpop.f32.mrf.mxu1 }
 0xdfe   :  { %v3602_v35 = vpack.c.bf16 %v7481_v12, %v7480_v51 }
 0xdff   :  { %v3589_v34 = vpop.f32.mrf.mxu1 }
 0xe00   :  { %v3601_v39 = vpack.c.bf16 %v3589_v34, %v3586_v38  ;;  %v6648_v38 = vld [vmem:[%s10722_s4 + $0x38] ss:$0 sm:$0xff] }
 0xe02   :  { %7486 = vmatprep.mubr.msk.bf16.mxu1 %vm2649_vm2, %v3601_v39 }
 0xe03   :  { %7487 = vmatmul.mubr.msk.bf16.vlgmr.msra.gmra.mxu1 %vm2649_vm2, %v3602_v35  ;;  %v6649_v35 = vld [vmem:[%s10722_s4 + $0x40] ss:$0 sm:$0xff] }
 0xec3   :  { %v7488_v47 = vpop.f32.mrf.mxu1 }
 0xec4   :  { %v3676_v29 = vadd.f32 %v7488_v47, %v3415_v27 }
 0xec5   :  { %v3659_v55 = vpop.f32.mrf.mxu1 }
 0xec6   :  { %v3674_v18 = vadd.f32 %v3659_v55, %v3413_v2  ;;  %v3685_v52 = vadd.f32 %v6647_v58, %v3676_v29 }
 0xec7   :  { %v7489_v62 = vpop.f32.mrf.mxu1 }
 0xec8   :  { %v3683_v59 = vadd.f32 %v6647_v58, %v3674_v18  ;;  %v3677_v22 = vadd.f32 %v7489_v62, %v3416_v26  ;;  %v10195_v1 = vadd.f32 %v3685_v52, %v9896_v54 }
 0xec9   :  { %v3662_v50 = vpop.f32.mrf.mxu1 }
 0xeca   :  { %v10184_v25 = vadd.f32 %v3683_v59, %v9882_v14  ;;  %v3686_v28 = vadd.f32 %v6647_v58, %v3677_v22  ;;  %v3675_v5 = vadd.f32 %v3662_v50, %v3414_v4 }
 0xecc   :  { %v10187_v31 = vadd.f32 %v3686_v28, %v9903_v61  ;;  %v3684_v48 = vadd.f32 %v6647_v58, %v3675_v5  ;;  %v3693_v46 = vsel %vm1377_vm0, %v10184_v25, 0.0  ;;  %v3699_v61 = vsel %vm1377_vm0, %v10195_v1, 0.0 }
 0xecd   :  { %3694 = vadd.xlane.f32.xlu1 %v3693_v46  ;;  %v7904_v46 = vld [vmem:[%s10721_s3 + $0x1c8] sm:$0xff]  }
 0xece   :  { %v10192_v57 = vadd.f32 %v3684_v48, %v9889_v3  ;;  %v3702_v16 = vsel %vm1377_vm0, %v10187_v31, 0.0  ;;  %7502 = vmatprep.subr.bf16.mxu1 %v7904_v46 }
 0xecf   :  { %7503 = vmatpush3.bf16.msra.mxu1 %v7904_v46 }
 0xed0   :  { %v3696_v14 = vsel %vm1377_vm0, %v10192_v57, 0.0 }
 0xed1   :  { %3697 = vadd.xlane.f32.xlu0 %v3696_v14  ;;  %3703 = vadd.xlane.f32.xlu1 %v3702_v16  ;;  %v7905_v14 = vld [vmem:[%s10721_s3 + $0x1c0] sm:$0xff]   ;;  %v7906_v16 = vld [vmem:[%s10721_s3 + $0x1b8] sm:$0xff]  }
 0xed2   :  { %7504 = vmatprep.subr.bf16.mxu1 %v7905_v14 }
 0xed3   :  { %7505 = vmatpush3.bf16.msra.mxu1 %v7905_v14 }
 0xed4   :  { %7506 = vmatprep.subr.bf16.mxu1 %v7906_v16 }
 0xed5   :  { %3700 = vadd.xlane.f32.xlu0 %v3699_v61  ;;  %v7907_v61 = vld [vmem:[%s10721_s3 + $0x1b0] sm:$0xff]  }
 0xed7   :  { %7507 = vmatpush3.bf16.msra.mxu1 %v7906_v16 }
 0xed8   :  { %7508 = vmatprep.subr.bf16.mxu1 %v7907_v61 }
 0xedb   :  { %7509 = vmatpush3.bf16.msra.mxu1 %v7907_v61 }
 0xf56   :  { %v3695_v37 = vpop.xlane.xlu1 %3694 }
 0xf57   :  { %v3705_v19 = vmul.f32 0.015625, %v3695_v37  ;;  %v7908_v37 = vld [vmem:[%s10721_s3 + $0x1a8] sm:$0xff]  }
 0xf58   :  { %7510 = vmatprep.subr.bf16.mxu1 %v7908_v37 }
 0xf59   :  { %v3709_v3 = vsub.f32 %v10184_v25, %v3705_v19  ;;  %v7909_v19 = vld [vmem:[%s10721_s3 + $0x1a0] sm:$0xff]   ;;  %7511 = vmatpush3.bf16.msra.mxu1 %v7908_v37 }
 0xf5a   :  { %v3698_v56 = vpop.xlane.xlu0 %3697  ;;  %v3704_v63 = vpop.xlane.xlu1 %3703  ;;  %7512 = vmatprep.subr.bf16.mxu1 %v7909_v19 }
 0xf5b   :  { %v3706_v54 = vmul.f32 0.015625, %v3698_v56  ;;  %v3708_v60 = vmul.f32 0.015625, %v3704_v63  ;;  %v3713_v20 = vmul.f32 %v3709_v3, %v3709_v3  ;;  %v7911_v56 = vld [vmem:[%s10721_s3 + $0x190] sm:$0xff]  }
 0xf5c   :  { %v6650_v63 = vld [vmem:[%s10722_s4 + $0x50] ss:$0 sm:$0xff] }
 0xf5d   :  { %v3710_v44 = vsub.f32 %v10192_v57, %v3706_v54  ;;  %v3712_v49 = vsub.f32 %v10187_v31, %v3708_v60  ;;  %v3717_v6 = vsel %vm1377_vm0, %v3713_v20, 0.0  ;;  %7513 = vmatpush3.bf16.msra.mxu1 %v7909_v19 }
 0xf5e   :  { %v3701_v17 = vpop.xlane.xlu0 %3700  ;;  %3718 = vadd.xlane.f32.xlu0 %v3717_v6 }
 0xf5f   :  { %v3707_v32 = vmul.f32 0.015625, %v3701_v17  ;;  %v3714_v0 = vmul.f32 %v3710_v44, %v3710_v44  ;;  %v3716_v24 = vmul.f32 %v3712_v49, %v3712_v49 }
 0xf61   :  { %v3711_v9 = vsub.f32 %v10195_v1, %v3707_v32  ;;  %v3720_v42 = vsel %vm1377_vm0, %v3714_v0, 0.0  ;;  %v3726_v7 = vsel %vm1377_vm0, %v3716_v24, 0.0 }
 0xf62   :  { %3721 = vadd.xlane.f32.xlu1 %v3720_v42 }
 0xf63   :  { %v3715_v15 = vmul.f32 %v3711_v9, %v3711_v9 }
 0xf65   :  { %v3723_v30 = vsel %vm1377_vm0, %v3715_v15, 0.0 }
 0xf66   :  { %3724 = vadd.xlane.f32.xlu0 %v3723_v30  ;;  %3727 = vadd.xlane.f32.xlu1 %v3726_v7 }
 0xfe7   :  { %v3719_v33 = vpop.xlane.xlu0 %3718 }
 0xfe8   :  { %v3729_v36 = vmul.f32 0.015625, %v3719_v33 }
 0xfea   :  { %v3733_v43 = vadd.f32 1e-05, %v3729_v36 }
 0xfeb   :  { %v3722_v21 = vpop.xlane.xlu1 %3721 }
 0xfec   :  { %8074 = vrsqrt.f32 %v3733_v43  ;;  %v3730_v27 = vmul.f32 0.015625, %v3722_v21 }
 0xfee   :  { %v3734_v23 = vadd.f32 1e-05, %v3730_v27 }
 0xfef   :  { %v3725_v41 = vpop.xlane.xlu0 %3724  ;;  %v3728_v2 = vpop.xlane.xlu1 %3727 }
 0xff0   :  { %8076 = vrsqrt.f32 %v3734_v23  ;;  %v3731_v8 = vmul.f32 0.015625, %v3725_v41  ;;  %v3732_v13 = vmul.f32 0.015625, %v3728_v2 }
 0xff2   :  { %v3735_v26 = vadd.f32 1e-05, %v3731_v8  ;;  %v3736_v40 = vadd.f32 1e-05, %v3732_v13 }
 0xff4   :  { %8078 = vrsqrt.f32 %v3735_v26 }
 0xff5   :  { %8080 = vrsqrt.f32 %v3736_v40 }
 0xff9   :  { %v8075_v4 = vpop.eup %8074 }
 0xffa   :  { %v3741_v51 = vmul.f32 %v8075_v4, %v3709_v3  ;;  %v7910_v3 = vld [vmem:[%s10721_s3 + $0x198] sm:$0xff]  }
 0xffb   :  { %7514 = vmatprep.subr.bf16.mxu1 %v7910_v3 }
 0xffc   :  { %v3749_v39 = vmul.f32 %v6648_v38, %v3741_v51  ;;  %7515 = vmatpush3.bf16.msra.mxu1 %v7910_v3 }
 0xffd   :  { %v8077_v12 = vpop.eup %8076  ;;  %7516 = vmatprep.subr.bf16.mxu1 %v7911_v56 }
 0xffe   :  { %v3742_v34 = vmul.f32 %v8077_v12, %v3710_v44  ;;  %v3757_v62 = vadd.f32 %v6649_v35, %v3749_v39 }
0x1000   :  { %v3750_v47 = vmul.f32 %v6648_v38, %v3742_v34  ;;  %7517 = vmatpush3.bf16.msra.mxu1 %v7911_v56 }
0x1001   :  { %v8079_v55 = vpop.eup %8078 }
0x1002   :  { %v8081_v18 = vpop.eup %8080  ;;  %v3743_v58 = vmul.f32 %v8079_v55, %v3711_v9  ;;  %v3758_v29 = vadd.f32 %v6649_v35, %v3750_v47 }
0x1003   :  { %v3744_v59 = vmul.f32 %v8081_v18, %v3712_v49 }
0x1004   :  { %v3761_v22 = vpack.c.bf16 %v3758_v29, %v3757_v62  ;;  %v3751_v50 = vmul.f32 %v6648_v38, %v3743_v58 }
0x1005   :  { %v3752_v28 = vmul.f32 %v6648_v38, %v3744_v59 }
0x1006   :  { %7498 = vmatprep.mubr.msk.bf16.mxu0 %vm1377_vm0, %v3761_v22  ;;  %v3759_v5 = vadd.f32 %v6649_v35, %v3751_v50  ;;  %v10261_v50 = vld [vmem:[%s10721_s3 + $0x410] sm:$0xff]  }
0x1007   :  { %v3760_v52 = vadd.f32 %v6649_v35, %v3752_v28 }
0x1009   :  { %v3762_v48 = vpack.c.bf16 %v3760_v52, %v3759_v5  ;;  %v6657_v5 = vld [vmem:[%s10722_s4 + $0x58] ss:$0 sm:$0xff] }
0x100b   :  { %7499 = vmatmul.mubr.msk.bf16.vlgmr.msra.gmra.mxu0 %vm1377_vm0, %v3762_v48 }
0x100c   :  { %7526 = vmatprep.mubr.msk.bf16.mxu0 %vm2649_vm2, %v10261_v50 }
0x10cb   :  { %v7500_v54 = vpop.f32.mrf.mxu0 }
0x10cc   :  { %v3849_v60 = vadd.f32 %v7500_v54, %v6650_v63 }
0x10cd   :  { %v3840_v20 = vpop.f32.mrf.mxu0 }
0x10ce   :  { %v3861_v44 = vmul.f32 0.044715, %v3849_v60  ;;  %v3841_v49 = vadd.f32 %v6650_v63, %v3840_v20  ;;  %v3857_v55 = vmul.f32 0.5, %v3849_v60  ;;  %v10275_v20 = vld [vmem:[%s10721_s3 + $0x418] sm:$0xff]  }
0x10cf   :  { %v7501_v6 = vpop.f32.mrf.mxu0 }
0x10d0   :  { %v3865_v17 = vmul.f32 %v3861_v44, %v3849_v60  ;;  %v3859_v32 = vmul.f32 0.044715, %v3841_v49  ;;  %v3852_v0 = vadd.f32 %v7501_v6, %v6650_v63  ;;  %v3855_v39 = vmul.f32 0.5, %v3841_v49  ;;  %v10308_v44 = vld [vmem:[%s10721_s3 + $0x440] sm:$0xff]   ;;  %v10322_v6 = vld [vmem:[%s10721_s3 + $0x450] sm:$0xff]  }
0x10d1   :  { %v3843_v9 = vpop.f32.mrf.mxu0 }
0x10d2   :  { %v3869_v42 = vmul.f32 %v3865_v17, %v3849_v60  ;;  %v3863_v24 = vmul.f32 %v3859_v32, %v3841_v49  ;;  %v3862_v15 = vmul.f32 0.044715, %v3852_v0  ;;  %v3844_v30 = vadd.f32 %v6650_v63, %v3843_v9  ;;  %v10331_v17 = vld [vmem:[%s10721_s3 + $0x458] sm:$0xff]   ;;  %v10336_v32 = vld [vmem:[%s10721_s3 + $0x460] sm:$0xff]   ;;  %v10350_v9 = vld [vmem:[%s10721_s3 + $0x470] sm:$0xff]  }
0x10d3   :  { %v3858_v12 = vmul.f32 0.5, %v3852_v0 }
0x10d4   :  { %v3873_v7 = vadd.f32 %v3869_v42, %v3849_v60  ;;  %v3867_v10 = vmul.f32 %v3863_v24, %v3841_v49  ;;  %v3866_v45 = vmul.f32 %v3862_v15, %v3852_v0  ;;  %v3860_v53 = vmul.f32 0.044715, %v3844_v30  ;;  %v10359_v42 = vld [vmem:[%s10721_s3 + $0x478] sm:$0xff]   ;;  %v10364_v24 = vld [vmem:[%s10721_s3 + $0x480] sm:$0xff]   ;;  %v10373_v15 = vld [vmem:[%s10721_s3 + $0x488] sm:$0xff]  }
0x10d5   :  { %v3856_v35 = vmul.f32 0.5, %v3844_v30 }
0x10d6   :  { %v3870_v11 = vmul.f32 %v3866_v45, %v3852_v0  ;;  %v3864_v33 = vmul.f32 %v3860_v53, %v3844_v30  ;;  %v3871_v36 = vadd.f32 %v3867_v10, %v3841_v49  ;;  %v3877_v43 = vmul.f32 0.7978846, %v3873_v7  ;;  %v10317_v49 = vld [vmem:[%s10721_s3 + $0x448] sm:$0xff]   ;;  %v10387_v7 = vld [vmem:[%s10721_s3 + $0x498] sm:$0xff]   ;;  %v7931_v45 = vld [vmem:[%s10721_s3 + $0x200] sm:$0xff]  }
0x10d7   :  { %v7930_v10 = vld [vmem:[%s10721_s3 + $0x208] sm:$0xff]   ;;  %v7932_v53 = vld [vmem:[%s10721_s3 + $0x1f8] sm:$0xff]  }
0x10d8   :  { %v3874_v21 = vadd.f32 %v3870_v11, %v3852_v0  ;;  %v3868_v27 = vmul.f32 %v3864_v33, %v3844_v30  ;;  %v3875_v23 = vmul.f32 0.7978846, %v3871_v36  ;;  %v10345_v0 = vld [vmem:[%s10721_s3 + $0x468] sm:$0xff]   ;;  %7562 = vmatprep.subr.bf16.mxu1 %v7930_v10  ;;  %v7933_v11 = vld [vmem:[%s10721_s3 + $0x1f0] sm:$0xff]  }
0x10d9   :  { %v7934_v33 = vld [vmem:[%s10721_s3 + $0x1e8] sm:$0xff]  }
0x10da   :  { %v3878_v41 = vmul.f32 0.7978846, %v3874_v21  ;;  %v3872_v2 = vadd.f32 %v3868_v27, %v3844_v30  ;;  %8082 = vtanh.f32 %v3875_v23  ;;  %v10378_v30 = vld [vmem:[%s10721_s3 + $0x490] sm:$0xff]   ;;  %v7936_v36 = vld [vmem:[%s10721_s3 + $0x248] sm:$0xff]   ;;  %v7943_v21 = vld [vmem:[%s10721_s3 + $0x238] sm:$0xff]  }
0x10db   :  { %8084 = vtanh.f32 %v3877_v43  ;;  %v7941_v43 = vld [vmem:[%s10721_s3 + $0x240] sm:$0xff]   ;;  %v7945_v27 = vld [vmem:[%s10721_s3 + $0x230] sm:$0xff]   ;;  %v7947_v23 = vld [vmem:[%s10721_s3 + $0x288] sm:$0xff]  }
0x10dc   :  { %8086 = vtanh.f32 %v3878_v41  ;;  %v3876_v8 = vmul.f32 0.7978846, %v3872_v2 }
0x10de   :  { %8088 = vtanh.f32 %v3876_v8 }
0x10e7   :  { %v8083_v13 = vpop.eup %8082 }
0x10e8   :  { %v8085_v26 = vpop.eup %8084  ;;  %v3883_v4 = vadd.f32 1.0, %v8083_v13 }
0x10e9   :  { %v8087_v40 = vpop.eup %8086  ;;  %v3885_v34 = vadd.f32 1.0, %v8085_v26 }
0x10ea   :  { %v3886_v51 = vadd.f32 1.0, %v8087_v40  ;;  %v3887_v58 = vmul.f32 %v3883_v4, %v3855_v39 }
0x10eb   :  { %v8089_v38 = vpop.eup %8088  ;;  %v3889_v29 = vmul.f32 %v3885_v34, %v3857_v55  ;;  %v7935_v34 = vld [vmem:[%s10721_s3 + $0x1e0] sm:$0xff]   ;;  %v7937_v55 = vld [vmem:[%s10721_s3 + $0x1d8] sm:$0xff]  }
0x10ec   :  { %v3884_v47 = vadd.f32 1.0, %v8089_v38  ;;  %v3890_v18 = vmul.f32 %v3886_v51, %v3858_v12 }
0x10ee   :  { %v3888_v62 = vmul.f32 %v3884_v47, %v3856_v35  ;;  %v3892_v22 = vpack.c.bf16 %v3890_v18, %v3889_v29 }
0x10f0   :  { %v3891_v59 = vpack.c.bf16 %v3888_v62, %v3887_v58  ;;  %v7938_v62 = vld [vmem:[%s10721_s3 + $0x1d0] sm:$0xff]  }
0x10f2   :  { %7518 = vmatprep.mubr.bf16.mxu1 %v3891_v59 }
0x10f3   :  { %7519 = vmatmul.mubr.bf16.vlgmr.msra.gmra.mxu1 %v3892_v22  ;;  %v7939_v22 = vld [vmem:[%s10721_s3 + $0x228] sm:$0xff]  }
0x10f4   :  { %7563 = vmatpush3.bf16.msra.mxu1 %v7930_v10 }
0x10f5   :  { %7564 = vmatprep.subr.bf16.mxu1 %v7931_v45 }
0x10f8   :  { %7565 = vmatpush3.bf16.msra.mxu1 %v7931_v45  ;;  %v7953_v45 = vld [vmem:[%s10721_s3 + $0x270] sm:$0xff]  }
0x10f9   :  { %7566 = vmatprep.subr.bf16.mxu1 %v7932_v53 }
0x10fc   :  { %7567 = vmatpush3.bf16.msra.mxu1 %v7932_v53 }
0x10fd   :  { %7568 = vmatprep.subr.bf16.mxu1 %v7933_v11 }
0x1100   :  { %7569 = vmatpush3.bf16.msra.mxu1 %v7933_v11  ;;  %v7946_v11 = vld [vmem:[%s10721_s3 + $0x268] sm:$0xff]  }
0x1101   :  { %7574 = vmatprep.subr.bf16.mxu1 %v7934_v33 }
0x11b3   :  { %v7520_v28 = vpop.f32.mrf.mxu1 }
0x11b4   :  { %v4005_v48 = vadd.f32 %v7520_v28, %v6657_v5 }
0x11b5   :  { %v3996_v52 = vpop.f32.mrf.mxu1 }
0x11b6   :  { %v3997_v14 = vadd.f32 %v6657_v5, %v3996_v52  ;;  %v4013_v37 = vadd.f32 %v4005_v48, %v10195_v1  ;;  %v10303_v1 = vld [vmem:[%s10721_s3 + $0x438] sm:$0xff]  }
0x11b7   :  { %v7521_v46 = vpop.f32.mrf.mxu1 }
0x11b8   :  { %v4008_v16 = vadd.f32 %v7521_v46, %v6657_v5  ;;  %v4011_v56 = vadd.f32 %v3997_v14, %v10184_v25  ;;  %v10289_v25 = vld [vmem:[%s10721_s3 + $0x428] sm:$0xff]  }
0x11b9   :  { %v3999_v61 = vpop.f32.mrf.mxu1 }
0x11ba   :  { %v4014_v19 = vadd.f32 %v4008_v16, %v10187_v31  ;;  %v4000_v3 = vadd.f32 %v6657_v5, %v3999_v61  ;;  %v10280_v31 = vld [vmem:[%s10721_s3 + $0x420] sm:$0xff]  }
0x11bb   :  { %v7940_v16 = vld [vmem:[%s10721_s3 + $0x220] sm:$0xff]  }
0x11bc   :  { %v4012_v63 = vadd.f32 %v4000_v3, %v10192_v57  ;;  %v4052_v54 = vpack.c.bf16 %v4014_v19, %v4013_v37  ;;  %v10294_v57 = vld [vmem:[%s10721_s3 + $0x430] sm:$0xff]   ;;  %v7949_v37 = vld [vmem:[%s10721_s3 + $0x280] sm:$0xff]   ;;  %v7942_v3 = vld [vmem:[%s10721_s3 + $0x218] sm:$0xff]  }
0x11be   :  { %7522 = vmatprep.subr.bf16.mxu0 %v4052_v54  ;;  %v4051_v60 = vpack.c.bf16 %v4012_v63, %v4011_v56  ;;  %v7951_v63 = vld [vmem:[%s10721_s3 + $0x278] sm:$0xff]  }
0x11bf   :  { %7523 = vmatpush3.bf16.msra.mxu0 %v4052_v54 }
0x11c0   :  { %7524 = vmatprep.subr.bf16.mxu0 %v4051_v60 }
0x11c3   :  { %7525 = vmatpush3.bf16.msra.mxu0 %v4051_v60  ;;  %v7944_v60 = vld [vmem:[%s10721_s3 + $0x210] sm:$0xff]  }
0x11c4   :  { %7598 = vmatprep.subr.bf16.mxu0 %v7936_v36 }
0x11c6   :  { %7527 = vmatmul.mubr.msk.bf16.vlgmr.msra.gmra.mxu0 %vm2649_vm2, %v10275_v20 }
0x11c7   :  { %7530 = vmatprep.mubr.msk.bf16.mxu0 %vm2649_vm2, %v10280_v31  ;;  %7599 = vmatpush3.bf16.msra.mxu0 %v7936_v36  ;;  %v7955_v36 = vld [vmem:[%s10721_s3 + $0x2c8] sm:$0xff]  }
0x11c8   :  { %7600 = vmatprep.subr.bf16.mxu0 %v7941_v43 }
0x11cb   :  { %7601 = vmatpush3.bf16.msra.mxu0 %v7941_v43 }
0x11cc   :  { %7602 = vmatprep.subr.bf16.mxu0 %v7943_v21 }
0x11ce   :  { %7531 = vmatmul.mubr.msk.bf16.gmra.mxu0 %vm2649_vm2, %v10289_v25 }
0x11cf   :  { %7534 = vmatprep.mubr.msk.bf16.mxu0 %vm2649_vm2, %v10294_v57  ;;  %7603 = vmatpush3.bf16.msra.mxu0 %v7943_v21 }
0x11d0   :  { %7604 = vmatprep.subr.bf16.mxu0 %v7945_v27 }
0x11d3   :  { %7605 = vmatpush3.bf16.msra.mxu0 %v7945_v27 }
0x11d4   :  { %7622 = vmatprep.subr.bf16.mxu0 %v7947_v23 }
0x11d6   :  { %7535 = vmatmul.mubr.msk.bf16.gmra.mxu0 %vm2649_vm2, %v10303_v1 }
0x11d7   :  { %7538 = vmatprep.mubr.msk.bf16.mxu0 %vm2649_vm2, %v10308_v44 }
0x11de   :  { %7539 = vmatmul.mubr.msk.bf16.gmra.mxu0 %vm2649_vm2, %v10317_v49 }
0x11df   :  { %7542 = vmatprep.mubr.msk.bf16.mxu0 %vm2649_vm2, %v10322_v6 }
0x11e6   :  { %7543 = vmatmul.mubr.msk.bf16.gmra.mxu0 %vm2649_vm2, %v10331_v17 }
0x11e7   :  { %7546 = vmatprep.mubr.msk.bf16.mxu0 %vm2649_vm2, %v10336_v32 }
0x11ee   :  { %7547 = vmatmul.mubr.msk.bf16.gmra.mxu0 %vm2649_vm2, %v10345_v0 }
0x11ef   :  { %7550 = vmatprep.mubr.msk.bf16.mxu0 %vm2649_vm2, %v10350_v9 }
0x11f6   :  { %7551 = vmatmul.mubr.msk.bf16.gmra.mxu0 %vm2649_vm2, %v10359_v42 }
0x11f7   :  { %7554 = vmatprep.mubr.msk.bf16.mxu0 %vm2649_vm2, %v10364_v24 }
0x11fe   :  { %7555 = vmatmul.mubr.msk.bf16.gmra.mxu0 %vm2649_vm2, %v10373_v15 }
0x11ff   :  { %7558 = vmatprep.mubr.msk.bf16.mxu0 %vm2649_vm2, %v10378_v30 }
0x1206   :  { %7559 = vmatmul.mubr.msk.bf16.gmra.mxu0 %vm2649_vm2, %v10387_v7 }
0x1286   :  { %v7528_v41 = vpop.f32.mrf.mxu0 }
0x1288   :  { %v4231_v2 = vpop.f32.mrf.mxu0 }
0x128a   :  { %v7529_v8 = vpop.f32.mrf.mxu0 }
0x128b   :  { %v4375_v14 = vpack.c.bf16 %v7529_v8, %v7528_v41  ;;  %v7948_v41 = vld [vmem:[%s10721_s3 + $0x260] sm:$0xff]  }
0x128c   :  { %v4234_v13 = vpop.f32.mrf.mxu0 }
0x128d   :  { %v4374_v35 = vpack.c.bf16 %v4234_v13, %v4231_v2 }
0x128e   :  { %v7532_v26 = vpop.f32.mrf.mxu0 }
0x1290   :  { %v4247_v40 = vpop.f32.mrf.mxu0 }
0x1292   :  { %v7533_v4 = vpop.f32.mrf.mxu0 }
0x1293   :  { %v4377_v12 = vpack.c.bf16 %v7533_v4, %v7532_v26  ;;  %v7957_v26 = vld [vmem:[%s10721_s3 + $0x2c0] sm:$0xff]  }
0x1294   :  { %v4250_v51 = vpop.f32.mrf.mxu0 }
0x1295   :  { %v4376_v38 = vpack.c.bf16 %v4250_v51, %v4247_v40  ;;  %v7950_v40 = vld [vmem:[%s10721_s3 + $0x258] sm:$0xff]  }
0x1296   :  { %v10424_v39 = vpop.f32.mrf.mxu0 }
0x1297   :  { %7570 = vmatprep.mubr.msk.bf16.mxu1 %vm1377_vm0, %v4376_v38  ;;  %v7959_v38 = vld [vmem:[%s10721_s3 + $0x2b8] sm:$0xff]  }
0x1298   :  { %7571 = vmatmul.mubr.msk.bf16.vlgmr.msra.gmra.mxu1 %vm1377_vm0, %v4377_v12  ;;  %v4263_v47 = vpop.f32.mrf.mxu0  ;;  %v7952_v12 = vld [vmem:[%s10721_s3 + $0x250] sm:$0xff]  }
0x1299   :  { %7575 = vmatpush3.bf16.msra.mxu1 %v7934_v33  ;;  %7582 = vmatprep.mubr.msk.bf16.mxu1 %vm1377_vm0, %v4374_v35  ;;  %v7961_v35 = vld [vmem:[%s10721_s3 + $0x2b0] sm:$0xff]  }
0x129a   :  { %7576 = vmatprep.subr.bf16.mxu1 %v7935_v34  ;;  %v7537_v18 = vpop.f32.mrf.mxu0 }
0x129c   :  { %v4266_v58 = vpop.f32.mrf.mxu0 }
0x129d   :  { %7577 = vmatpush3.bf16.msra.mxu1 %v7935_v34  ;;  %v4378_v48 = vpack.c.bf16 %v4266_v58, %v4263_v47  ;;  %v7954_v47 = vld [vmem:[%s10721_s3 + $0x2a8] sm:$0xff]  }
0x129e   :  { %7578 = vmatprep.subr.bf16.mxu1 %v7937_v55  ;;  %v7540_v29 = vpop.f32.mrf.mxu0 }
0x12a0   :  { %v4279_v59 = vpop.f32.mrf.mxu0 }
0x12a1   :  { %7579 = vmatpush3.bf16.msra.mxu1 %v7937_v55 }
0x12a2   :  { %7580 = vmatprep.subr.bf16.mxu1 %v7938_v62  ;;  %v7541_v28 = vpop.f32.mrf.mxu0 }
0x12a3   :  { %v4381_v5 = vpack.c.bf16 %v7541_v28, %v7540_v29 }
0x12a4   :  { %v4282_v52 = vpop.f32.mrf.mxu0 }
0x12a5   :  { %7581 = vmatpush3.bf16.msra.mxu1 %v7938_v62  ;;  %v4380_v46 = vpack.c.bf16 %v4282_v52, %v4279_v59  ;;  %v7956_v59 = vld [vmem:[%s10721_s3 + $0x2a0] sm:$0xff]  }
0x12a6   :  { %7586 = vmatprep.subr.bf16.mxu1 %v7939_v22  ;;  %v10441_v61 = vpop.f32.mrf.mxu0 }
0x12a7   :  { %7606 = vmatprep.mubr.msk.bf16.mxu0 %vm1377_vm0, %v4380_v46 }
0x12a8   :  { %7583 = vmatmul.mubr.msk.bf16.vlgmr.msra.gmra.mxu1 %vm1377_vm0, %v4375_v14  ;;  %v4295_v19 = vpop.f32.mrf.mxu0  ;;  %7607 = vmatmul.mubr.msk.bf16.vlgmr.msra.gmra.mxu0 %vm1377_vm0, %v4381_v5  ;;  %v7958_v5 = vld [vmem:[%s10721_s3 + $0x298] sm:$0xff]   ;;  %v7962_v14 = vld [vmem:[%s10721_s3 + $0x2e8] sm:$0xff]  }
0x12a9   :  { %7587 = vmatpush3.bf16.msra.mxu1 %v7939_v22  ;;  %7594 = vmatprep.mubr.msk.bf16.mxu1 %vm1377_vm0, %v4378_v48  ;;  %v7960_v48 = vld [vmem:[%s10721_s3 + $0x290] sm:$0xff]  }
0x12aa   :  { %7588 = vmatprep.subr.bf16.mxu1 %v7940_v16  ;;  %7623 = vmatpush3.bf16.msra.mxu0 %v7947_v23  ;;  %v10453_v56 = vpop.f32.mrf.mxu0  ;;  %v4379_v23 = vpack.c.bf16 %v7537_v18, %v10424_v39 }
0x12ab   :  { %7624 = vmatprep.subr.bf16.mxu0 %v7949_v37  ;;  %v4383_v29 = vpack.c.bf16 %v10453_v56, %v10441_v61 }
0x12ac   :  { %v4298_v54 = vpop.f32.mrf.mxu0 }
0x12ad   :  { %7589 = vmatpush3.bf16.msra.mxu1 %v7940_v16  ;;  %v4382_v21 = vpack.c.bf16 %v4298_v54, %v4295_v19  ;;  %v7964_v19 = vld [vmem:[%s10721_s3 + $0x2d8] sm:$0xff]  }
0x12ae   :  { %7590 = vmatprep.subr.bf16.mxu1 %v7942_v3  ;;  %7625 = vmatpush3.bf16.msra.mxu0 %v7949_v37  ;;  %v7548_v10 = vpop.f32.mrf.mxu0 }
0x12af   :  { %7626 = vmatprep.subr.bf16.mxu0 %v7951_v63 }
0x12b0   :  { %v4311_v53 = vpop.f32.mrf.mxu0 }
0x12b1   :  { %7591 = vmatpush3.bf16.msra.mxu1 %v7942_v3  ;;  %v7965_v3 = vld [vmem:[%s10721_s3 + $0x2d0] sm:$0xff]  }
0x12b2   :  { %7592 = vmatprep.subr.bf16.mxu1 %v7944_v60  ;;  %7627 = vmatpush3.bf16.msra.mxu0 %v7951_v63  ;;  %v7549_v33 = vpop.f32.mrf.mxu0 }
0x12b3   :  { %7628 = vmatprep.subr.bf16.mxu0 %v7953_v45  ;;  %v4385_v2 = vpack.c.bf16 %v7549_v33, %v7548_v10 }
0x12b4   :  { %v4314_v43 = vpop.f32.mrf.mxu0 }
0x12b5   :  { %7593 = vmatpush3.bf16.msra.mxu1 %v7944_v60  ;;  %v4384_v27 = vpack.c.bf16 %v4314_v43, %v4311_v53 }
0x12b6   :  { %7610 = vmatprep.subr.bf16.mxu1 %v7946_v11  ;;  %7629 = vmatpush3.bf16.msra.mxu0 %v7953_v45  ;;  %v10474_v8 = vpop.f32.mrf.mxu0 }
0x12b7   :  { %7630 = vmatprep.mubr.msk.bf16.mxu0 %vm1377_vm0, %v4384_v27  ;;  %7646 = vmatprep.subr.bf16.mxu0 %v7955_v36 }
0x12b8   :  { %7595 = vmatmul.mubr.msk.bf16.vlgmr.msra.gmra.mxu1 %vm1377_vm0, %v4379_v23  ;;  %v4327_v13 = vpop.f32.mrf.mxu0 }
0x12b9   :  { %7611 = vmatpush3.bf16.msra.mxu1 %v7946_v11  ;;  %7618 = vmatprep.mubr.msk.bf16.mxu1 %vm1377_vm0, %v4382_v21 }
0x12ba   :  { %7612 = vmatprep.subr.bf16.mxu1 %v7948_v41  ;;  %7631 = vmatmul.mubr.msk.bf16.vlgmr.msra.gmra.mxu0 %vm1377_vm0, %v4385_v2  ;;  %v7553_v4 = vpop.f32.mrf.mxu0 }
0x12bb   :  { %7647 = vmatpush3.bf16.msra.mxu0 %v7955_v36  ;;  %v4387_v37 = vpack.c.bf16 %v7553_v4, %v10474_v8 }
0x12bc   :  { %v4330_v51 = vpop.f32.mrf.mxu0  ;;  %7648 = vmatprep.subr.bf16.mxu0 %v7957_v26 }
0x12bd   :  { %7613 = vmatpush3.bf16.msra.mxu1 %v7948_v41  ;;  %v4386_v58 = vpack.c.bf16 %v4330_v51, %v4327_v13 }
0x12be   :  { %7614 = vmatprep.subr.bf16.mxu1 %v7950_v40  ;;  %v7556_v34 = vpop.f32.mrf.mxu0 }
0x12bf   :  { %7649 = vmatpush3.bf16.msra.mxu0 %v7957_v26 }
0x12c0   :  { %v4343_v39 = vpop.f32.mrf.mxu0  ;;  %7650 = vmatprep.subr.bf16.mxu0 %v7959_v38 }
0x12c1   :  { %7615 = vmatpush3.bf16.msra.mxu1 %v7950_v40 }
0x12c2   :  { %7616 = vmatprep.subr.bf16.mxu1 %v7952_v12  ;;  %v7557_v55 = vpop.f32.mrf.mxu0 }
0x12c3   :  { %7651 = vmatpush3.bf16.msra.mxu0 %v7959_v38  ;;  %v4389_v22 = vpack.c.bf16 %v7557_v55, %v7556_v34 }
0x12c4   :  { %v4346_v18 = vpop.f32.mrf.mxu0  ;;  %7652 = vmatprep.subr.bf16.mxu0 %v7961_v35 }
0x12c5   :  { %7617 = vmatpush3.bf16.msra.mxu1 %v7952_v12  ;;  %v4388_v62 = vpack.c.bf16 %v4346_v18, %v4343_v39 }
0x12c6   :  { %7634 = vmatprep.subr.bf16.mxu1 %v7954_v47  ;;  %v7560_v28 = vpop.f32.mrf.mxu0 }
0x12c7   :  { %7653 = vmatpush3.bf16.msra.mxu0 %v7961_v35  ;;  %7654 = vmatprep.mubr.msk.bf16.mxu0 %vm1377_vm0, %v4388_v62 }
0x12c8   :  { %7619 = vmatmul.mubr.msk.bf16.vlgmr.msra.gmra.mxu1 %vm1377_vm0, %v4383_v29  ;;  %v4359_v52 = vpop.f32.mrf.mxu0 }
0x12c9   :  { %7635 = vmatpush3.bf16.msra.mxu1 %v7954_v47  ;;  %7642 = vmatprep.mubr.msk.bf16.mxu1 %vm1377_vm0, %v4386_v58 }
0x12ca   :  { %7636 = vmatprep.subr.bf16.mxu1 %v7956_v59  ;;  %7655 = vmatmul.mubr.msk.bf16.vlgmr.msra.gmra.mxu0 %vm1377_vm0, %v4389_v22  ;;  %v7561_v46 = vpop.f32.mrf.mxu0 }
0x12cb   :  { %7674 = vmatprep.mubr.msk.bf16.mxu0 %vm2649_vm2, %v10261_v50  ;;  %v7963_v50 = vld [vmem:[%s10721_s3 + $0x2e0] sm:$0xff]   ;;  %v4391_v56 = vpack.c.bf16 %v7561_v46, %v7560_v28 }
0x12cc   :  { %v4362_v16 = vpop.f32.mrf.mxu0 }
0x12cd   :  { %7637 = vmatpush3.bf16.msra.mxu1 %v7956_v59  ;;  %v4390_v61 = vpack.c.bf16 %v4362_v16, %v4359_v52 }
0x12ce   :  { %7638 = vmatprep.subr.bf16.mxu1 %v7958_v5 }
0x12d1   :  { %7639 = vmatpush3.bf16.msra.mxu1 %v7958_v5 }
0x12d2   :  { %7640 = vmatprep.subr.bf16.mxu1 %v7960_v48 }
0x12d5   :  { %7641 = vmatpush3.bf16.msra.mxu1 %v7960_v48 }
0x12d6   :  { %7658 = vmatprep.subr.bf16.mxu1 %v7962_v14 }
0x12d8   :  { %7643 = vmatmul.mubr.msk.bf16.vlgmr.msra.gmra.mxu1 %vm1377_vm0, %v4387_v37 }
0x12d9   :  { %7659 = vmatpush3.bf16.msra.mxu1 %v7962_v14  ;;  %7666 = vmatprep.mubr.msk.bf16.mxu1 %vm1377_vm0, %v4390_v61 }
0x12da   :  { %7660 = vmatprep.subr.bf16.mxu1 %v7963_v50 }
0x12dd   :  { %7661 = vmatpush3.bf16.msra.mxu1 %v7963_v50 }
0x12de   :  { %7662 = vmatprep.subr.bf16.mxu1 %v7964_v19 }
0x12e1   :  { %7663 = vmatpush3.bf16.msra.mxu1 %v7964_v19 }
0x12e2   :  { %7664 = vmatprep.subr.bf16.mxu1 %v7965_v3 }
0x12e5   :  { %7665 = vmatpush3.bf16.msra.mxu1 %v7965_v3 }
0x12e8   :  { %7667 = vmatmul.mubr.msk.bf16.vlgmr.msra.gmra.mxu1 %vm1377_vm0, %v4391_v56 }
0x1358   :  { %v7572_v63 = vpop.f32.mrf.mxu1 }
0x135a   :  { %v4472_v54 = vpop.f32.mrf.mxu1 }
0x135c   :  { %v7573_v60 = vpop.f32.mrf.mxu1 }
0x135e   :  { %v4475_v10 = vpop.f32.mrf.mxu1 }
0x1368   :  { %v7584_v45 = vpop.f32.mrf.mxu1  ;;  %v7608_v21 = vpop.f32.mrf.mxu0 }
0x1369   :  { %v4560_v38 = vadd.f32 %v7584_v45, %v7572_v63 }
0x136a   :  { %v4551_v53 = vpop.f32.mrf.mxu1  ;;  %v4729_v23 = vpop.f32.mrf.mxu0 }
0x136b   :  { %v4552_v34 = vadd.f32 %v4551_v53, %v4472_v54 }
0x136c   :  { %v7585_v11 = vpop.f32.mrf.mxu1  ;;  %v7609_v2 = vpop.f32.mrf.mxu0 }
0x136d   :  { %v4563_v39 = vadd.f32 %v7585_v11, %v7573_v60 }
0x136e   :  { %v4554_v33 = vpop.f32.mrf.mxu1  ;;  %v4732_v13 = vpop.f32.mrf.mxu0 }
0x136f   :  { %v4555_v18 = vadd.f32 %v4554_v33, %v4475_v10 }
0x1378   :  { %v7596_v36 = vpop.f32.mrf.mxu1 }
0x1379   :  { %v4655_v35 = vadd.f32 %v7596_v36, %v4560_v38 }
0x137a   :  { %v4638_v43 = vpop.f32.mrf.mxu1  ;;  %v7632_v40 = vpop.f32.mrf.mxu0 }
0x137b   :  { %v4653_v58 = vadd.f32 %v4638_v43, %v4552_v34  ;;  %v4746_v29 = vadd.f32 %v7608_v21, %v4655_v35 }
0x137c   :  { %v7597_v27 = vpop.f32.mrf.mxu1  ;;  %v4911_v51 = vpop.f32.mrf.mxu0 }
0x137d   :  { %v4656_v62 = vadd.f32 %v7597_v27, %v4563_v39  ;;  %v4744_v5 = vadd.f32 %v4729_v23, %v4653_v58 }
0x137e   :  { %v4641_v41 = vpop.f32.mrf.mxu1  ;;  %v7633_v47 = vpop.f32.mrf.mxu0 }
0x137f   :  { %v4654_v59 = vadd.f32 %v4641_v41, %v4555_v18  ;;  %v4747_v52 = vadd.f32 %v7609_v2, %v4656_v62 }
0x1380   :  { %v4914_v22 = vpop.f32.mrf.mxu0 }
0x1381   :  { %v4745_v14 = vadd.f32 %v4732_v13, %v4654_v59 }
0x1388   :  { %v7620_v8 = vpop.f32.mrf.mxu1 }
0x1389   :  { %v4837_v48 = vadd.f32 %v7620_v8, %v4746_v29  ;;  %v6756_v8 = vld [vmem:[%s10722_s4 + $0x60] ss:$0 sm:$0xff] }
0x138a   :  { %v4820_v26 = vpop.f32.mrf.mxu1  ;;  %v7656_v46 = vpop.f32.mrf.mxu0  ;;  %v7971_v29 = vld [vmem:[%s10721_s3 + $0x300] sm:$0xff]  }
0x138b   :  { %v4835_v16 = vadd.f32 %v4820_v26, %v4744_v5  ;;  %v4928_v50 = vadd.f32 %v7632_v40, %v4837_v48  ;;  %v7972_v5 = vld [vmem:[%s10721_s3 + $0x2f8] sm:$0xff]  }
0x138c   :  { %v7621_v4 = vpop.f32.mrf.mxu1  ;;  %v5093_v3 = vpop.f32.mrf.mxu0 }
0x138d   :  { %v4838_v61 = vadd.f32 %v7621_v4, %v4747_v52  ;;  %v4926_v56 = vadd.f32 %v4911_v51, %v4835_v16 }
0x138e   :  { %v4823_v12 = vpop.f32.mrf.mxu1  ;;  %v7657_v11 = vpop.f32.mrf.mxu0 }
0x138f   :  { %v4836_v19 = vadd.f32 %v4823_v12, %v4745_v14  ;;  %v4929_v63 = vadd.f32 %v7633_v47, %v4838_v61  ;;  %v7975_v61 = vld [vmem:[%s10721_s3 + $0x348] sm:$0xff]  }
0x1390   :  { %v5096_v2 = vpop.f32.mrf.mxu0 }
0x1391   :  { %v4927_v10 = vadd.f32 %v4914_v22, %v4836_v19 }
0x1398   :  { %v7644_v55 = vpop.f32.mrf.mxu1 }
0x1399   :  { %v5019_v54 = vadd.f32 %v7644_v55, %v4928_v50 }
0x139a   :  { %v5002_v28 = vpop.f32.mrf.mxu1 }
0x139b   :  { %v5017_v45 = vadd.f32 %v5002_v28, %v4926_v56  ;;  %v5110_v36 = vadd.f32 %v7656_v46, %v5019_v54  ;;  %v7974_v46 = vld [vmem:[%s10721_s3 + $0x2f0] sm:$0xff]   ;;  %v7976_v56 = vld [vmem:[%s10721_s3 + $0x340] sm:$0xff]  }
0x139c   :  { %v7645_v37 = vpop.f32.mrf.mxu1 }
0x139d   :  { %v5020_v53 = vadd.f32 %v7645_v37, %v4929_v63  ;;  %v5108_v27 = vadd.f32 %v5093_v3, %v5017_v45 }
0x139e   :  { %v5005_v60 = vpop.f32.mrf.mxu1 }
0x139f   :  { %v5018_v43 = vadd.f32 %v5005_v60, %v4927_v10  ;;  %v5111_v23 = vadd.f32 %v7657_v11, %v5020_v53  ;;  %v7977_v60 = vld [vmem:[%s10721_s3 + $0x338] sm:$0xff]  }
0x13a1   :  { %v5109_v26 = vadd.f32 %v5096_v2, %v5018_v43  ;;  %v7989_v43 = vld [vmem:[%s10721_s3 + $0x3c0] sm:$0xff]  }
0x13a8   :  { %v7668_v33 = vpop.f32.mrf.mxu1 }
0x13a9   :  { %v5201_v41 = vadd.f32 %v7668_v33, %v5110_v36  ;;  %v7978_v33 = vld [vmem:[%s10721_s3 + $0x330] sm:$0xff]  }
0x13aa   :  { %v5184_v21 = vpop.f32.mrf.mxu1 }
0x13ab   :  { %v5199_v40 = vadd.f32 %v5184_v21, %v5108_v27  ;;  %v5210_v38 = vadd.f32 %v6756_v8, %v5201_v41  ;;  %v7980_v27 = vld [vmem:[%s10721_s3 + $0x368] sm:$0xff]   ;;  %v7991_v41 = vld [vmem:[%s10721_s3 + $0x3b8] sm:$0xff]  }
0x13ac   :  { %v7669_v13 = vpop.f32.mrf.mxu1 }
0x13ad   :  { %v5202_v4 = vadd.f32 %v7669_v13, %v5111_v23  ;;  %v5208_v39 = vadd.f32 %v6756_v8, %v5199_v40 }
0x13ae   :  { %v5187_v51 = vpop.f32.mrf.mxu1 }
0x13af   :  { %v5211_v12 = vadd.f32 %v6756_v8, %v5202_v4  ;;  %v5200_v34 = vadd.f32 %v5187_v51, %v5109_v26  ;;  %v7981_v26 = vld [vmem:[%s10721_s3 + $0x360] sm:$0xff]   ;;  %v7993_v4 = vld [vmem:[%s10721_s3 + $0x3b0] sm:$0xff]  }
0x13b1   :  { %v5209_v35 = vadd.f32 %v6756_v8, %v5200_v34  ;;  %v5213_v47 = vpack.c.bf16 %v5211_v12, %v5210_v38  ;;  %v7982_v38 = vld [vmem:[%s10721_s3 + $0x358] sm:$0xff]   ;;  %v7995_v34 = vld [vmem:[%s10721_s3 + $0x408] sm:$0xff]  }
0x13b3   :  { %7670 = vmatprep.subr.bf16.mxu0 %v5213_v47  ;;  %v5212_v55 = vpack.c.bf16 %v5209_v35, %v5208_v39 }
0x13b4   :  { %7671 = vmatpush3.bf16.msra.mxu0 %v5213_v47 }
0x13b5   :  { %7672 = vmatprep.subr.bf16.mxu0 %v5212_v55 }
0x13b8   :  { %7673 = vmatpush3.bf16.msra.mxu0 %v5212_v55  ;;  %v7984_v55 = vld [vmem:[%s10721_s3 + $0x350] sm:$0xff]  }
0x13bb   :  { %7675 = vmatmul.mubr.msk.bf16.vlgmr.msra.gmra.mxu0 %vm2649_vm2, %v10275_v20  ;;  %v7966_v20 = vld [vmem:[%s10721_s3 + $0x328] sm:$0xff]  }
0x13bc   :  { %7678 = vmatprep.mubr.msk.bf16.mxu0 %vm2649_vm2, %v10280_v31  ;;  %7710 = vmatprep.subr.bf16.mxu1 %v7966_v20  ;;  %v7967_v31 = vld [vmem:[%s10721_s3 + $0x320] sm:$0xff]  }
0x13bd   :  { %7711 = vmatpush3.bf16.msra.mxu1 %v7966_v20 }
0x13be   :  { %7712 = vmatprep.subr.bf16.mxu1 %v7967_v31 }
0x13c1   :  { %7713 = vmatpush3.bf16.msra.mxu1 %v7967_v31  ;;  %v7997_v31 = vld [vmem:[%s10721_s3 + $0x400] sm:$0xff]  }
0x13c3   :  { %7679 = vmatmul.mubr.msk.bf16.gmra.mxu0 %vm2649_vm2, %v10289_v25  ;;  %v7968_v25 = vld [vmem:[%s10721_s3 + $0x318] sm:$0xff]  }
0x13c4   :  { %7682 = vmatprep.mubr.msk.bf16.mxu0 %vm2649_vm2, %v10294_v57  ;;  %7714 = vmatprep.subr.bf16.mxu1 %v7968_v25  ;;  %v7969_v57 = vld [vmem:[%s10721_s3 + $0x310] sm:$0xff]  }
0x13c5   :  { %7715 = vmatpush3.bf16.msra.mxu1 %v7968_v25 }
0x13c6   :  { %7716 = vmatprep.subr.bf16.mxu1 %v7969_v57 }
0x13c9   :  { %7717 = vmatpush3.bf16.msra.mxu1 %v7969_v57  ;;  %v7986_v57 = vld [vmem:[%s10721_s3 + $0x3a8] sm:$0xff]  }
0x13cb   :  { %7683 = vmatmul.mubr.msk.bf16.gmra.mxu0 %vm2649_vm2, %v10303_v1  ;;  %v7970_v1 = vld [vmem:[%s10721_s3 + $0x308] sm:$0xff]  }
0x13cc   :  { %7686 = vmatprep.mubr.msk.bf16.mxu0 %vm2649_vm2, %v10308_v44  ;;  %7722 = vmatprep.subr.bf16.mxu1 %v7970_v1  ;;  %v7973_v44 = vld [vmem:[%s10721_s3 + $0x388] sm:$0xff]  }
0x13cd   :  { %7758 = vmatprep.subr.bf16.mxu0 %v7973_v44 }
0x13ce   :  { %7759 = vmatpush3.bf16.msra.mxu0 %v7973_v44  ;;  %v7999_v44 = vld [vmem:[%s10721_s3 + $0x3f8] sm:$0xff]  }
0x13d3   :  { %7687 = vmatmul.mubr.msk.bf16.gmra.mxu0 %vm2649_vm2, %v10317_v49  ;;  %v7979_v49 = vld [vmem:[%s10721_s3 + $0x380] sm:$0xff]  }
0x13d4   :  { %7690 = vmatprep.mubr.msk.bf16.mxu0 %vm2649_vm2, %v10322_v6  ;;  %7760 = vmatprep.subr.bf16.mxu0 %v7979_v49  ;;  %v7983_v6 = vld [vmem:[%s10721_s3 + $0x378] sm:$0xff]  }
0x13d5   :  { %7761 = vmatpush3.bf16.msra.mxu0 %v7979_v49 }
0x13d6   :  { %7762 = vmatprep.subr.bf16.mxu0 %v7983_v6 }
0x13d9   :  { %7763 = vmatpush3.bf16.msra.mxu0 %v7983_v6 }
0x13db   :  { %7691 = vmatmul.mubr.msk.bf16.gmra.mxu0 %vm2649_vm2, %v10331_v17  ;;  %v7985_v17 = vld [vmem:[%s10721_s3 + $0x370] sm:$0xff]  }
0x13dc   :  { %7694 = vmatprep.mubr.msk.bf16.mxu0 %vm2649_vm2, %v10336_v32  ;;  %7764 = vmatprep.subr.bf16.mxu0 %v7985_v17  ;;  %v7987_v32 = vld [vmem:[%s10721_s3 + $0x3c8] sm:$0xff]  }
0x13dd   :  { %7765 = vmatpush3.bf16.msra.mxu0 %v7985_v17 }
0x13de   :  { %7782 = vmatprep.subr.bf16.mxu0 %v7987_v32 }
0x13e3   :  { %7695 = vmatmul.mubr.msk.bf16.gmra.mxu0 %vm2649_vm2, %v10345_v0 }
0x13e4   :  { %7698 = vmatprep.mubr.msk.bf16.mxu0 %vm2649_vm2, %v10350_v9 }
0x13eb   :  { %7699 = vmatmul.mubr.msk.bf16.gmra.mxu0 %vm2649_vm2, %v10359_v42 }
0x13ec   :  { %7702 = vmatprep.mubr.msk.bf16.mxu0 %vm2649_vm2, %v10364_v24 }
0x13f3   :  { %7703 = vmatmul.mubr.msk.bf16.gmra.mxu0 %vm2649_vm2, %v10373_v15 }
0x13f4   :  { %7706 = vmatprep.mubr.msk.bf16.mxu0 %vm2649_vm2, %v10378_v30 }
0x13fb   :  { %7707 = vmatmul.mubr.msk.bf16.gmra.mxu0 %vm2649_vm2, %v10387_v7 }
0x147b   :  { %v7676_v0 = vpop.f32.mrf.mxu0 }
0x147d   :  { %v5248_v9 = vpop.f32.mrf.mxu0 }
0x147f   :  { %v7677_v42 = vpop.f32.mrf.mxu0 }
0x1480   :  { %v5392_v3 = vpack.c.bf16 %v7677_v42, %v7676_v0 }
0x1481   :  { %v5251_v24 = vpop.f32.mrf.mxu0 }
0x1482   :  { %v5391_v22 = vpack.c.bf16 %v5251_v24, %v5248_v9  ;;  %v8001_v9 = vld [vmem:[%s10721_s3 + $0x3f0] sm:$0xff]   ;;  %v7990_v24 = vld [vmem:[%s10721_s3 + $0x398] sm:$0xff]  }
0x1483   :  { %v7680_v15 = vpop.f32.mrf.mxu0 }
0x1485   :  { %v5264_v30 = vpop.f32.mrf.mxu0 }
0x1487   :  { %v7681_v7 = vpop.f32.mrf.mxu0 }
0x1488   :  { %v5394_v62 = vpack.c.bf16 %v7681_v7, %v7680_v15 }
0x1489   :  { %v5267_v18 = vpop.f32.mrf.mxu0 }
0x148a   :  { %v5393_v58 = vpack.c.bf16 %v5267_v18, %v5264_v30 }
0x148b   :  { %v10601_v59 = vpop.f32.mrf.mxu0 }
0x148c   :  { %7718 = vmatprep.mubr.msk.bf16.mxu1 %vm1377_vm0, %v5393_v58  ;;  %v7992_v58 = vld [vmem:[%s10721_s3 + $0x390] sm:$0xff]  }
0x148d   :  { %7719 = vmatmul.mubr.msk.bf16.vlgmr.msra.gmra.mxu1 %vm1377_vm0, %v5394_v62  ;;  %v5280_v28 = vpop.f32.mrf.mxu0  ;;  %v7994_v62 = vld [vmem:[%s10721_s3 + $0x3e8] sm:$0xff]  }
0x148e   :  { %7723 = vmatpush3.bf16.msra.mxu1 %v7970_v1  ;;  %7730 = vmatprep.mubr.msk.bf16.mxu1 %vm1377_vm0, %v5391_v22  ;;  %v7996_v22 = vld [vmem:[%s10721_s3 + $0x3e0] sm:$0xff]  }
0x148f   :  { %7724 = vmatprep.subr.bf16.mxu1 %v7971_v29  ;;  %v7685_v52 = vpop.f32.mrf.mxu0 }
0x1490   :  { %v5396_v13 = vpack.c.bf16 %v7685_v52, %v10601_v59 }
0x1491   :  { %v5283_v48 = vpop.f32.mrf.mxu0 }
0x1492   :  { %7725 = vmatpush3.bf16.msra.mxu1 %v7971_v29  ;;  %v5395_v19 = vpack.c.bf16 %v5283_v48, %v5280_v28  ;;  %v7998_v28 = vld [vmem:[%s10721_s3 + $0x3d8] sm:$0xff]  }
0x1493   :  { %7726 = vmatprep.subr.bf16.mxu1 %v7972_v5  ;;  %v10612_v14 = vpop.f32.mrf.mxu0 }
0x1495   :  { %v5296_v16 = vpop.f32.mrf.mxu0 }
0x1496   :  { %7727 = vmatpush3.bf16.msra.mxu1 %v7972_v5  ;;  %v8000_v5 = vld [vmem:[%s10721_s3 + $0x3d0] sm:$0xff]  }
0x1497   :  { %7728 = vmatprep.subr.bf16.mxu1 %v7974_v46  ;;  %v10617_v37 = vpop.f32.mrf.mxu0 }
0x1498   :  { %v5398_v17 = vpack.c.bf16 %v10617_v37, %v10612_v14 }
0x1499   :  { %v5299_v50 = vpop.f32.mrf.mxu0 }
0x149a   :  { %7729 = vmatpush3.bf16.msra.mxu1 %v7974_v46  ;;  %v5397_v8 = vpack.c.bf16 %v5299_v50, %v5296_v16 }
0x149b   :  { %7734 = vmatprep.subr.bf16.mxu1 %v7975_v61  ;;  %v7692_v63 = vpop.f32.mrf.mxu0 }
0x149d   :  { %7731 = vmatmul.mubr.msk.bf16.vlgmr.msra.gmra.mxu1 %vm1377_vm0, %v5392_v3  ;;  %v5312_v54 = vpop.f32.mrf.mxu0 }
0x149e   :  { %7735 = vmatpush3.bf16.msra.mxu1 %v7975_v61  ;;  %7742 = vmatprep.mubr.msk.bf16.mxu1 %vm1377_vm0, %v5395_v19 }
0x149f   :  { %7736 = vmatprep.subr.bf16.mxu1 %v7976_v56  ;;  %v7693_v10 = vpop.f32.mrf.mxu0 }
0x14a0   :  { %v5400_v45 = vpack.c.bf16 %v7693_v10, %v7692_v63 }
0x14a1   :  { %v5315_v53 = vpop.f32.mrf.mxu0 }
0x14a2   :  { %7737 = vmatpush3.bf16.msra.mxu1 %v7976_v56  ;;  %v5399_v11 = vpack.c.bf16 %v5315_v53, %v5312_v54 }
0x14a3   :  { %7738 = vmatprep.subr.bf16.mxu1 %v7977_v60  ;;  %v10630_v36 = vpop.f32.mrf.mxu0 }
0x14a4   :  { %7766 = vmatprep.mubr.msk.bf16.mxu0 %vm1377_vm0, %v5399_v11 }
0x14a5   :  { %v10636_v21 = vpop.f32.mrf.mxu0  ;;  %7767 = vmatmul.mubr.msk.bf16.vlgmr.msra.gmra.mxu0 %vm1377_vm0, %v5400_v45 }
0x14a6   :  { %7739 = vmatpush3.bf16.msra.mxu1 %v7977_v60  ;;  %7783 = vmatpush3.bf16.msra.mxu0 %v7987_v32  ;;  %v7988_v32 = vld [vmem:[%s10721_s3 + $0x3a0] sm:$0xff]  }
0x14a7   :  { %7740 = vmatprep.subr.bf16.mxu1 %v7978_v33  ;;  %v10642_v23 = vpop.f32.mrf.mxu0  ;;  %7784 = vmatprep.subr.bf16.mxu0 %v7989_v43 }
0x14a8   :  { %v5402_v59 = vpack.c.bf16 %v10642_v23, %v10630_v36 }
0x14a9   :  { %v5331_v2 = vpop.f32.mrf.mxu0 }
0x14aa   :  { %7741 = vmatpush3.bf16.msra.mxu1 %v7978_v33  ;;  %7785 = vmatpush3.bf16.msra.mxu0 %v7989_v43  ;;  %v5401_v6 = vpack.c.bf16 %v5331_v2, %v10636_v21 }
0x14ab   :  { %7746 = vmatprep.subr.bf16.mxu1 %v7980_v27  ;;  %v7700_v40 = vpop.f32.mrf.mxu0  ;;  %7786 = vmatprep.subr.bf16.mxu0 %v7991_v41 }
0x14ad   :  { %7743 = vmatmul.mubr.msk.bf16.vlgmr.msra.gmra.mxu1 %vm1377_vm0, %v5396_v13  ;;  %v5344_v51 = vpop.f32.mrf.mxu0 }
0x14ae   :  { %7747 = vmatpush3.bf16.msra.mxu1 %v7980_v27  ;;  %7754 = vmatprep.mubr.msk.bf16.mxu1 %vm1377_vm0, %v5397_v8 }
0x14af   :  { %7748 = vmatprep.subr.bf16.mxu1 %v7981_v26  ;;  %7787 = vmatpush3.bf16.msra.mxu0 %v7991_v41  ;;  %v7701_v12 = vpop.f32.mrf.mxu0 }
0x14b0   :  { %7788 = vmatprep.subr.bf16.mxu0 %v7993_v4  ;;  %v5404_v35 = vpack.c.bf16 %v7701_v12, %v7700_v40 }
0x14b1   :  { %v5347_v39 = vpop.f32.mrf.mxu0 }
0x14b2   :  { %7749 = vmatpush3.bf16.msra.mxu1 %v7981_v26  ;;  %v5403_v47 = vpack.c.bf16 %v5347_v39, %v5344_v51 }
0x14b3   :  { %7750 = vmatprep.subr.bf16.mxu1 %v7982_v38  ;;  %7789 = vmatpush3.bf16.msra.mxu0 %v7993_v4  ;;  %v7704_v20 = vpop.f32.mrf.mxu0 }
0x14b4   :  { %7790 = vmatprep.mubr.msk.bf16.mxu0 %vm1377_vm0, %v5403_v47  ;;  %7806 = vmatprep.subr.bf16.mxu0 %v7995_v34 }
0x14b5   :  { %v5360_v25 = vpop.f32.mrf.mxu0 }
0x14b6   :  { %7751 = vmatpush3.bf16.msra.mxu1 %v7982_v38  ;;  %7791 = vmatmul.mubr.msk.bf16.vlgmr.msra.gmra.mxu0 %vm1377_vm0, %v5404_v35 }
0x14b7   :  { %7752 = vmatprep.subr.bf16.mxu1 %v7984_v55  ;;  %7807 = vmatpush3.bf16.msra.mxu0 %v7995_v34  ;;  %v7705_v1 = vpop.f32.mrf.mxu0 }
0x14b8   :  { %7808 = vmatprep.subr.bf16.mxu0 %v7997_v31  ;;  %v5406_v52 = vpack.c.bf16 %v7705_v1, %v7704_v20 }
0x14b9   :  { %v5363_v49 = vpop.f32.mrf.mxu0 }
0x14ba   :  { %7753 = vmatpush3.bf16.msra.mxu1 %v7984_v55  ;;  %v5405_v29 = vpack.c.bf16 %v5363_v49, %v5360_v25 }
0x14bb   :  { %7770 = vmatprep.subr.bf16.mxu1 %v7986_v57  ;;  %7809 = vmatpush3.bf16.msra.mxu0 %v7997_v31  ;;  %v7708_v0 = vpop.f32.mrf.mxu0 }
0x14bc   :  { %7810 = vmatprep.subr.bf16.mxu0 %v7999_v44 }
0x14bd   :  { %7755 = vmatmul.mubr.msk.bf16.vlgmr.msra.gmra.mxu1 %vm1377_vm0, %v5398_v17  ;;  %v5376_v42 = vpop.f32.mrf.mxu0 }
0x14be   :  { %7771 = vmatpush3.bf16.msra.mxu1 %v7986_v57  ;;  %7778 = vmatprep.mubr.msk.bf16.mxu1 %vm1377_vm0, %v5401_v6 }
0x14bf   :  { %7772 = vmatprep.subr.bf16.mxu1 %v7988_v32  ;;  %7811 = vmatpush3.bf16.msra.mxu0 %v7999_v44  ;;  %v7709_v15 = vpop.f32.mrf.mxu0 }
0x14c0   :  { %7812 = vmatprep.subr.bf16.mxu0 %v8001_v9  ;;  %v5408_v7 = vpack.c.bf16 %v7709_v15, %v7708_v0 }
0x14c1   :  { %v5379_v30 = vpop.f32.mrf.mxu0 }
0x14c2   :  { %7773 = vmatpush3.bf16.msra.mxu1 %v7988_v32  ;;  %v5407_v18 = vpack.c.bf16 %v5379_v30, %v5376_v42 }
0x14c3   :  { %7774 = vmatprep.subr.bf16.mxu1 %v7990_v24  ;;  %7813 = vmatpush3.bf16.msra.mxu0 %v8001_v9 }
0x14c4   :  { %7814 = vmatprep.mubr.msk.bf16.mxu0 %vm1377_vm0, %v5407_v18  ;;  %v6829_v18 = vld [vmem:[%s10722_s4 + $0x68] ss:$0 sm:$0xff]  ;;  %s8126_s4 = scalar_lea.vmem %s6239_s30, 512 }
0x14c5   :  { %p8127_p0 = scmp.ne.s32.totalorder %s6239_s30, %s8126_s4  ;;  %p8132_p2 = scmp.lt.s32.totalorder %s8126_s4, %s8126_s4 }
0x14c6   :  { %7775 = vmatpush3.bf16.msra.mxu1 %v7990_v24  ;;  %7815 = vmatmul.mubr.msk.bf16.vlgmr.msra.gmra.mxu0 %vm1377_vm0, %v5408_v7 }
0x14c7   :  { %7776 = vmatprep.subr.bf16.mxu1 %v7992_v58  ;;  %p8133_p3 = por %p8132_p2, %p8131_p1 }
0x14c9   :  { %p8134_p4 = pnand %p8133_p3, %p8127_p0 }
0x14ca   :  { %7777 = vmatpush3.bf16.msra.mxu1 %v7992_v58 }
0x14cb   :  { %7794 = vmatprep.subr.bf16.mxu1 %v7994_v62 }
0x14cd   :  { %7779 = vmatmul.mubr.msk.bf16.vlgmr.msra.gmra.mxu1 %vm1377_vm0, %v5402_v59 }
0x14ce   :  { %7795 = vmatpush3.bf16.msra.mxu1 %v7994_v62  ;;  %7802 = vmatprep.mubr.msk.bf16.mxu1 %vm1377_vm0, %v5405_v29 }
0x14cf   :  { %7796 = vmatprep.subr.bf16.mxu1 %v7996_v22 }
0x14d2   :  { %7797 = vmatpush3.bf16.msra.mxu1 %v7996_v22 }
0x14d3   :  { %7798 = vmatprep.subr.bf16.mxu1 %v7998_v28 }
0x14d6   :  { %7799 = vmatpush3.bf16.msra.mxu1 %v7998_v28 }
0x14d7   :  { %7800 = vmatprep.subr.bf16.mxu1 %v8000_v5 }
0x14da   :  { %7801 = vmatpush3.bf16.msra.mxu1 %v8000_v5 }
0x14dd   :  { %7803 = vmatmul.mubr.msk.bf16.vlgmr.msra.gmra.mxu1 %vm1377_vm0, %v5406_v52 }
0x154d   :  { %v7720_v48 = vpop.f32.mrf.mxu1 }
0x154f   :  { %v5489_v46 = vpop.f32.mrf.mxu1 }
0x1551   :  { %v7721_v14 = vpop.f32.mrf.mxu1 }
0x1553   :  { %v5492_v16 = vpop.f32.mrf.mxu1 }
0x155d   :  { %v7732_v61 = vpop.f32.mrf.mxu1 }
0x155e   :  { %v5577_v27 = vadd.f32 %v7732_v61, %v7720_v48 }
0x155f   :  { %v5568_v37 = vpop.f32.mrf.mxu1 }
0x1560   :  { %v5569_v2 = vadd.f32 %v5568_v37, %v5489_v46 }
0x1561   :  { %v7733_v50 = vpop.f32.mrf.mxu1 }
0x1562   :  { %v5580_v13 = vadd.f32 %v7733_v50, %v7721_v14 }
0x1563   :  { %v5571_v19 = vpop.f32.mrf.mxu1 }
0x1564   :  { %v5572_v38 = vadd.f32 %v5571_v19, %v5492_v16 }
0x1565   :  { %v7768_v54 = vpop.f32.mrf.mxu0 }
0x1567   :  { %v5837_v45 = vpop.f32.mrf.mxu0 }
0x1569   :  { %v7769_v11 = vpop.f32.mrf.mxu0 }
0x156b   :  { %v5840_v36 = vpop.f32.mrf.mxu0 }
0x156d   :  { %v7744_v3 = vpop.f32.mrf.mxu1 }
0x156e   :  { %v5672_v8 = vadd.f32 %v7744_v3, %v5577_v27 }
0x156f   :  { %v5655_v56 = vpop.f32.mrf.mxu1 }
0x1570   :  { %v5670_v26 = vadd.f32 %v5655_v56, %v5569_v2 }
0x1571   :  { %v7745_v63 = vpop.f32.mrf.mxu1 }
0x1572   :  { %v5673_v12 = vadd.f32 %v7745_v63, %v5580_v13 }
0x1573   :  { %v5658_v60 = vpop.f32.mrf.mxu1 }
0x1574   :  { %v5671_v39 = vadd.f32 %v5658_v60, %v5572_v38 }
0x1576   :  { %v7792_v43 = vpop.f32.mrf.mxu0 }
0x1578   :  { %v6019_v41 = vpop.f32.mrf.mxu0 }
0x157a   :  { %v7793_v51 = vpop.f32.mrf.mxu0 }
0x157c   :  { %v6022_v20 = vpop.f32.mrf.mxu0 }
0x157d   :  { %v7756_v10 = vpop.f32.mrf.mxu1 }
0x157e   :  { %v5763_v40 = vadd.f32 %v7756_v10, %v5672_v8 }
0x157f   :  { %v5746_v53 = vpop.f32.mrf.mxu1 }
0x1580   :  { %v5761_v34 = vadd.f32 %v5746_v53, %v5670_v26  ;;  %v5854_v35 = vadd.f32 %v7768_v54, %v5763_v40 }
0x1581   :  { %v7757_v33 = vpop.f32.mrf.mxu1 }
0x1582   :  { %v5764_v47 = vadd.f32 %v7757_v33, %v5673_v12  ;;  %v5852_v31 = vadd.f32 %v5837_v45, %v5761_v34 }
0x1583   :  { %v5749_v21 = vpop.f32.mrf.mxu1 }
0x1584   :  { %v5762_v25 = vadd.f32 %v5749_v21, %v5671_v39  ;;  %v5855_v44 = vadd.f32 %v7769_v11, %v5764_v47 }
0x1586   :  { %v7816_v1 = vpop.f32.mrf.mxu0  ;;  %v5853_v17 = vadd.f32 %v5840_v36, %v5762_v25 }
0x1588   :  { %v6201_v42 = vpop.f32.mrf.mxu0 }
0x158a   :  { %v7817_v22 = vpop.f32.mrf.mxu0 }
0x158c   :  { %v6204_v37 = vpop.f32.mrf.mxu0 }
0x158d   :  { %v7780_v23 = vpop.f32.mrf.mxu1 }
0x158e   :  { %v5945_v57 = vadd.f32 %v7780_v23, %v5854_v35 }
0x158f   :  { %v5928_v4 = vpop.f32.mrf.mxu1 }
0x1590   :  { %v5943_v49 = vadd.f32 %v5928_v4, %v5852_v31  ;;  %v6036_v32 = vadd.f32 %v7792_v43, %v5945_v57 }
0x1591   :  { %v7781_v55 = vpop.f32.mrf.mxu1 }
0x1592   :  { %v5946_v0 = vadd.f32 %v7781_v55, %v5855_v44  ;;  %v6034_v24 = vadd.f32 %v6019_v41, %v5943_v49 }
0x1593   :  { %v5931_v6 = vpop.f32.mrf.mxu1 }
0x1594   :  { %v5944_v15 = vadd.f32 %v5931_v6, %v5853_v17  ;;  %v6037_v58 = vadd.f32 %v7793_v51, %v5946_v0 }
0x1596   :  { %v6035_v28 = vadd.f32 %v6022_v20, %v5944_v15 }
0x159d   :  { %v7804_v9 = vpop.f32.mrf.mxu1 }
0x159e   :  { %v6127_v30 = vadd.f32 %v7804_v9, %v6036_v32 }
0x159f   :  { %v6110_v7 = vpop.f32.mrf.mxu1 }
0x15a0   :  { %v6125_v62 = vadd.f32 %v6110_v7, %v6034_v24  ;;  %v6218_v29 = vadd.f32 %v7816_v1, %v6127_v30 }
0x15a1   :  { %v7805_v59 = vpop.f32.mrf.mxu1 }
0x15a2   :  { %v6227_v5 = vadd.f32 %v6829_v18, %v6218_v29  ;;  %v6128_v52 = vadd.f32 %v7805_v59, %v6037_v58  ;;  %v6216_v48 = vadd.f32 %v6201_v42, %v6125_v62 }
0x15a3   :  { %v6113_v46 = vpop.f32.mrf.mxu1 }
0x15a4   :  { %6231 = vst [vmem:[#allocation2 + $0x10] sm:$0xff] %v6227_v5  ;;  %v6225_v14 = vadd.f32 %v6829_v18, %v6216_v48  ;;  %v6126_v16 = vadd.f32 %v6113_v46, %v6035_v28  ;;  %v6219_v61 = vadd.f32 %v7817_v22, %v6128_v52 }
0x15a6   :  { %6229 = vst [vmem:[#allocation2] sm:$0xff] %v6225_v14  ;;  %v6228_v50 = vadd.f32 %v6829_v18, %v6219_v61  ;;  %v6217_v19 = vadd.f32 %v6204_v37, %v6126_v16 }
0x15a8   :  { %6232 = vst [vmem:[#allocation2 + $0x18] sm:$0xff] %v6228_v50  ;;  %v6226_v3 = vadd.f32 %v6829_v18, %v6217_v19 }
0x15aa   :  { %6230 = vst [vmem:[#allocation2 + $0x8] sm:$0xff] %v6226_v3 }
0x15ab   :  { %8137 = shalt.err (!%p8134_p4)
}
0x15ac   :  { %s8152_s6 = smov 128   ;;  %s8153_s7 = smov 8  }
0x15ad   :  { %6244 = dma.vmem_to_hbm [thread:$0]  %s6239_s30, 512, %s10723_s5, [#allocation3], %s8152_s6, %s8152_s6, %s8153_s7  }
0x15ae   :  { %8146 = dma.done.wait [#allocation3], 512  }
0x15af   :  { %8147 = vsyncadd [#allocation3], 4294966784 }
0x15b0   :  { %6248 = vsyncpa [#allocation3], 1 }

</bundles_post_ra>
